<compile_context>
chip_gen: v7x
topology: tpu7x:2x2x1
jax: 0.10.0
libtpu: 0.0.40
codegen_flags: <defaults>
</compile_context>

<pallas_src>
import functools
from math import sqrt

import numpy as np
import jax
import jax.numpy as jnp
from jax.experimental import pallas as pl
from jax.experimental.pallas import tpu as pltpu

W_DIM = 128
LRELU = 0.2
EPS = 1e-8


def _num_tensorcores():
    # Perf-only knob: split the batch across TensorCores on v7x-class chips.
    # Falling back to 1 is always correct.
    try:
        kind = jax.devices()[0].device_kind.lower()
        return 2 if ("v7" in kind or "7x" in kind) else 1
    except Exception:  # pragma: no cover
        return 1


# --------------------------------------------------------------------------
# fused kernel: one grid step covers `bb` batch elements laid out along lanes
# --------------------------------------------------------------------------
def _gen_block_kernel(W,
                      x_ref, n1_ref, n2_ref, m_ref,
                      s1_ref, g1_ref, s2_ref, g2_ref, srgb_ref,
                      w1_ref, b1_ref, w2_ref, b2_ref, wrgb_ref, brgb_ref,
                      sn1_ref, sn2_ref,
                      x_out_ref, rgb_out_ref,
                      patches_ref):
    N = x_ref.shape[-1]                  # lanes in this block (= bb * H * W)

    def mod_conv3x3(x_mod, cin, w_ref, sig, bias, noise, sn):
        # x_mod: (cin, N) f32, already style-modulated.
        # Build the bf16 im2col slab tap-by-tap directly in VMEM scratch.
        t = 0
        for ky in range(3):
            for kx in range(3):
                d = (ky - 1) * W + (kx - 1)
                if d == 0:
                    tap = x_mod                                   # center: no mask
                else:
                    # shifted[:, j] = x_mod[:, (j + d) mod N]; wrapped /
                    # cross-image lanes are zeroed by the border mask.
                    shifted = pltpu.roll(x_mod, (-d) % N, axis=1)
                    tap = shifted * m_ref[t:t + 1, :]
                patches_ref[t * cin:(t + 1) * cin, :] = tap.astype(jnp.bfloat16)
                t += 1
        # (Cout, 9*cin) @ (9*cin, N) on the MXU, f32 accumulation.
        y = jnp.dot(w_ref[...], patches_ref[0:9 * cin, :],
                    preferred_element_type=jnp.float32)
        y = y * sig + sn * noise + bias                           # demod, noise, bias
        return jnp.where(y > 0, y, LRELU * y)                     # leaky relu

    cin = x_ref.shape[0]
    cout = w1_ref.shape[0]

    x0 = x_ref[...] * s1_ref[...]                                 # modulate acts
    y1 = mod_conv3x3(x0, cin, w1_ref, g1_ref[...], b1_ref[...],
                     n1_ref[...], sn1_ref[0, 0])
    y2 = mod_conv3x3(y1 * s2_ref[...], cout, w2_ref, g2_ref[...], b2_ref[...],
                     n2_ref[...], sn2_ref[0, 0])
    x_out_ref[...] = y2   # (could be bf16 if the next block consumes bf16)

    # ToRGB: 1x1 modulated conv (no demod), bf16 MXU operands, f32 epilogue.
    rgb = jnp.dot(wrgb_ref[...], (y2 * srgb_ref[...]).astype(jnp.bfloat16),
                  preferred_element_type=jnp.float32)
    rgb = rgb + brgb_ref[...]
    rgb_out_ref[...] = jnp.where(rgb > 0, rgb, LRELU * rgb)


# --------------------------------------------------------------------------
# wrapper: tiny style linears / demod factors hoisted to XLA, batch-invariant
# bf16 weights, lane-broadcast styles, one fused pallas_call.
# --------------------------------------------------------------------------
def generator_block_pallas(params, x_nchw, wlat, noise0, noise1):
    B, Cin, H, W = x_nchw.shape
    HW = H * W
    Cout = params["sb1"]["conv_w"].shape[0]
    c_style = 1.0 / sqrt(W_DIM)
    hp = jax.lax.Precision.HIGHEST

    # grid: 1 step on single-TC chips; one batch-block per TC on v7x.
    n_tc = _num_tensorcores()
    gblocks = n_tc if (n_tc > 1 and B % n_tc == 0) else 1
    bb = B // gblocks
    N = bb * HW                                   # lanes per grid step
    assert N % 128 == 0, "lane width per block must be a multiple of 128"

    def style_vec(p):                             # (B, C)
        return jnp.dot(wlat, (p["style_w"] * c_style).T, precision=hp) + p["style_b"]

    def lane_bcast(v):                            # (B, C) -> (C, B*HW)
        Bv, C = v.shape
        return jnp.broadcast_to(v.T[:, :, None], (C, Bv, HW)).reshape(C, Bv * HW)

    def prep_conv(p):
        cout, cin, kh, kw = p["conv_w"].shape
        c_conv = 1.0 / sqrt(cin * kh * kw)
        w = p["conv_w"] * c_conv                                   # (Co,Ci,3,3)
        # flat weight: w_flat[o, (ky*3+kx)*Ci + i]; batch-invariant bf16.
        w_flat = jnp.transpose(w, (0, 2, 3, 1)).reshape(
            cout, kh * kw * cin).astype(jnp.bfloat16)
        s = style_vec(p)                                           # (B, Ci)
        wsq = jnp.sum(w * w, axis=(2, 3)).T                        # (Ci, Co)
        sig = jax.lax.rsqrt(jnp.dot(s * s, wsq, precision=hp) + EPS)  # (B, Co)
        return (w_flat, lane_bcast(s), lane_bcast(sig),
                p["bias"].reshape(cout, 1),
                jnp.reshape(p["scale_noise"], (1, 1)).astype(jnp.float32))

    w1, s1b, g1b, b1, sn1 = prep_conv(params["sb1"])
    w2, s2b, g2b, b2, sn2 = prep_conv(params["sb2"])

    pr = params["rgb"]
    cr = pr["conv_w"].shape[1]                                     # == Cout
    w_rgb = (pr["conv_w"] * (1.0 / sqrt(cr))).reshape(3, cr).astype(jnp.bfloat16)
    srgbb = lane_bcast(style_vec(pr))                              # (Cout, B*HW)
    b_rgb = pr["bias"].reshape(3, 1)

    # activations / noise: lane axis = batch-major spatial (b*HW + h*W + w)
    x_flat = x_nchw.reshape(B, Cin, HW).transpose(1, 0, 2).reshape(Cin, B * HW)
    n1 = noise0.reshape(1, B * HW)
    n2 = noise1.reshape(1, B * HW)

    # border masks for the 9 taps of a zero-padded 3x3 conv; periodic in HW,
    # so one (9, N) slab serves every grid step.
    pos = np.arange(N) % HW
    row, col = pos // W, pos % W
    mrows = []
    for ky in range(3):
        for kx in range(3):
            oy, ox = ky - 1, kx - 1
            mrows.append(((row + oy >= 0) & (row + oy < H) &
                          (col + ox >= 0) & (col + ox < W)).astype(np.float32))
    masks = jnp.asarray(np.stack(mrows, axis=0))                   # (9, N)

    kern = functools.partial(_gen_block_kernel, W)

    x_out, rgb_out = pl.pallas_call(
        kern,
        out_shape=(jax.ShapeDtypeStruct((Cout, B * HW), jnp.float32),
                   jax.ShapeDtypeStruct((3, B * HW), jnp.float32)),
        grid=(gblocks,),
        in_specs=[
            pl.BlockSpec((Cin, N), lambda g: (0, g)),              # x
            pl.BlockSpec((1, N), lambda g: (0, g)),                # noise 1
            pl.BlockSpec((1, N), lambda g: (0, g)),                # noise 2
            pl.BlockSpec((9, N), lambda g: (0, 0)),                # border masks
            pl.BlockSpec((Cin, N), lambda g: (0, g)),              # style s1 (lane-bcast)
            pl.BlockSpec((Cout, N), lambda g: (0, g)),             # sigma_inv1
            pl.BlockSpec((Cout, N), lambda g: (0, g)),             # style s2
            pl.BlockSpec((Cout, N), lambda g: (0, g)),             # sigma_inv2
            pl.BlockSpec((Cout, N), lambda g: (0, g)),             # style s_rgb
            pl.BlockSpec((Cout, 9 * Cin), lambda g: (0, 0)),       # w1 bf16 (flat)
            pl.BlockSpec((Cout, 1), lambda g: (0, 0)),             # bias1
            pl.BlockSpec((Cout, 9 * Cout), lambda g: (0, 0)),      # w2 bf16 (flat)
            pl.BlockSpec((Cout, 1), lambda g: (0, 0)),             # bias2
            pl.BlockSpec((3, Cout), lambda g: (0, 0)),             # w_rgb bf16
            pl.BlockSpec((3, 1), lambda g: (0, 0)),                # bias rgb
            pl.BlockSpec(memory_space=pltpu.MemorySpace.SMEM),     # scale_noise1
            pl.BlockSpec(memory_space=pltpu.MemorySpace.SMEM),     # scale_noise2
        ],
        out_specs=(
            pl.BlockSpec((Cout, N), lambda g: (0, g)),
            pl.BlockSpec((3, N), lambda g: (0, g)),
        ),
        scratch_shapes=[pltpu.VMEM((9 * Cout, N), jnp.bfloat16)],  # im2col slab
        compiler_params=pltpu.CompilerParams(
            dimension_semantics=("parallel",)),                    # v7x: batch over TCs
    )(x_flat, n1, n2, masks, s1b, g1b, s2b, g2b, srgbb,
      w1, b1, w2, b2, w_rgb, b_rgb, sn1, sn2)

    x_out = x_out.reshape(Cout, B, HW).transpose(1, 0, 2).reshape(B, Cout, H, W)
    rgb_out = rgb_out.reshape(3, B, HW).transpose(1, 0, 2).reshape(B, 3, H, W)
    return x_out, rgb_out


# --------------------------------------------------------------------------
# deterministic parameter init (mirrors __init__; scale_noise/bias are made
# nonzero so the noise and bias terms are actually exercised by the check)
# --------------------------------------------------------------------------
def init_params(key, cin, cout):
    ks = jax.random.split(key, 11)
    randn = lambda k, s: jax.random.normal(k, s, dtype=jnp.float32)
    return {
        "sb1": {"style_w": randn(ks[0], (cin, W_DIM)),
                "style_b": jnp.ones((cin,), jnp.float32),
                "conv_w": randn(ks[1], (cout, cin, 3, 3)),
                "scale_noise": 0.2 * randn(ks[6], (1,)),
                "bias": 0.1 * randn(ks[7], (cout,))},
        "sb2": {"style_w": randn(ks[2], (cout, W_DIM)),
                "style_b": jnp.ones((cout,), jnp.float32),
                "conv_w": randn(ks[3], (cout, cout, 3, 3)),
                "scale_noise": 0.2 * randn(ks[8], (1,)),
                "bias": 0.1 * randn(ks[9], (cout,))},
        "rgb": {"style_w": randn(ks[4], (cout, W_DIM)),
                "style_b": jnp.ones((cout,), jnp.float32),
                "conv_w": randn(ks[5], (3, cout, 1, 1)),
                "bias": 0.1 * randn(ks[10], (3,))},
    }


# --------------------------------------------------------------------------
# pure-JAX reference (PyTorch NCHW semantics)
# --------------------------------------------------------------------------
def _linear_eq_ref(w_raw, bias, x):
    c = 1.0 / np.sqrt(w_raw.shape[1])
    return jnp.dot(x, (w_raw * c).T, precision=jax.lax.Precision.HIGHEST) + bias


def _conv_mod_ref(x, s, w_raw, demodulate, padding):
    c = 1.0 / np.sqrt(np.prod(w_raw.shape[1:]))
    weights = (w_raw * c)[None] * s[:, None, :, None, None]
    if demodulate:
        sigma_inv = jax.lax.rsqrt(jnp.sum(weights ** 2, axis=(2, 3, 4),
                                          keepdims=True) + EPS)
        weights = weights * sigma_inv
    outs = []
    for b in range(x.shape[0]):
        outs.append(jax.lax.conv_general_dilated(
            x[b:b + 1], weights[b], (1, 1),
            [(padding, padding), (padding, padding)],
            dimension_numbers=('NCHW', 'OIHW', 'NCHW'),
            precision=jax.lax.Precision.HIGHEST))
    return jnp.concatenate(outs, axis=0)


def _lrelu(x):
    return jnp.where(x > 0, x, LRELU * x)


def generator_block_ref(params, x, wlat, noise):
    def style_block(p, x, n):
        s = _linear_eq_ref(p["style_w"], p["style_b"], wlat)
        x = _conv_mod_ref(x, s, p["conv_w"], True, 1)
        x = x + p["scale_noise"][None, :, None, None] * n
        return _lrelu(x + p["bias"][None, :, None, None])

    x = style_block(params["sb1"], x, noise[0])
    x = style_block(params["sb2"], x, noise[1])
    pr = params["rgb"]
    s = _linear_eq_ref(pr["style_w"], pr["style_b"], wlat)
    rgb = _conv_mod_ref(x, s, pr["conv_w"], False, 0)
    rgb = _lrelu(rgb + pr["bias"][None, :, None, None])
    return x, rgb


# --------------------------------------------------------------------------
if __name__ == "__main__":
    B, CIN, COUT, H, W = 2, 16, 32, 16, 16
    key = jax.random.PRNGKey(0)
    kp, kx, kw, kn0, kn1 = jax.random.split(key, 5)

    params = init_params(kp, CIN, COUT)
    x_nchw = jax.random.normal(kx, (B, CIN, H, W), jnp.float32)
    wlat = jax.random.normal(kw, (B, W_DIM), jnp.float32)
    noise0 = jax.random.normal(kn0, (B, 1, H, W), jnp.float32)
    noise1 = jax.random.normal(kn1, (B, 1, H, W), jnp.float32)

    # fused Pallas kernel (native NCHW in/out)
    x_out, rgb_out = generator_block_pallas(params, x_nchw, wlat, noise0, noise1)
    x_out = jax.block_until_ready(x_out)
    rgb_out = jax.block_until_ready(rgb_out)

    # f32 reference
    x_ref, rgb_ref = generator_block_ref(params, x_nchw, wlat, (noise0, noise1))

    # bf16 MXU operands in the kernel vs f32 reference -> loosened tolerance
    assert np.allclose(np.asarray(x_out), np.asarray(x_ref), atol=5e-2, rtol=5e-2)
    assert np.allclose(np.asarray(rgb_out), np.asarray(rgb_ref), atol=5e-2, rtol=5e-2)
    print("KERNEL_OK")
</pallas_src>

<mosaic_0001>
module attributes {stable_mosaic.version = 11 : i64} {
  func.func @_gen_block_kernel(%arg0: i32, %arg1: memref<16x512xf32, #tpu.memory_space<vmem>>, %arg2: memref<1x512xf32, #tpu.memory_space<vmem>>, %arg3: memref<1x512xf32, #tpu.memory_space<vmem>>, %arg4: memref<9x512xf32, #tpu.memory_space<vmem>>, %arg5: memref<16x512xf32, #tpu.memory_space<vmem>>, %arg6: memref<32x512xf32, #tpu.memory_space<vmem>>, %arg7: memref<32x512xf32, #tpu.memory_space<vmem>>, %arg8: memref<32x512xf32, #tpu.memory_space<vmem>>, %arg9: memref<32x512xf32, #tpu.memory_space<vmem>>, %arg10: memref<32x144xbf16, #tpu.memory_space<vmem>>, %arg11: memref<32x1xf32, #tpu.memory_space<vmem>>, %arg12: memref<32x288xbf16, #tpu.memory_space<vmem>>, %arg13: memref<32x1xf32, #tpu.memory_space<vmem>>, %arg14: memref<3x32xbf16, #tpu.memory_space<vmem>>, %arg15: memref<3x1xf32, #tpu.memory_space<vmem>>, %arg16: memref<1x1xf32, #tpu.memory_space<smem>>, %arg17: memref<1x1xf32, #tpu.memory_space<smem>>, %arg18: memref<32x512xf32, #tpu.memory_space<vmem>>, %arg19: memref<3x512xf32, #tpu.memory_space<vmem>>, %arg20: memref<288x512xbf16, #tpu.memory_space<vmem>>) attributes {dimension_semantics = [#tpu.dimension_semantics<parallel>], iteration_bounds = array<i64: 1>, scalar_prefetch = 0 : i64, scratch_operands = 1 : i64, tpu.core_type = #tpu.core_type<tc>, window_params = [{transform_indices = @transform_0, window_bounds = array<i64: 16, 512>}, {transform_indices = @transform_1, window_bounds = array<i64: 1, 512>}, {transform_indices = @transform_2, window_bounds = array<i64: 1, 512>}, {pipeline_mode = #tpu.pipeline_mode<synchronous>, transform_indices = @transform_3, window_bounds = array<i64: 9, 512>}, {transform_indices = @transform_4, window_bounds = array<i64: 16, 512>}, {transform_indices = @transform_5, window_bounds = array<i64: 32, 512>}, {transform_indices = @transform_6, window_bounds = array<i64: 32, 512>}, {transform_indices = @transform_7, window_bounds = array<i64: 32, 512>}, {transform_indices = @transform_8, window_bounds = array<i64: 32, 512>}, {pipeline_mode = #tpu.pipeline_mode<synchronous>, transform_indices = @transform_9, window_bounds = array<i64: 32, 144>}, {pipeline_mode = #tpu.pipeline_mode<synchronous>, transform_indices = @transform_10, window_bounds = array<i64: 32, 1>}, {pipeline_mode = #tpu.pipeline_mode<synchronous>, transform_indices = @transform_11, window_bounds = array<i64: 32, 288>}, {pipeline_mode = #tpu.pipeline_mode<synchronous>, transform_indices = @transform_12, window_bounds = array<i64: 32, 1>}, {pipeline_mode = #tpu.pipeline_mode<synchronous>, transform_indices = @transform_13, window_bounds = array<i64: 3, 32>}, {pipeline_mode = #tpu.pipeline_mode<synchronous>, transform_indices = @transform_14, window_bounds = array<i64: 3, 1>}, {transform_indices = @transform_15, window_bounds = array<i64: 1, 1>}, {transform_indices = @transform_16, window_bounds = array<i64: 1, 1>}, {transform_indices = @transform_17, window_bounds = array<i64: 32, 512>}, {transform_indices = @transform_18, window_bounds = array<i64: 3, 512>}]} {
    %c0 = arith.constant 0 : index
    %c0_0 = arith.constant 0 : index
    %0 = vector.load %arg1[%c0, %c0_0] : memref<16x512xf32, #tpu.memory_space<vmem>>, vector<16x512xf32>
    %c0_1 = arith.constant 0 : index
    %c0_2 = arith.constant 0 : index
    %1 = vector.load %arg5[%c0_1, %c0_2] : memref<16x512xf32, #tpu.memory_space<vmem>>, vector<16x512xf32>
    %2 = arith.mulf %0, %1 : vector<16x512xf32>
    %c0_3 = arith.constant 0 : index
    %c0_4 = arith.constant 0 : index
    %3 = vector.load %arg6[%c0_3, %c0_4] : memref<32x512xf32, #tpu.memory_space<vmem>>, vector<32x512xf32>
    %c0_5 = arith.constant 0 : index
    %c0_6 = arith.constant 0 : index
    %4 = vector.load %arg11[%c0_5, %c0_6] : memref<32x1xf32, #tpu.memory_space<vmem>>, vector<32x1xf32>
    %c0_7 = arith.constant 0 : index
    %c0_8 = arith.constant 0 : index
    %5 = vector.load %arg2[%c0_7, %c0_8] : memref<1x512xf32, #tpu.memory_space<vmem>>, vector<1x512xf32>
    %c0_9 = arith.constant 0 : index
    %c0_10 = arith.constant 0 : index
    %6 = memref.load %arg16[%c0_9, %c0_10] : memref<1x1xf32, #tpu.memory_space<smem>>
    %c17_i32 = arith.constant 17 : i32
    %7 = tpu.dynamic_rotate %2 by %c17_i32 dim 1 : vector<16x512xf32>, i32 -> vector<16x512xf32>
    %c0_11 = arith.constant 0 : index
    %c0_12 = arith.constant 0 : index
    %8 = vector.load %arg4[%c0_11, %c0_12] : memref<9x512xf32, #tpu.memory_space<vmem>>, vector<1x512xf32>
    %9 = vector.broadcast %8 : vector<1x512xf32> to vector<16x512xf32>
    %10 = arith.mulf %7, %9 : vector<16x512xf32>
    %11 = arith.truncf %10 : vector<16x512xf32> to vector<16x512xbf16>
    %c0_13 = arith.constant 0 : index
    %c0_14 = arith.constant 0 : index
    %12 = vector.load %arg20[%c0_13, %c0_14] : memref<288x512xbf16, #tpu.memory_space<vmem>>, vector<16x512xbf16>
    tpu.vector_store %arg20[%c0_13, %c0_14], %11 {strides = array<i32>} : memref<288x512xbf16, #tpu.memory_space<vmem>>, vector<16x512xbf16>,
    %c16_i32 = arith.constant 16 : i32
    %13 = tpu.dynamic_rotate %2 by %c16_i32 dim 1 : vector<16x512xf32>, i32 -> vector<16x512xf32>
    %c1 = arith.constant 1 : index
    %c0_15 = arith.constant 0 : index
    %14 = vector.load %arg4[%c1, %c0_15] : memref<9x512xf32, #tpu.memory_space<vmem>>, vector<1x512xf32>
    %15 = vector.broadcast %14 : vector<1x512xf32> to vector<16x512xf32>
    %16 = arith.mulf %13, %15 : vector<16x512xf32>
    %17 = arith.truncf %16 : vector<16x512xf32> to vector<16x512xbf16>
    %c16 = arith.constant 16 : index
    %c0_16 = arith.constant 0 : index
    %18 = vector.load %arg20[%c16, %c0_16] : memref<288x512xbf16, #tpu.memory_space<vmem>>, vector<16x512xbf16>
    tpu.vector_store %arg20[%c16, %c0_16], %17 {strides = array<i32>} : memref<288x512xbf16, #tpu.memory_space<vmem>>, vector<16x512xbf16>,
    %c15_i32 = arith.constant 15 : i32
    %19 = tpu.dynamic_rotate %2 by %c15_i32 dim 1 : vector<16x512xf32>, i32 -> vector<16x512xf32>
    %c2 = arith.constant 2 : index
    %c0_17 = arith.constant 0 : index
    %20 = vector.load %arg4[%c2, %c0_17] : memref<9x512xf32, #tpu.memory_space<vmem>>, vector<1x512xf32>
    %21 = vector.broadcast %20 : vector<1x512xf32> to vector<16x512xf32>
    %22 = arith.mulf %19, %21 : vector<16x512xf32>
    %23 = arith.truncf %22 : vector<16x512xf32> to vector<16x512xbf16>
    %c32 = arith.constant 32 : index
    %c0_18 = arith.constant 0 : index
    %24 = vector.load %arg20[%c32, %c0_18] : memref<288x512xbf16, #tpu.memory_space<vmem>>, vector<16x512xbf16>
    tpu.vector_store %arg20[%c32, %c0_18], %23 {strides = array<i32>} : memref<288x512xbf16, #tpu.memory_space<vmem>>, vector<16x512xbf16>,
    %c1_i32 = arith.constant 1 : i32
    %25 = tpu.dynamic_rotate %2 by %c1_i32 dim 1 : vector<16x512xf32>, i32 -> vector<16x512xf32>
    %c3 = arith.constant 3 : index
    %c0_19 = arith.constant 0 : index
    %26 = vector.load %arg4[%c3, %c0_19] : memref<9x512xf32, #tpu.memory_space<vmem>>, vector<1x512xf32>
    %27 = vector.broadcast %26 : vector<1x512xf32> to vector<16x512xf32>
    %28 = arith.mulf %25, %27 : vector<16x512xf32>
    %29 = arith.truncf %28 : vector<16x512xf32> to vector<16x512xbf16>
    %c48 = arith.constant 48 : index
    %c0_20 = arith.constant 0 : index
    %30 = vector.load %arg20[%c48, %c0_20] : memref<288x512xbf16, #tpu.memory_space<vmem>>, vector<16x512xbf16>
    tpu.vector_store %arg20[%c48, %c0_20], %29 {strides = array<i32>} : memref<288x512xbf16, #tpu.memory_space<vmem>>, vector<16x512xbf16>,
    %31 = arith.truncf %2 : vector<16x512xf32> to vector<16x512xbf16>
    %c64 = arith.constant 64 : index
    %c0_21 = arith.constant 0 : index
    %32 = vector.load %arg20[%c64, %c0_21] : memref<288x512xbf16, #tpu.memory_space<vmem>>, vector<16x512xbf16>
    tpu.vector_store %arg20[%c64, %c0_21], %31 {strides = array<i32>} : memref<288x512xbf16, #tpu.memory_space<vmem>>, vector<16x512xbf16>,
    %c511_i32 = arith.constant 511 : i32
    %33 = tpu.dynamic_rotate %2 by %c511_i32 dim 1 : vector<16x512xf32>, i32 -> vector<16x512xf32>
    %c5 = arith.constant 5 : index
    %c0_22 = arith.constant 0 : index
    %34 = vector.load %arg4[%c5, %c0_22] : memref<9x512xf32, #tpu.memory_space<vmem>>, vector<1x512xf32>
    %35 = vector.broadcast %34 : vector<1x512xf32> to vector<16x512xf32>
    %36 = arith.mulf %33, %35 : vector<16x512xf32>
    %37 = arith.truncf %36 : vector<16x512xf32> to vector<16x512xbf16>
    %c80 = arith.constant 80 : index
    %c0_23 = arith.constant 0 : index
    %38 = vector.load %arg20[%c80, %c0_23] : memref<288x512xbf16, #tpu.memory_space<vmem>>, vector<16x512xbf16>
    tpu.vector_store %arg20[%c80, %c0_23], %37 {strides = array<i32>} : memref<288x512xbf16, #tpu.memory_space<vmem>>, vector<16x512xbf16>,
    %c497_i32 = arith.constant 497 : i32
    %39 = tpu.dynamic_rotate %2 by %c497_i32 dim 1 : vector<16x512xf32>, i32 -> vector<16x512xf32>
    %c6 = arith.constant 6 : index
    %c0_24 = arith.constant 0 : index
    %40 = vector.load %arg4[%c6, %c0_24] : memref<9x512xf32, #tpu.memory_space<vmem>>, vector<1x512xf32>
    %41 = vector.broadcast %40 : vector<1x512xf32> to vector<16x512xf32>
    %42 = arith.mulf %39, %41 : vector<16x512xf32>
    %43 = arith.truncf %42 : vector<16x512xf32> to vector<16x512xbf16>
    %c96 = arith.constant 96 : index
    %c0_25 = arith.constant 0 : index
    %44 = vector.load %arg20[%c96, %c0_25] : memref<288x512xbf16, #tpu.memory_space<vmem>>, vector<16x512xbf16>
    tpu.vector_store %arg20[%c96, %c0_25], %43 {strides = array<i32>} : memref<288x512xbf16, #tpu.memory_space<vmem>>, vector<16x512xbf16>,
    %c496_i32 = arith.constant 496 : i32
    %45 = tpu.dynamic_rotate %2 by %c496_i32 dim 1 : vector<16x512xf32>, i32 -> vector<16x512xf32>
    %c7 = arith.constant 7 : index
    %c0_26 = arith.constant 0 : index
    %46 = vector.load %arg4[%c7, %c0_26] : memref<9x512xf32, #tpu.memory_space<vmem>>, vector<1x512xf32>
    %47 = vector.broadcast %46 : vector<1x512xf32> to vector<16x512xf32>
    %48 = arith.mulf %45, %47 : vector<16x512xf32>
    %49 = arith.truncf %48 : vector<16x512xf32> to vector<16x512xbf16>
    %c112 = arith.constant 112 : index
    %c0_27 = arith.constant 0 : index
    %50 = vector.load %arg20[%c112, %c0_27] : memref<288x512xbf16, #tpu.memory_space<vmem>>, vector<16x512xbf16>
    tpu.vector_store %arg20[%c112, %c0_27], %49 {strides = array<i32>} : memref<288x512xbf16, #tpu.memory_space<vmem>>, vector<16x512xbf16>,
    %c495_i32 = arith.constant 495 : i32
    %51 = tpu.dynamic_rotate %2 by %c495_i32 dim 1 : vector<16x512xf32>, i32 -> vector<16x512xf32>
    %c8 = arith.constant 8 : index
    %c0_28 = arith.constant 0 : index
    %52 = vector.load %arg4[%c8, %c0_28] : memref<9x512xf32, #tpu.memory_space<vmem>>, vector<1x512xf32>
    %53 = vector.broadcast %52 : vector<1x512xf32> to vector<16x512xf32>
    %54 = arith.mulf %51, %53 : vector<16x512xf32>
    %55 = arith.truncf %54 : vector<16x512xf32> to vector<16x512xbf16>
    %c128 = arith.constant 128 : index
    %c0_29 = arith.constant 0 : index
    %56 = vector.load %arg20[%c128, %c0_29] : memref<288x512xbf16, #tpu.memory_space<vmem>>, vector<16x512xbf16>
    tpu.vector_store %arg20[%c128, %c0_29], %55 {strides = array<i32>} : memref<288x512xbf16, #tpu.memory_space<vmem>>, vector<16x512xbf16>,
    %c0_30 = arith.constant 0 : index
    %c0_31 = arith.constant 0 : index
    %57 = vector.load %arg10[%c0_30, %c0_31] : memref<32x144xbf16, #tpu.memory_space<vmem>>, vector<32x144xbf16>
    %c0_32 = arith.constant 0 : index
    %c0_33 = arith.constant 0 : index
    %58 = vector.load %arg20[%c0_32, %c0_33] : memref<288x512xbf16, #tpu.memory_space<vmem>>, vector<144x512xbf16>
    %cst = arith.constant dense<0.000000e+00> : vector<32x512xf32>
    %59 = tpu.matmul %57, %58, %cst {dimension_numbers = #tpu.dot_dimension_numbers<[1], [0], [0], [1], [0, 0, 1, 1], [], []>} : vector<32x144xbf16>, vector<144x512xbf16>, vector<32x512xf32> -> vector<32x512xf32>
    %60 = arith.mulf %59, %3 : vector<32x512xf32>
    %61 = vector.broadcast %6 : f32 to vector<1x512xf32>
    %62 = arith.mulf %61, %5 : vector<1x512xf32>
    %63 = vector.broadcast %62 : vector<1x512xf32> to vector<32x512xf32>
    %64 = arith.addf %60, %63 : vector<32x512xf32>
    %65 = vector.broadcast %4 : vector<32x1xf32> to vector<32x512xf32>
    %66 = arith.addf %64, %65 : vector<32x512xf32>
    %cst_34 = arith.constant 0.000000e+00 : f32
    %67 = vector.broadcast %cst_34 : f32 to vector<32x512xf32>
    %68 = arith.cmpf ogt, %66, %67 : vector<32x512xf32>
    %cst_35 = arith.constant 2.000000e-01 : f32
    %69 = vector.broadcast %cst_35 : f32 to vector<32x512xf32>
    %70 = arith.mulf %69, %66 : vector<32x512xf32>
    %71 = arith.select %68, %66, %70 : vector<32x512xi1>, vector<32x512xf32>
    %c0_36 = arith.constant 0 : index
    %c0_37 = arith.constant 0 : index
    %72 = vector.load %arg7[%c0_36, %c0_37] : memref<32x512xf32, #tpu.memory_space<vmem>>, vector<32x512xf32>
    %73 = arith.mulf %71, %72 : vector<32x512xf32>
    %c0_38 = arith.constant 0 : index
    %c0_39 = arith.constant 0 : index
    %74 = vector.load %arg8[%c0_38, %c0_39] : memref<32x512xf32, #tpu.memory_space<vmem>>, vector<32x512xf32>
    %c0_40 = arith.constant 0 : index
    %c0_41 = arith.constant 0 : index
    %75 = vector.load %arg13[%c0_40, %c0_41] : memref<32x1xf32, #tpu.memory_space<vmem>>, vector<32x1xf32>
    %c0_42 = arith.constant 0 : index
    %c0_43 = arith.constant 0 : index
    %76 = vector.load %arg3[%c0_42, %c0_43] : memref<1x512xf32, #tpu.memory_space<vmem>>, vector<1x512xf32>
    %c0_44 = arith.constant 0 : index
    %c0_45 = arith.constant 0 : index
    %77 = memref.load %arg17[%c0_44, %c0_45] : memref<1x1xf32, #tpu.memory_space<smem>>
    %c17_i32_46 = arith.constant 17 : i32
    %78 = tpu.dynamic_rotate %73 by %c17_i32_46 dim 1 : vector<32x512xf32>, i32 -> vector<32x512xf32>
    %c0_47 = arith.constant 0 : index
    %c0_48 = arith.constant 0 : index
    %79 = vector.load %arg4[%c0_47, %c0_48] : memref<9x512xf32, #tpu.memory_space<vmem>>, vector<1x512xf32>
    %80 = vector.broadcast %79 : vector<1x512xf32> to vector<32x512xf32>
    %81 = arith.mulf %78, %80 : vector<32x512xf32>
    %82 = arith.truncf %81 : vector<32x512xf32> to vector<32x512xbf16>
    %c0_49 = arith.constant 0 : index
    %c0_50 = arith.constant 0 : index
    %83 = vector.load %arg20[%c0_49, %c0_50] : memref<288x512xbf16, #tpu.memory_space<vmem>>, vector<32x512xbf16>
    tpu.vector_store %arg20[%c0_49, %c0_50], %82 {strides = array<i32>} : memref<288x512xbf16, #tpu.memory_space<vmem>>, vector<32x512xbf16>,
    %c16_i32_51 = arith.constant 16 : i32
    %84 = tpu.dynamic_rotate %73 by %c16_i32_51 dim 1 : vector<32x512xf32>, i32 -> vector<32x512xf32>
    %c1_52 = arith.constant 1 : index
    %c0_53 = arith.constant 0 : index
    %85 = vector.load %arg4[%c1_52, %c0_53] : memref<9x512xf32, #tpu.memory_space<vmem>>, vector<1x512xf32>
    %86 = vector.broadcast %85 : vector<1x512xf32> to vector<32x512xf32>
    %87 = arith.mulf %84, %86 : vector<32x512xf32>
    %88 = arith.truncf %87 : vector<32x512xf32> to vector<32x512xbf16>
    %c32_54 = arith.constant 32 : index
    %c0_55 = arith.constant 0 : index
    %89 = vector.load %arg20[%c32_54, %c0_55] : memref<288x512xbf16, #tpu.memory_space<vmem>>, vector<32x512xbf16>
    tpu.vector_store %arg20[%c32_54, %c0_55], %88 {strides = array<i32>} : memref<288x512xbf16, #tpu.memory_space<vmem>>, vector<32x512xbf16>,
    %c15_i32_56 = arith.constant 15 : i32
    %90 = tpu.dynamic_rotate %73 by %c15_i32_56 dim 1 : vector<32x512xf32>, i32 -> vector<32x512xf32>
    %c2_57 = arith.constant 2 : index
    %c0_58 = arith.constant 0 : index
    %91 = vector.load %arg4[%c2_57, %c0_58] : memref<9x512xf32, #tpu.memory_space<vmem>>, vector<1x512xf32>
    %92 = vector.broadcast %91 : vector<1x512xf32> to vector<32x512xf32>
    %93 = arith.mulf %90, %92 : vector<32x512xf32>
    %94 = arith.truncf %93 : vector<32x512xf32> to vector<32x512xbf16>
    %c64_59 = arith.constant 64 : index
    %c0_60 = arith.constant 0 : index
    %95 = vector.load %arg20[%c64_59, %c0_60] : memref<288x512xbf16, #tpu.memory_space<vmem>>, vector<32x512xbf16>
    tpu.vector_store %arg20[%c64_59, %c0_60], %94 {strides = array<i32>} : memref<288x512xbf16, #tpu.memory_space<vmem>>, vector<32x512xbf16>,
    %c1_i32_61 = arith.constant 1 : i32
    %96 = tpu.dynamic_rotate %73 by %c1_i32_61 dim 1 : vector<32x512xf32>, i32 -> vector<32x512xf32>
    %c3_62 = arith.constant 3 : index
    %c0_63 = arith.constant 0 : index
    %97 = vector.load %arg4[%c3_62, %c0_63] : memref<9x512xf32, #tpu.memory_space<vmem>>, vector<1x512xf32>
    %98 = vector.broadcast %97 : vector<1x512xf32> to vector<32x512xf32>
    %99 = arith.mulf %96, %98 : vector<32x512xf32>
    %100 = arith.truncf %99 : vector<32x512xf32> to vector<32x512xbf16>
    %c96_64 = arith.constant 96 : index
    %c0_65 = arith.constant 0 : index
    %101 = vector.load %arg20[%c96_64, %c0_65] : memref<288x512xbf16, #tpu.memory_space<vmem>>, vector<32x512xbf16>
    tpu.vector_store %arg20[%c96_64, %c0_65], %100 {strides = array<i32>} : memref<288x512xbf16, #tpu.memory_space<vmem>>, vector<32x512xbf16>,
    %102 = arith.truncf %73 : vector<32x512xf32> to vector<32x512xbf16>
    %c128_66 = arith.constant 128 : index
    %c0_67 = arith.constant 0 : index
    %103 = vector.load %arg20[%c128_66, %c0_67] : memref<288x512xbf16, #tpu.memory_space<vmem>>, vector<32x512xbf16>
    tpu.vector_store %arg20[%c128_66, %c0_67], %102 {strides = array<i32>} : memref<288x512xbf16, #tpu.memory_space<vmem>>, vector<32x512xbf16>,
    %c511_i32_68 = arith.constant 511 : i32
    %104 = tpu.dynamic_rotate %73 by %c511_i32_68 dim 1 : vector<32x512xf32>, i32 -> vector<32x512xf32>
    %c5_69 = arith.constant 5 : index
    %c0_70 = arith.constant 0 : index
    %105 = vector.load %arg4[%c5_69, %c0_70] : memref<9x512xf32, #tpu.memory_space<vmem>>, vector<1x512xf32>
    %106 = vector.broadcast %105 : vector<1x512xf32> to vector<32x512xf32>
    %107 = arith.mulf %104, %106 : vector<32x512xf32>
    %108 = arith.truncf %107 : vector<32x512xf32> to vector<32x512xbf16>
    %c160 = arith.constant 160 : index
    %c0_71 = arith.constant 0 : index
    %109 = vector.load %arg20[%c160, %c0_71] : memref<288x512xbf16, #tpu.memory_space<vmem>>, vector<32x512xbf16>
    tpu.vector_store %arg20[%c160, %c0_71], %108 {strides = array<i32>} : memref<288x512xbf16, #tpu.memory_space<vmem>>, vector<32x512xbf16>,
    %c497_i32_72 = arith.constant 497 : i32
    %110 = tpu.dynamic_rotate %73 by %c497_i32_72 dim 1 : vector<32x512xf32>, i32 -> vector<32x512xf32>
    %c6_73 = arith.constant 6 : index
    %c0_74 = arith.constant 0 : index
    %111 = vector.load %arg4[%c6_73, %c0_74] : memref<9x512xf32, #tpu.memory_space<vmem>>, vector<1x512xf32>
    %112 = vector.broadcast %111 : vector<1x512xf32> to vector<32x512xf32>
    %113 = arith.mulf %110, %112 : vector<32x512xf32>
    %114 = arith.truncf %113 : vector<32x512xf32> to vector<32x512xbf16>
    %c192 = arith.constant 192 : index
    %c0_75 = arith.constant 0 : index
    %115 = vector.load %arg20[%c192, %c0_75] : memref<288x512xbf16, #tpu.memory_space<vmem>>, vector<32x512xbf16>
    tpu.vector_store %arg20[%c192, %c0_75], %114 {strides = array<i32>} : memref<288x512xbf16, #tpu.memory_space<vmem>>, vector<32x512xbf16>,
    %c496_i32_76 = arith.constant 496 : i32
    %116 = tpu.dynamic_rotate %73 by %c496_i32_76 dim 1 : vector<32x512xf32>, i32 -> vector<32x512xf32>
    %c7_77 = arith.constant 7 : index
    %c0_78 = arith.constant 0 : index
    %117 = vector.load %arg4[%c7_77, %c0_78] : memref<9x512xf32, #tpu.memory_space<vmem>>, vector<1x512xf32>
    %118 = vector.broadcast %117 : vector<1x512xf32> to vector<32x512xf32>
    %119 = arith.mulf %116, %118 : vector<32x512xf32>
    %120 = arith.truncf %119 : vector<32x512xf32> to vector<32x512xbf16>
    %c224 = arith.constant 224 : index
    %c0_79 = arith.constant 0 : index
    %121 = vector.load %arg20[%c224, %c0_79] : memref<288x512xbf16, #tpu.memory_space<vmem>>, vector<32x512xbf16>
    tpu.vector_store %arg20[%c224, %c0_79], %120 {strides = array<i32>} : memref<288x512xbf16, #tpu.memory_space<vmem>>, vector<32x512xbf16>,
    %c495_i32_80 = arith.constant 495 : i32
    %122 = tpu.dynamic_rotate %73 by %c495_i32_80 dim 1 : vector<32x512xf32>, i32 -> vector<32x512xf32>
    %c8_81 = arith.constant 8 : index
    %c0_82 = arith.constant 0 : index
    %123 = vector.load %arg4[%c8_81, %c0_82] : memref<9x512xf32, #tpu.memory_space<vmem>>, vector<1x512xf32>
    %124 = vector.broadcast %123 : vector<1x512xf32> to vector<32x512xf32>
    %125 = arith.mulf %122, %124 : vector<32x512xf32>
    %126 = arith.truncf %125 : vector<32x512xf32> to vector<32x512xbf16>
    %c256 = arith.constant 256 : index
    %c0_83 = arith.constant 0 : index
    %127 = vector.load %arg20[%c256, %c0_83] : memref<288x512xbf16, #tpu.memory_space<vmem>>, vector<32x512xbf16>
    tpu.vector_store %arg20[%c256, %c0_83], %126 {strides = array<i32>} : memref<288x512xbf16, #tpu.memory_space<vmem>>, vector<32x512xbf16>,
    %c0_84 = arith.constant 0 : index
    %c0_85 = arith.constant 0 : index
    %128 = vector.load %arg12[%c0_84, %c0_85] : memref<32x288xbf16, #tpu.memory_space<vmem>>, vector<32x288xbf16>
    %c0_86 = arith.constant 0 : index
    %c0_87 = arith.constant 0 : index
    %129 = vector.load %arg20[%c0_86, %c0_87] : memref<288x512xbf16, #tpu.memory_space<vmem>>, vector<288x512xbf16>
    %cst_88 = arith.constant dense<0.000000e+00> : vector<32x512xf32>
    %130 = tpu.matmul %128, %129, %cst_88 {dimension_numbers = #tpu.dot_dimension_numbers<[1], [0], [0], [1], [0, 0, 1, 1], [], []>} : vector<32x288xbf16>, vector<288x512xbf16>, vector<32x512xf32> -> vector<32x512xf32>
    %131 = arith.mulf %130, %74 : vector<32x512xf32>
    %132 = vector.broadcast %77 : f32 to vector<1x512xf32>
    %133 = arith.mulf %132, %76 : vector<1x512xf32>
    %134 = vector.broadcast %133 : vector<1x512xf32> to vector<32x512xf32>
    %135 = arith.addf %131, %134 : vector<32x512xf32>
    %136 = vector.broadcast %75 : vector<32x1xf32> to vector<32x512xf32>
    %137 = arith.addf %135, %136 : vector<32x512xf32>
    %cst_89 = arith.constant 0.000000e+00 : f32
    %138 = vector.broadcast %cst_89 : f32 to vector<32x512xf32>
    %139 = arith.cmpf ogt, %137, %138 : vector<32x512xf32>
    %cst_90 = arith.constant 2.000000e-01 : f32
    %140 = vector.broadcast %cst_90 : f32 to vector<32x512xf32>
    %141 = arith.mulf %140, %137 : vector<32x512xf32>
    %142 = arith.select %139, %137, %141 : vector<32x512xi1>, vector<32x512xf32>
    %c0_91 = arith.constant 0 : index
    %c0_92 = arith.constant 0 : index
    %143 = vector.load %arg18[%c0_91, %c0_92] : memref<32x512xf32, #tpu.memory_space<vmem>>, vector<32x512xf32>
    tpu.vector_store %arg18[%c0_91, %c0_92], %142 {strides = array<i32>} : memref<32x512xf32, #tpu.memory_space<vmem>>, vector<32x512xf32>,
    %c0_93 = arith.constant 0 : index
    %c0_94 = arith.constant 0 : index
    %144 = vector.load %arg14[%c0_93, %c0_94] : memref<3x32xbf16, #tpu.memory_space<vmem>>, vector<3x32xbf16>
    %c0_95 = arith.constant 0 : index
    %c0_96 = arith.constant 0 : index
    %145 = vector.load %arg9[%c0_95, %c0_96] : memref<32x512xf32, #tpu.memory_space<vmem>>, vector<32x512xf32>
    %146 = arith.mulf %142, %145 : vector<32x512xf32>
    %147 = arith.truncf %146 : vector<32x512xf32> to vector<32x512xbf16>
    %cst_97 = arith.constant dense<0.000000e+00> : vector<3x512xf32>
    %148 = tpu.matmul %144, %147, %cst_97 {dimension_numbers = #tpu.dot_dimension_numbers<[1], [0], [0], [1], [0, 0, 1, 1], [], []>} : vector<3x32xbf16>, vector<32x512xbf16>, vector<3x512xf32> -> vector<3x512xf32>
    %c0_98 = arith.constant 0 : index
    %c0_99 = arith.constant 0 : index
    %149 = vector.load %arg15[%c0_98, %c0_99] : memref<3x1xf32, #tpu.memory_space<vmem>>, vector<3x1xf32>
    %150 = vector.broadcast %149 : vector<3x1xf32> to vector<3x512xf32>
    %151 = arith.addf %148, %150 : vector<3x512xf32>
    %cst_100 = arith.constant 0.000000e+00 : f32
    %152 = vector.broadcast %cst_100 : f32 to vector<3x512xf32>
    %153 = arith.cmpf ogt, %151, %152 : vector<3x512xf32>
    %cst_101 = arith.constant 2.000000e-01 : f32
    %154 = vector.broadcast %cst_101 : f32 to vector<3x512xf32>
    %155 = arith.mulf %154, %151 : vector<3x512xf32>
    %156 = arith.select %153, %151, %155 : vector<3x512xi1>, vector<3x512xf32>
    %c0_102 = arith.constant 0 : index
    %c0_103 = arith.constant 0 : index
    %157 = vector.load %arg19[%c0_102, %c0_103] : memref<3x512xf32, #tpu.memory_space<vmem>>, vector<3x512xf32>
    tpu.vector_store %arg19[%c0_102, %c0_103], %156 {strides = array<i32>} : memref<3x512xf32, #tpu.memory_space<vmem>>, vector<3x512xf32>,
    return
  }
  func.func @transform_0(%arg0: i32) -> (i32, i32) {
    %c0_i32 = arith.constant 0 : i32
    %c0_i32_0 = arith.constant 0 : i32
    return %c0_i32, %arg0 : i32, i32
  }
  func.func @transform_1(%arg0: i32) -> (i32, i32) {
    %c0_i32 = arith.constant 0 : i32
    %c0_i32_0 = arith.constant 0 : i32
    return %c0_i32, %arg0 : i32, i32
  }
  func.func @transform_2(%arg0: i32) -> (i32, i32) {
    %c0_i32 = arith.constant 0 : i32
    %c0_i32_0 = arith.constant 0 : i32
    return %c0_i32, %arg0 : i32, i32
  }
  func.func @transform_3(%arg0: i32) -> (i32, i32) {
    %c0_i32 = arith.constant 0 : i32
    %c0_i32_0 = arith.constant 0 : i32
    %c0_i32_1 = arith.constant 0 : i32
    return %c0_i32, %c0_i32_0 : i32, i32
  }
  func.func @transform_4(%arg0: i32) -> (i32, i32) {
    %c0_i32 = arith.constant 0 : i32
    %c0_i32_0 = arith.constant 0 : i32
    return %c0_i32, %arg0 : i32, i32
  }
  func.func @transform_5(%arg0: i32) -> (i32, i32) {
    %c0_i32 = arith.constant 0 : i32
    %c0_i32_0 = arith.constant 0 : i32
    return %c0_i32, %arg0 : i32, i32
  }
  func.func @transform_6(%arg0: i32) -> (i32, i32) {
    %c0_i32 = arith.constant 0 : i32
    %c0_i32_0 = arith.constant 0 : i32
    return %c0_i32, %arg0 : i32, i32
  }
  func.func @transform_7(%arg0: i32) -> (i32, i32) {
    %c0_i32 = arith.constant 0 : i32
    %c0_i32_0 = arith.constant 0 : i32
    return %c0_i32, %arg0 : i32, i32
  }
  func.func @transform_8(%arg0: i32) -> (i32, i32) {
    %c0_i32 = arith.constant 0 : i32
    %c0_i32_0 = arith.constant 0 : i32
    return %c0_i32, %arg0 : i32, i32
  }
  func.func @transform_9(%arg0: i32) -> (i32, i32) {
    %c0_i32 = arith.constant 0 : i32
    %c0_i32_0 = arith.constant 0 : i32
    %c0_i32_1 = arith.constant 0 : i32
    return %c0_i32, %c0_i32_0 : i32, i32
  }
  func.func @transform_10(%arg0: i32) -> (i32, i32) {
    %c0_i32 = arith.constant 0 : i32
    %c0_i32_0 = arith.constant 0 : i32
    %c0_i32_1 = arith.constant 0 : i32
    return %c0_i32, %c0_i32_0 : i32, i32
  }
  func.func @transform_11(%arg0: i32) -> (i32, i32) {
    %c0_i32 = arith.constant 0 : i32
    %c0_i32_0 = arith.constant 0 : i32
    %c0_i32_1 = arith.constant 0 : i32
    return %c0_i32, %c0_i32_0 : i32, i32
  }
  func.func @transform_12(%arg0: i32) -> (i32, i32) {
    %c0_i32 = arith.constant 0 : i32
    %c0_i32_0 = arith.constant 0 : i32
    %c0_i32_1 = arith.constant 0 : i32
    return %c0_i32, %c0_i32_0 : i32, i32
  }
  func.func @transform_13(%arg0: i32) -> (i32, i32) {
    %c0_i32 = arith.constant 0 : i32
    %c0_i32_0 = arith.constant 0 : i32
    %c0_i32_1 = arith.constant 0 : i32
    return %c0_i32, %c0_i32_0 : i32, i32
  }
  func.func @transform_14(%arg0: i32) -> (i32, i32) {
    %c0_i32 = arith.constant 0 : i32
    %c0_i32_0 = arith.constant 0 : i32
    %c0_i32_1 = arith.constant 0 : i32
    return %c0_i32, %c0_i32_0 : i32, i32
  }
  func.func @transform_15(%arg0: i32) -> (i32, i32) {
    %c0_i32 = arith.constant 0 : i32
    %c0_i32_0 = arith.constant 0 : i32
    %c0_i32_1 = arith.constant 0 : i32
    return %c0_i32, %c0_i32_0 : i32, i32
  }
  func.func @transform_16(%arg0: i32) -> (i32, i32) {
    %c0_i32 = arith.constant 0 : i32
    %c0_i32_0 = arith.constant 0 : i32
    %c0_i32_1 = arith.constant 0 : i32
    return %c0_i32, %c0_i32_0 : i32, i32
  }
  func.func @transform_17(%arg0: i32) -> (i32, i32) {
    %c0_i32 = arith.constant 0 : i32
    %c0_i32_0 = arith.constant 0 : i32
    return %c0_i32, %arg0 : i32, i32
  }
  func.func @transform_18(%arg0: i32) -> (i32, i32) {
    %c0_i32 = arith.constant 0 : i32
    %c0_i32_0 = arith.constant 0 : i32
    return %c0_i32, %arg0 : i32, i32
  }
}

</mosaic_0001>

<bundles_post_ra>
// kernel: tpu_custom_call.1
= control target key start
LH: loop header
LB: loop body
LE: loop exit
PB: predicated region body
PF: predicated region fallthrough
CT: control target
= control target key end

     0   :  { %s5066_s0 = inlined_call_operand.vmem [shape: f32[16,512], index: 0, kind: input, shape index: {}]   ;;  %s5067_s1 = inlined_call_operand.hbm [shape: f32[1,512], index: 1, kind: input, shape index: {}]   ;;  %s5068_s2 = inlined_call_operand.hbm [shape: f32[1,512], index: 2, kind: input, shape index: {}]   ;;  %s5069_s3 = inlined_call_operand.hbm [shape: f32[9,512], index: 3, kind: input, shape index: {}]   ;;  %s5070_s4 = inlined_call_operand.hbm [shape: f32[16,512], index: 4, kind: input, shape index: {}]   ;;  %s5071_s5 = inlined_call_operand.hbm [shape: f32[32,512], index: 5, kind: input, shape index: {}]   ;;  %s5072_s6 = inlined_call_operand.hbm [shape: f32[32,512], index: 6, kind: input, shape index: {}]   ;;  %s5073_s7 = inlined_call_operand.hbm [shape: f32[32,512], index: 7, kind: input, shape index: {}]   ;;  %s5074_s8 = inlined_call_operand.hbm [shape: f32[32,512], index: 8, kind: input, shape index: {}]   ;;  %s5075_s9 = inlined_call_operand.hbm [shape: bf16[32,144], index: 9, kind: input, shape index: {}]   ;;  %s5076_s10 = inlined_call_operand.vmem [shape: f32[32,1], index: 10, kind: input, shape index: {}]   ;;  %s5077_s11 = inlined_call_operand.vmem [shape: bf16[32,288], index: 11, kind: input, shape index: {}]   ;;  %s5078_s12 = inlined_call_operand.vmem [shape: f32[32,1], index: 12, kind: input, shape index: {}]   ;;  %s5079_s13 = inlined_call_operand.vmem [shape: bf16[3,32], index: 13, kind: input, shape index: {}]   ;;  %s5080_s14 = inlined_call_operand.vmem [shape: f32[3,1], index: 14, kind: input, shape index: {}]   ;;  %s5081_s15 = inlined_call_operand.<no memory space> [shape: f32[1,1], index: 15, kind: input, shape index: {}]   ;;  %s5082_s16 = inlined_call_operand.<no memory space> [shape: f32[1,1], index: 16, kind: input, shape index: {}]   ;;  %s5083_s17 = inlined_call_operand.hbm [shape: f32[32,512], index: 17, kind: output, shape index: {0}]   ;;  %s5084_s18 = inlined_call_operand.hbm [shape: f32[3,512], index: 18, kind: output, shape index: {1}]  }
   0x1   :  { %5196 = sst [smem:[#allocation112_spill]] %s5066_s0 }
   0x2   :  { %5197 = sst [smem:[#allocation113_spill]] %s5067_s1 }
   0x3   :  { %5198 = sst [smem:[#allocation114_spill]] %s5068_s2 }
   0x4   :  { %26 = vsyncpa [#allocation6], 0 }
   0x5   :  { %27 = vsyncpa [#allocation9], 0 }
   0x6   :  { %28 = vsyncpa [#allocation12], 0 }
   0x7   :  { %29 = vsyncpa [#allocation15], 0 }
   0x8   :  { %30 = vsyncpa [#allocation18], 0 }
   0x9   :  { %31 = vsyncpa [#allocation7], 0 }
   0xa   :  { %32 = vsyncpa [#allocation22], 0  ;;  %s2949_s27 = smov [#allocation8]   ;;  %s5199_s0 = sld [smem:[#allocation114_spill]] }
   0xb   :  { %s51_s28 = sshll.u32 %s2949_s27, 4  ;;  %s52_s28 = int_to_ptr.vmem [resolvable:$true] %s51_s28 }
  0x10   :  { %s2693_s19 = scalar_lea.hbm %s5199_s0, 64 }
  0x11   :  { %p2694_p0 = scmp.ne.s32.totalorder %s5199_s0, %s2693_s19  ;;  %p2697_p1 = scmp.lt.u32.totalorder %s2693_s19, %s5199_s0 }
  0x13   :  { %p2699_p2 = pnand %p2697_p1, %p2694_p0 }
  0x15   :  { %2702 = shalt.err (!%p2699_p2)
}
  0x16   :  { %s2703_s2 = scalar_lea.vmem %s52_s28, 64  ;;  %p2708_p4 = scmp.lt.s32.totalorder %s52_s28, %s52_s28 }
  0x17   :  { %p2704_p3 = scmp.ne.s32.totalorder %s52_s28, %s2703_s2  ;;  %p2709_p5 = scmp.lt.s32.totalorder %s2703_s2, %s2703_s2 }
  0x19   :  { %p2710_p6 = por %p2709_p5, %p2708_p4 }
  0x1b   :  { %p2711_p7 = pnand %p2710_p6, %p2704_p3 }
  0x1d   :  { %2714 = shalt.err (!%p2711_p7)
}
  0x1e   :  { %54 = dma.hbm_to_vmem [thread:$0]  %s5199_s0, 64, %s52_s28, [#allocation9]  }
  0x1f   :  { %s2950_s25 = smov [#allocation11]   ;;  %s2951_s27 = smov [#allocation14]  }
  0x20   :  { %s72_s26 = sshll.u32 %s2950_s25, 4  ;;  %s96_s29 = sshll.u32 %s2951_s27, 4  ;;  %s73_s26 = int_to_ptr.vmem [resolvable:$true] %s72_s26  ;;  %s97_s29 = int_to_ptr.vmem [resolvable:$true] %s96_s29 }
  0x21   :  { %s2715_s1 = scalar_lea.hbm %s5070_s4, 1024 }
  0x22   :  { %p2716_p8 = scmp.ne.s32.totalorder %s5070_s4, %s2715_s1  ;;  %p2719_p9 = scmp.lt.u32.totalorder %s2715_s1, %s5070_s4 }
  0x24   :  { %p2721_p10 = pnand %p2719_p9, %p2716_p8 }
  0x26   :  { %2724 = shalt.err (!%p2721_p10)
}
  0x27   :  { %s2725_s28 = scalar_lea.vmem %s73_s26, 1024  ;;  %p2730_p12 = scmp.lt.s32.totalorder %s73_s26, %s73_s26 }
  0x28   :  { %p2726_p11 = scmp.ne.s32.totalorder %s73_s26, %s2725_s28  ;;  %p2731_p13 = scmp.lt.s32.totalorder %s2725_s28, %s2725_s28 }
  0x2a   :  { %p2732_p0 = por %p2731_p13, %p2730_p12 }
  0x2c   :  { %p2733_p1 = pnand %p2732_p0, %p2726_p11 }
  0x2e   :  { %2736 = shalt.err (!%p2733_p1)
}
  0x2f   :  { %s2952_s0 = smov 512   ;;  %s2953_s23 = smov 32  }
  0x30   :  { %78 = dma.hbm_to_vmem [thread:$0]  %s5070_s4, 1024, %s73_s26, [#allocation12], %s2952_s0, %s2952_s0, %s2953_s23  }
  0x31   :  { %s2737_s19 = scalar_lea.hbm %s5072_s6, 2048 }
  0x32   :  { %p2738_p2 = scmp.ne.s32.totalorder %s5072_s6, %s2737_s19  ;;  %p2741_p3 = scmp.lt.u32.totalorder %s2737_s19, %s5072_s6 }
  0x34   :  { %p2743_p4 = pnand %p2741_p3, %p2738_p2 }
  0x36   :  { %2746 = shalt.err (!%p2743_p4)
}
  0x37   :  { %s2747_s2 = scalar_lea.vmem %s97_s29, 2048  ;;  %p2752_p6 = scmp.lt.s32.totalorder %s97_s29, %s97_s29 }
  0x38   :  { %p2748_p5 = scmp.ne.s32.totalorder %s97_s29, %s2747_s2  ;;  %p2753_p7 = scmp.lt.s32.totalorder %s2747_s2, %s2747_s2 }
  0x3a   :  { %p2754_p8 = por %p2753_p7, %p2752_p6 }
  0x3c   :  { %p2755_p9 = pnand %p2754_p8, %p2748_p5 }
  0x3e   :  { %2758 = shalt.err (!%p2755_p9)
}
  0x3f   :  { %102 = dma.hbm_to_vmem [thread:$0]  %s5072_s6, 2048, %s97_s29, [#allocation15], %s2952_s0, %s2952_s0, %s2953_s23  }
  0x40   :  { %s2954_s28 = smov [#allocation17]   ;;  %s2955_s25 = smov [#allocation5]  }
  0x41   :  { %s120_s24 = sshll.u32 %s2954_s28, 4  ;;  %s41_s27 = sshll.u32 %s2955_s25, 4  ;;  %s121_s24 = int_to_ptr.vmem [resolvable:$true] %s120_s24  ;;  %s42_s27 = int_to_ptr.vmem [resolvable:$true] %s41_s27 }
  0x42   :  { %s2759_s1 = scalar_lea.hbm %s5074_s8, 2048 }
  0x43   :  { %p2760_p10 = scmp.ne.s32.totalorder %s5074_s8, %s2759_s1  ;;  %p2763_p11 = scmp.lt.u32.totalorder %s2759_s1, %s5074_s8 }
  0x45   :  { %p2765_p12 = pnand %p2763_p11, %p2760_p10 }
  0x47   :  { %2768 = shalt.err (!%p2765_p12)
}
  0x48   :  { %s2769_s6 = scalar_lea.vmem %s121_s24, 2048  ;;  %p2774_p0 = scmp.lt.s32.totalorder %s121_s24, %s121_s24 }
  0x49   :  { %p2770_p13 = scmp.ne.s32.totalorder %s121_s24, %s2769_s6  ;;  %p2775_p1 = scmp.lt.s32.totalorder %s2769_s6, %s2769_s6 }
  0x4b   :  { %p2776_p2 = por %p2775_p1, %p2774_p0 }
  0x4d   :  { %p2777_p3 = pnand %p2776_p2, %p2770_p13 }
  0x4f   :  { %2780 = shalt.err (!%p2777_p3)
}
  0x50   :  { %126 = dma.hbm_to_vmem [thread:$0]  %s5074_s8, 2048, %s121_s24, [#allocation18], %s2952_s0, %s2952_s0, %s2953_s23  }
  0x51   :  { %s5200_s25 = sld [smem:[#allocation113_spill]] }
  0x57   :  { %s2781_s30 = scalar_lea.hbm %s5200_s25, 64 }
  0x58   :  { %p2782_p4 = scmp.ne.s32.totalorder %s5200_s25, %s2781_s30  ;;  %p2785_p5 = scmp.lt.u32.totalorder %s2781_s30, %s5200_s25 }
  0x5a   :  { %p2787_p6 = pnand %p2785_p5, %p2782_p4 }
  0x5c   :  { %2790 = shalt.err (!%p2787_p6)
}
  0x5d   :  { %s2791_s22 = scalar_lea.vmem %s42_s27, 64  ;;  %p2796_p8 = scmp.lt.s32.totalorder %s42_s27, %s42_s27 }
  0x5e   :  { %p2792_p7 = scmp.ne.s32.totalorder %s42_s27, %s2791_s22  ;;  %p2797_p9 = scmp.lt.s32.totalorder %s2791_s22, %s2791_s22 }
  0x60   :  { %p2798_p10 = por %p2797_p9, %p2796_p8 }
  0x62   :  { %p2799_p11 = pnand %p2798_p10, %p2792_p7 }
  0x64   :  { %2802 = shalt.err (!%p2799_p11)
}
  0x65   :  { %44 = dma.hbm_to_vmem [thread:$0]  %s5200_s25, 64, %s42_s27, [#allocation6]  }
  0x66   :  { %s2956_s2 = smov [#allocation10]   ;;  %s2957_s29 = smov [#allocation13]  }
  0x67   :  { %s60_s6 = sshll.u32 %s2956_s2, 4  ;;  %s84_s4 = sshll.u32 %s2957_s29, 4  ;;  %s61_s6 = int_to_ptr.vmem [resolvable:$true] %s60_s6  ;;  %s85_s4 = int_to_ptr.vmem [resolvable:$true] %s84_s4 }
  0x68   :  { %s2803_s30 = scalar_lea.hbm %s5069_s3, 1024 }
  0x69   :  { %p2804_p12 = scmp.ne.s32.totalorder %s5069_s3, %s2803_s30  ;;  %p2807_p13 = scmp.lt.u32.totalorder %s2803_s30, %s5069_s3 }
  0x6b   :  { %p2809_p0 = pnand %p2807_p13, %p2804_p12 }
  0x6d   :  { %2812 = shalt.err (!%p2809_p0)
}
  0x6e   :  { %s2813_s27 = scalar_lea.vmem %s61_s6, 1024  ;;  %p2818_p2 = scmp.lt.s32.totalorder %s61_s6, %s61_s6 }
  0x6f   :  { %p2814_p1 = scmp.ne.s32.totalorder %s61_s6, %s2813_s27  ;;  %p2819_p3 = scmp.lt.s32.totalorder %s2813_s27, %s2813_s27 }
  0x71   :  { %p2820_p4 = por %p2819_p3, %p2818_p2 }
  0x73   :  { %p2821_p5 = pnand %p2820_p4, %p2814_p1 }
  0x75   :  { %2824 = shalt.err (!%p2821_p5)
}
  0x76   :  { %66 = dma.hbm_to_vmem [thread:$0]  %s5069_s3, 1024, %s61_s6, [#allocation9], %s2952_s0, %s2952_s0, %s2953_s23  }
  0x77   :  { %s2825_s2 = scalar_lea.hbm %s5071_s5, 2048 }
  0x78   :  { %p2826_p6 = scmp.ne.s32.totalorder %s5071_s5, %s2825_s2  ;;  %p2829_p7 = scmp.lt.u32.totalorder %s2825_s2, %s5071_s5 }
  0x7a   :  { %p2831_p8 = pnand %p2829_p7, %p2826_p6 }
  0x7c   :  { %2834 = shalt.err (!%p2831_p8)
}
  0x7d   :  { %s2835_s19 = scalar_lea.vmem %s85_s4, 2048  ;;  %p2840_p10 = scmp.lt.s32.totalorder %s85_s4, %s85_s4 }
  0x7e   :  { %p2836_p9 = scmp.ne.s32.totalorder %s85_s4, %s2835_s19  ;;  %p2841_p11 = scmp.lt.s32.totalorder %s2835_s19, %s2835_s19 }
  0x80   :  { %p2842_p12 = por %p2841_p11, %p2840_p10 }
  0x82   :  { %p2843_p13 = pnand %p2842_p12, %p2836_p9 }
  0x84   :  { %2846 = shalt.err (!%p2843_p13)
}
  0x85   :  { %90 = dma.hbm_to_vmem [thread:$0]  %s5071_s5, 2048, %s85_s4, [#allocation12], %s2952_s0, %s2952_s0, %s2953_s23  }
  0x86   :  { %s2958_s1 = smov [#allocation16]   ;;  %s2959_s21 = smov [#allocation19]  }
  0x87   :  { %s108_s20 = sshll.u32 %s2958_s1, 4  ;;  %s132_s27 = sshll.u32 %s2959_s21, 4  ;;  %s109_s20 = int_to_ptr.vmem [resolvable:$true] %s108_s20  ;;  %s133_s27 = int_to_ptr.vmem [resolvable:$true] %s132_s27 }
  0x88   :  { %s2847_s8 = scalar_lea.hbm %s5073_s7, 2048 }
  0x89   :  { %p2848_p0 = scmp.ne.s32.totalorder %s5073_s7, %s2847_s8  ;;  %p2851_p1 = scmp.lt.u32.totalorder %s2847_s8, %s5073_s7 }
  0x8b   :  { %p2853_p2 = pnand %p2851_p1, %p2848_p0 }
  0x8d   :  { %2856 = shalt.err (!%p2853_p2)
}
  0x8e   :  { %s2857_s5 = scalar_lea.vmem %s109_s20, 2048  ;;  %p2862_p4 = scmp.lt.s32.totalorder %s109_s20, %s109_s20 }
  0x8f   :  { %p2858_p3 = scmp.ne.s32.totalorder %s109_s20, %s2857_s5  ;;  %p2863_p5 = scmp.lt.s32.totalorder %s2857_s5, %s2857_s5 }
  0x91   :  { %p2864_p6 = por %p2863_p5, %p2862_p4 }
  0x93   :  { %p2865_p7 = pnand %p2864_p6, %p2858_p3 }
  0x95   :  { %2868 = shalt.err (!%p2865_p7)
}
  0x96   :  { %114 = dma.hbm_to_vmem [thread:$0]  %s5073_s7, 2048, %s109_s20, [#allocation15], %s2952_s0, %s2952_s0, %s2953_s23  }
  0x97   :  { %s2869_s3 = scalar_lea.hbm %s5075_s9, 512 }
  0x98   :  { %p2870_p8 = scmp.ne.s32.totalorder %s5075_s9, %s2869_s3  ;;  %p2873_p9 = scmp.lt.u32.totalorder %s2869_s3, %s5075_s9 }
  0x9a   :  { %p2875_p10 = pnand %p2873_p9, %p2870_p8 }
  0x9c   :  { %2878 = shalt.err (!%p2875_p10)
}
  0x9d   :  { %s2879_s22 = scalar_lea.vmem %s133_s27, 512  ;;  %p2884_p12 = scmp.lt.s32.totalorder %s133_s27, %s133_s27 }
  0x9e   :  { %p2880_p11 = scmp.ne.s32.totalorder %s133_s27, %s2879_s22  ;;  %p2885_p13 = scmp.lt.s32.totalorder %s2879_s22, %s2879_s22 }
  0xa0   :  { %p2886_p0 = por %p2885_p13, %p2884_p12 }
  0xa2   :  { %p2887_p1 = pnand %p2886_p0, %p2880_p11 }
  0xa4   :  { %2890 = shalt.err (!%p2887_p1)
}
  0xa5   :  { %s2960_s7 = smov 128   ;;  %s2961_s20 = smov 8  }
  0xa6   :  { %138 = dma.hbm_to_vmem [thread:$0]  %s5075_s9, 512, %s133_s27, [#allocation18], %s2960_s7, %s2960_s7, %s2961_s20  }
  0xa7   :  { %2935 = dma.done.wait [#allocation6], 64  }
  0xa8   :  { %2936 = vsyncadd [#allocation6], 4294967232 }
  0xa9   :  { %2937 = dma.done.wait [#allocation9], 1088  }
  0xaa   :  { %2938 = vsyncadd [#allocation9], 4294966208 }
  0xab   :  { %2939 = dma.done.wait [#allocation12], 3072  }
  0xac   :  { %2940 = vsyncadd [#allocation12], 4294964224 }
  0xad   :  { %2941 = dma.done.wait [#allocation15], 4096  }
  0xae   :  { %2942 = vsyncadd [#allocation15], 4294963200 }
  0xaf   :  { %2943 = dma.done.wait [#allocation18], 2560  }
  0xb0   :  { %2944 = vsyncadd [#allocation18], 4294964736  ;;  %s5201_s26 = sld [smem:[#allocation112_spill]]  ;;  %v190_v1 = vld [vmem:[#allocation11 + $0x8] sm:$0xff]  ;;  %v189_v4 = vld [vmem:[#allocation11] sm:$0xff]  ;;  %s2962_s19 = smov 17   ;;  %v243_v24 = vlaneseq }
  0xb1   :  { %v194_v6 = vld [vmem:[#allocation11 + $0x28] sm:$0xff]  ;;  %v193_v9 = vld [vmem:[#allocation11 + $0x20] sm:$0xff]  ;;  %v195_v13 = vld [vmem:[#allocation11 + $0x30] sm:$0xff]  ;;  %s2963_s8 = smov 16   ;;  %s2964_s24 = smov 15   ;;  %vm806_vm0 = vcmask 130048  }
  0xb2   :  { %v191_v15 = vld [vmem:[#allocation11 + $0x10] sm:$0xff]  ;;  %v196_v17 = vld [vmem:[#allocation11 + $0x38] sm:$0xff]  ;;  %s2965_s2 = smov 1   ;;  %s2966_s29 = smov 127   ;;  %v257_v25 = vshrl.u32 %v243_v24, 7  ;;  %v3346_v26 = vand.u32 127, %v243_v24 }
  0xb3   :  { %v192_v21 = vld [vmem:[#allocation11 + $0x18] sm:$0xff]  ;;  %s2968_s5 = smov 112   ;;  %s2969_s4 = smov 111   ;;  %v2681_v30 = vld [vmem:[#allocation19 + $0x4] ss:$8 sps:$4 sm:$0xff]  }
  0xb4   :  { %v3352_v27 = vsub.s32 1, %v257_v25  ;;  %v254_v29 = vld [vmem:[#allocation10] ss:$8 sm:$0xf]  ;;  %vm245_vm1 = vcmp.lt.s32.totalorder %v3346_v26, 17  ;;  %2621 = vmatprep.mubr.msk.bf16.mxu0 %vm806_vm0, %v2681_v30  ;;  %2623 = vmatprep.mubr.msk.bf16.mxu1 %vm806_vm0, %v2681_v30  ;;  %v3364_v36 = vsub.s32 2, %v257_v25 }
  0xb5   :  { %v3370_v38 = vsub.s32 0, %v257_v25  ;;  %v3372_v39 = vsub.s32 3, %v257_v25  ;;  %v318_v62 = vld [vmem:[#allocation10 + $0x1] ss:$8 sm:$0xf]  ;;  %vm308_vm2 = vcmp.lt.s32.totalorder %v3346_v26, 16 }
  0xb6   :  { %v182_v0 = vld [vmem:[%s5201_s26 + $0x8] sm:$0xff]  ;;  %v181_v2 = vld [vmem:[%s5201_s26] sm:$0xff]  ;;  %v187_v12 = vld [vmem:[%s5201_s26 + $0x30] sm:$0xff]  ;;  %5202 = vst [vmem:[#allocation30_spill] sm:$0xff] %v3352_v27  ;;  %v263_v32 = vrot.slane %v254_v29, %v3352_v27  ;;  %v267_v45 = vrot.slane %v254_v29, %v3364_v36  ;;  %v331_v25 = vrot.slane %v318_v62, %v3364_v36  ;;  %vm372_vm3 = vcmp.lt.s32.totalorder %v3346_v26, 15 }
  0xb7   :  { %v3200_v3 = vmul.f32 %v190_v1, %v182_v0  ;;  %v186_v5 = vld [vmem:[%s5201_s26 + $0x28] sm:$0xff]  ;;  %v3205_v7 = vmul.f32 %v189_v4, %v181_v2  ;;  %v185_v8 = vld [vmem:[%s5201_s26 + $0x20] sm:$0xff]  ;;  %v183_v14 = vld [vmem:[%s5201_s26 + $0x10] sm:$0xff]  ;;  %v3229_v18 = vmul.f32 %v195_v13, %v187_v12  ;;  %5203 = vst [vmem:[#allocation31_spill] sm:$0xff] %v3364_v36  ;;  %v259_v48 = vrot.slane %v254_v29, %v3370_v38 }
  0xb8   :  { %v3212_v10 = vmul.f32 %v194_v6, %v186_v5  ;;  %v3216_v11 = vmul.f32 %v193_v9, %v185_v8  ;;  %v188_v16 = vld [vmem:[%s5201_s26 + $0x38] sm:$0xff]  ;;  %v3233_v19 = vmul.f32 %v191_v15, %v183_v14  ;;  %5204 = vst [vmem:[#allocation32_spill] sm:$0xff] %v3370_v38  ;;  %5205 = vst [vmem:[#allocation33_spill] sm:$0xff] %v3372_v39  ;;  %v222_v63 = vld [vmem:[%s5076_s10 + $0x8] sm:$0xff]  ;;  %v5088_v2 = vmov 0  }
  0xb9   :  { %231 = vrot.lane.b32.xlu1 %v3200_v3, %s2962_s19  ;;  %227 = vrot.lane.b32.xlu0 %v3205_v7, %s2962_s19  ;;  %v184_v20 = vld [vmem:[%s5201_s26 + $0x18] sm:$0xff]  ;;  %v3240_v22 = vmul.f32 %v196_v17, %v188_v16  ;;  %s2967_s26 = smov 113   ;;  %v271_v49 = vrot.slane %v254_v29, %v3372_v39  ;;  %v221_v0 = vld [vmem:[%s5076_s10] sm:$0xff]  ;;  %v327_v9 = vrot.slane %v318_v62, %v3352_v27  ;;  %vm436_vm4 = vcmp.lt.s32.totalorder %v3346_v26, 1 }
  0xba   :  { %v3244_v23 = vmul.f32 %v192_v21, %v184_v20  ;;  %2678 = vset.pattern.permute.xlu1 %v5088_v2  ;;  %2677 = vset.pattern.permute.xlu0 %v5088_v2  ;;  %v223_v12 = vld [vmem:[%s5076_s10 + $0x10] sm:$0xff]  ;;  %v224_v13 = vld [vmem:[%s5076_s10 + $0x18] sm:$0xff]  ;;  %vm508_vm5 = vcmp.lt.s32.totalorder %v3346_v26, 127  ;;  %vm572_vm6 = vcmp.lt.s32.totalorder %v3346_v26, 113  ;;  %vm636_vm7 = vcmp.lt.s32.totalorder %v3346_v26, 112 }
  0xbb   :  { %vm700_vm8 = vcmp.lt.s32.totalorder %v3346_v26, 111  ;;  %v2691_v26 = vld [vmem:[%s5077_s11 + $0x8] ss:$12 sps:$4 sm:$0xff]  }
  0xbd   :  { %233 = vrot.lane.b32.xlu1 %v3212_v10, %s2962_s19  ;;  %229 = vrot.lane.b32.xlu0 %v3216_v11, %s2962_s19 }
  0xc1   :  { %237 = vrot.lane.b32.xlu1 %v3229_v18, %s2962_s19  ;;  %235 = vrot.lane.b32.xlu0 %v3233_v19, %s2962_s19 }
  0xc5   :  { %241 = vrot.lane.b32.xlu1 %v3240_v22, %s2962_s19  ;;  %239 = vrot.lane.b32.xlu0 %v3244_v23, %s2962_s19 }
  0xc9   :  { %294 = vrot.lane.b32.xlu1 %v3216_v11, %s2963_s8  ;;  %292 = vrot.lane.b32.xlu0 %v3205_v7, %s2963_s8 }
  0xcd   :  { %298 = vrot.lane.b32.xlu1 %v3212_v10, %s2963_s8  ;;  %296 = vrot.lane.b32.xlu0 %v3200_v3, %s2963_s8 }
  0xd1   :  { %302 = vrot.lane.b32.xlu1 %v3229_v18, %s2963_s8  ;;  %300 = vrot.lane.b32.xlu0 %v3233_v19, %s2963_s8 }
  0xd5   :  { %306 = vrot.lane.b32.xlu1 %v3240_v22, %s2963_s8  ;;  %304 = vrot.lane.b32.xlu0 %v3244_v23, %s2963_s8 }
  0xd9   :  { %358 = vrot.lane.b32.xlu1 %v3216_v11, %s2964_s24  ;;  %356 = vrot.lane.b32.xlu0 %v3205_v7, %s2964_s24 }
  0xdd   :  { %362 = vrot.lane.b32.xlu1 %v3212_v10, %s2964_s24  ;;  %360 = vrot.lane.b32.xlu0 %v3200_v3, %s2964_s24 }
  0xe1   :  { %366 = vrot.lane.b32.xlu1 %v3229_v18, %s2964_s24  ;;  %364 = vrot.lane.b32.xlu0 %v3233_v19, %s2964_s24 }
  0xe5   :  { %370 = vrot.lane.b32.xlu1 %v3240_v22, %s2964_s24  ;;  %368 = vrot.lane.b32.xlu0 %v3244_v23, %s2964_s24 }
  0xe9   :  { %422 = vrot.lane.b32.xlu1 %v3216_v11, %s2965_s2  ;;  %420 = vrot.lane.b32.xlu0 %v3205_v7, %s2965_s2 }
  0xed   :  { %426 = vrot.lane.b32.xlu1 %v3212_v10, %s2965_s2  ;;  %424 = vrot.lane.b32.xlu0 %v3200_v3, %s2965_s2 }
  0xf1   :  { %430 = vrot.lane.b32.xlu1 %v3229_v18, %s2965_s2  ;;  %428 = vrot.lane.b32.xlu0 %v3233_v19, %s2965_s2 }
  0xf5   :  { %434 = vrot.lane.b32.xlu1 %v3240_v22, %s2965_s2  ;;  %432 = vrot.lane.b32.xlu0 %v3244_v23, %s2965_s2 }
  0xf9   :  { %494 = vrot.lane.b32.xlu1 %v3216_v11, %s2966_s29  ;;  %492 = vrot.lane.b32.xlu0 %v3205_v7, %s2966_s29 }
  0xfd   :  { %498 = vrot.lane.b32.xlu1 %v3212_v10, %s2966_s29  ;;  %496 = vrot.lane.b32.xlu0 %v3200_v3, %s2966_s29 }
 0x101   :  { %502 = vrot.lane.b32.xlu1 %v3229_v18, %s2966_s29  ;;  %500 = vrot.lane.b32.xlu0 %v3233_v19, %s2966_s29 }
 0x105   :  { %506 = vrot.lane.b32.xlu1 %v3240_v22, %s2966_s29  ;;  %504 = vrot.lane.b32.xlu0 %v3244_v23, %s2966_s29 }
 0x109   :  { %558 = vrot.lane.b32.xlu1 %v3216_v11, %s2967_s26  ;;  %556 = vrot.lane.b32.xlu0 %v3205_v7, %s2967_s26 }
 0x10d   :  { %562 = vrot.lane.b32.xlu1 %v3212_v10, %s2967_s26  ;;  %560 = vrot.lane.b32.xlu0 %v3200_v3, %s2967_s26 }
 0x111   :  { %566 = vrot.lane.b32.xlu1 %v3229_v18, %s2967_s26  ;;  %564 = vrot.lane.b32.xlu0 %v3233_v19, %s2967_s26 }
 0x115   :  { %570 = vrot.lane.b32.xlu1 %v3240_v22, %s2967_s26  ;;  %568 = vrot.lane.b32.xlu0 %v3244_v23, %s2967_s26 }
 0x119   :  { %622 = vrot.lane.b32.xlu1 %v3216_v11, %s2968_s5  ;;  %620 = vrot.lane.b32.xlu0 %v3205_v7, %s2968_s5 }
 0x11d   :  { %626 = vrot.lane.b32.xlu1 %v3212_v10, %s2968_s5  ;;  %624 = vrot.lane.b32.xlu0 %v3200_v3, %s2968_s5 }
 0x121   :  { %630 = vrot.lane.b32.xlu1 %v3229_v18, %s2968_s5  ;;  %628 = vrot.lane.b32.xlu0 %v3233_v19, %s2968_s5 }
 0x125   :  { %634 = vrot.lane.b32.xlu1 %v3240_v22, %s2968_s5  ;;  %632 = vrot.lane.b32.xlu0 %v3244_v23, %s2968_s5 }
 0x129   :  { %686 = vrot.lane.b32.xlu1 %v3216_v11, %s2969_s4  ;;  %684 = vrot.lane.b32.xlu0 %v3205_v7, %s2969_s4 }
 0x12b   :  { %v232_v28 = vpop.permute.xlu1 %231  ;;  %v228_v31 = vpop.permute.xlu0 %227 }
 0x12c   :  { %v250_v34 = vsel %vm245_vm1, %v228_v31, %v232_v28 }
 0x12d   :  { %690 = vrot.lane.b32.xlu1 %v3212_v10, %s2969_s4  ;;  %688 = vrot.lane.b32.xlu0 %v3200_v3, %s2969_s4  ;;  %v277_v40 = vmul.f32 %v263_v32, %v250_v34 }
 0x12f   :  { %v234_v33 = vpop.permute.xlu1 %233  ;;  %v230_v35 = vpop.permute.xlu0 %229 }
 0x130   :  { %v251_v37 = vsel %vm245_vm1, %v230_v35, %v234_v33 }
 0x131   :  { %694 = vrot.lane.b32.xlu1 %v3229_v18, %s2969_s4  ;;  %692 = vrot.lane.b32.xlu0 %v3233_v19, %s2969_s4  ;;  %v281_v41 = vmul.f32 %v263_v32, %v251_v37  ;;  %v323_v32 = vrot.slane %v318_v62, %v3370_v38 }
 0x133   :  { %v238_v42 = vpop.permute.xlu1 %237  ;;  %v236_v43 = vpop.permute.xlu0 %235  ;;  %v285_v44 = vpack.c.bf16 %v281_v41, %v277_v40 }
 0x134   :  { %v249_v46 = vsel %vm245_vm1, %v234_v33, %v238_v42  ;;  %v248_v47 = vsel %vm245_vm1, %v232_v28, %v236_v43  ;;  %v335_v33 = vrot.slane %v318_v62, %v3372_v39 }
 0x135   :  { %698 = vrot.lane.b32.xlu1 %v3240_v22, %s2969_s4  ;;  %696 = vrot.lane.b32.xlu0 %v3244_v23, %s2969_s4  ;;  %v278_v54 = vmul.f32 %v267_v45, %v248_v47  ;;  %v282_v55 = vmul.f32 %v267_v45, %v249_v46 }
 0x136   :  { %813 = vmatprep.subr.bf16.mxu0 %v285_v44 }
 0x137   :  { %v242_v50 = vpop.permute.xlu1 %241  ;;  %v240_v52 = vpop.permute.xlu0 %239  ;;  %v286_v8 = vpack.c.bf16 %v282_v55, %v278_v54 }
 0x138   :  { %v253_v51 = vsel %vm245_vm1, %v242_v50, %v230_v35  ;;  %v247_v53 = vsel %vm245_vm1, %v238_v42, %v242_v50  ;;  %v252_v56 = vsel %vm245_vm1, %v240_v52, %v228_v31  ;;  %v246_v58 = vsel %vm245_vm1, %v236_v43, %v240_v52 }
 0x139   :  { %v280_v57 = vmul.f32 %v259_v48, %v253_v51  ;;  %v283_v59 = vmul.f32 %v271_v49, %v247_v53  ;;  %v276_v60 = vmul.f32 %v259_v48, %v252_v56  ;;  %v279_v61 = vmul.f32 %v271_v49, %v246_v58  ;;  %981 = vperm.xlu1 %2678, %v222_v63   ;;  %v382_v49 = vld [vmem:[#allocation10 + $0x2] ss:$8 sm:$0xf] }
 0x13a   :  { %976 = vperm.xlu0 %2677, %v221_v0   ;;  %v391_v55 = vrot.slane %v382_v49, %v3352_v27  ;;  %v395_v63 = vrot.slane %v382_v49, %v3364_v36 }
 0x13b   :  { %v295_v1 = vpop.permute.xlu1 %294  ;;  %v293_v4 = vpop.permute.xlu0 %292  ;;  %v284_v5 = vpack.c.bf16 %v280_v57, %v276_v60  ;;  %v287_v6 = vpack.c.bf16 %v283_v59, %v279_v61 }
 0x13d   :  { %814 = vmatpush1.bf16.msra.mxu0 %v284_v5  ;;  %866 = vmatprep.subr.bf16.mxu1 %v287_v6  ;;  %v387_v6 = vrot.slane %v382_v49, %v3370_v38 }
 0x13e   :  { %867 = vmatpush1.bf16.msra.mxu1 %v286_v8  ;;  %986 = vperm.xlu1 %2678, %v223_v12   ;;  %v399_v8 = vrot.slane %v382_v49, %v3372_v39 }
 0x13f   :  { %v299_v14 = vpop.permute.xlu1 %298  ;;  %v297_v16 = vpop.permute.xlu0 %296  ;;  %991 = vperm.xlu0 %2677, %v224_v13  }
 0x140   :  { %v314_v15 = vsel %vm308_vm2, %v295_v1, %v299_v14  ;;  %v313_v20 = vsel %vm308_vm2, %v293_v4, %v297_v16 }
 0x141   :  { %v345_v17 = vmul.f32 %v327_v9, %v314_v15  ;;  %v341_v21 = vmul.f32 %v327_v9, %v313_v20 }
 0x143   :  { %v303_v24 = vpop.permute.xlu1 %302  ;;  %v301_v28 = vpop.permute.xlu0 %300  ;;  %v349_v29 = vpack.c.bf16 %v345_v17, %v341_v21 }
 0x144   :  { %v312_v30 = vsel %vm308_vm2, %v299_v14, %v303_v24  ;;  %v311_v31 = vsel %vm308_vm2, %v297_v16, %v301_v28 }
 0x145   :  { %815 = vmatprep.subr.bf16.mxu0 %v349_v29  ;;  %v346_v35 = vmul.f32 %v331_v25, %v312_v30  ;;  %v342_v37 = vmul.f32 %v331_v25, %v311_v31  ;;  %v446_v29 = vld [vmem:[#allocation10 + $0x3] ss:$8 sm:$0xf] }
 0x147   :  { %v307_v34 = vpop.permute.xlu1 %306  ;;  %v305_v42 = vpop.permute.xlu0 %304  ;;  %v350_v54 = vpack.c.bf16 %v346_v35, %v342_v37  ;;  %v455_v35 = vrot.slane %v446_v29, %v3352_v27 }
 0x148   :  { %v310_v40 = vsel %vm308_vm2, %v303_v24, %v307_v34  ;;  %v316_v41 = vsel %vm308_vm2, %v307_v34, %v295_v1  ;;  %v309_v45 = vsel %vm308_vm2, %v301_v28, %v305_v42  ;;  %v315_v46 = vsel %vm308_vm2, %v305_v42, %v293_v4 }
 0x149   :  { %v344_v43 = vmul.f32 %v323_v32, %v316_v41  ;;  %v347_v44 = vmul.f32 %v335_v33, %v310_v40  ;;  %v340_v47 = vmul.f32 %v323_v32, %v315_v46  ;;  %v343_v48 = vmul.f32 %v335_v33, %v309_v45 }
 0x14a   :  { %v459_v46 = vrot.slane %v446_v29, %v3364_v36 }
 0x14b   :  { %v359_v50 = vpop.permute.xlu1 %358  ;;  %v357_v51 = vpop.permute.xlu0 %356  ;;  %v348_v52 = vpack.c.bf16 %v344_v43, %v340_v47  ;;  %v351_v53 = vpack.c.bf16 %v347_v44, %v343_v48 }
 0x14d   :  { %816 = vmatpush1.bf16.msra.mxu0 %v348_v52  ;;  %868 = vmatprep.subr.bf16.mxu1 %v351_v53  ;;  %v463_v52 = vrot.slane %v446_v29, %v3372_v39 }
 0x14e   :  { %869 = vmatpush1.bf16.msra.mxu1 %v350_v54 }
 0x14f   :  { %v363_v56 = vpop.permute.xlu1 %362  ;;  %v361_v58 = vpop.permute.xlu0 %360 }
 0x150   :  { %v378_v57 = vsel %vm372_vm3, %v359_v50, %v363_v56  ;;  %v377_v60 = vsel %vm372_vm3, %v357_v51, %v361_v58 }
 0x151   :  { %v409_v59 = vmul.f32 %v391_v55, %v378_v57  ;;  %v405_v61 = vmul.f32 %v391_v55, %v377_v60 }
 0x153   :  { %v367_v62 = vpop.permute.xlu1 %366  ;;  %v365_v0 = vpop.permute.xlu0 %364  ;;  %v413_v1 = vpack.c.bf16 %v409_v59, %v405_v61 }
 0x154   :  { %v376_v4 = vsel %vm372_vm3, %v363_v56, %v367_v62  ;;  %v375_v5 = vsel %vm372_vm3, %v361_v58, %v365_v0 }
 0x155   :  { %817 = vmatprep.subr.bf16.mxu0 %v413_v1  ;;  %v410_v12 = vmul.f32 %v395_v63, %v376_v4  ;;  %v406_v13 = vmul.f32 %v395_v63, %v375_v5  ;;  %v485_v4 = vpack.c.bf16 %v3212_v10, %v3200_v3  ;;  %v486_v3 = vpack.c.bf16 %v3229_v18, %v3233_v19 }
 0x157   :  { %v371_v9 = vpop.permute.xlu1 %370  ;;  %v369_v16 = vpop.permute.xlu0 %368  ;;  %v414_v34 = vpack.c.bf16 %v410_v12, %v406_v13  ;;  %v518_v13 = vld [vmem:[#allocation10 + $0x5] ss:$8 sm:$0xf] }
 0x158   :  { %v374_v14 = vsel %vm372_vm3, %v367_v62, %v371_v9  ;;  %v380_v15 = vsel %vm372_vm3, %v371_v9, %v359_v50  ;;  %v373_v21 = vsel %vm372_vm3, %v365_v0, %v369_v16  ;;  %v379_v24 = vsel %vm372_vm3, %v369_v16, %v357_v51 }
 0x159   :  { %v408_v17 = vmul.f32 %v387_v6, %v380_v15  ;;  %v411_v20 = vmul.f32 %v399_v8, %v374_v14  ;;  %v404_v25 = vmul.f32 %v387_v6, %v379_v24  ;;  %v407_v28 = vmul.f32 %v399_v8, %v373_v21 }
 0x15a   :  { %v451_v51 = vrot.slane %v446_v29, %v3370_v38  ;;  %v487_v9 = vpack.c.bf16 %v3240_v22, %v3244_v23  ;;  %v484_v14 = vpack.c.bf16 %v3216_v11, %v3205_v7  ;;  %v523_v10 = vrot.slane %v518_v13, %v3370_v38 }
 0x15b   :  { %v423_v30 = vpop.permute.xlu1 %422  ;;  %v421_v31 = vpop.permute.xlu0 %420  ;;  %v412_v32 = vpack.c.bf16 %v408_v17, %v404_v25  ;;  %v415_v33 = vpack.c.bf16 %v411_v20, %v407_v28  ;;  %v527_v17 = vrot.slane %v518_v13, %v3352_v27  ;;  %v531_v25 = vrot.slane %v518_v13, %v3364_v36 }
 0x15c   :  { %v535_v28 = vrot.slane %v518_v13, %v3372_v39 }
 0x15d   :  { %818 = vmatpush1.bf16.msra.mxu0 %v412_v32  ;;  %870 = vmatprep.subr.bf16.mxu1 %v415_v33 }
 0x15e   :  { %871 = vmatpush1.bf16.msra.mxu1 %v414_v34 }
 0x15f   :  { %v427_v37 = vpop.permute.xlu1 %426  ;;  %v425_v41 = vpop.permute.xlu0 %424 }
 0x160   :  { %v442_v40 = vsel %vm436_vm4, %v423_v30, %v427_v37  ;;  %v441_v43 = vsel %vm436_vm4, %v421_v31, %v425_v41 }
 0x161   :  { %v473_v42 = vmul.f32 %v455_v35, %v442_v40  ;;  %v469_v44 = vmul.f32 %v455_v35, %v441_v43 }
 0x163   :  { %v431_v45 = vpop.permute.xlu1 %430  ;;  %v429_v47 = vpop.permute.xlu0 %428  ;;  %v477_v48 = vpack.c.bf16 %v473_v42, %v469_v44 }
 0x164   :  { %v440_v49 = vsel %vm436_vm4, %v427_v37, %v431_v45  ;;  %v439_v50 = vsel %vm436_vm4, %v425_v41, %v429_v47 }
 0x165   :  { %819 = vmatprep.subr.bf16.mxu0 %v477_v48  ;;  %v474_v54 = vmul.f32 %v459_v46, %v440_v49  ;;  %v470_v55 = vmul.f32 %v459_v46, %v439_v50  ;;  %v582_v49 = vld [vmem:[#allocation10 + $0x6] ss:$8 sm:$0xf] }
 0x167   :  { %v435_v53 = vpop.permute.xlu1 %434  ;;  %v433_v58 = vpop.permute.xlu0 %432  ;;  %v478_v12 = vpack.c.bf16 %v474_v54, %v470_v55  ;;  %v591_v55 = vrot.slane %v582_v49, %v3352_v27 }
 0x168   :  { %v438_v56 = vsel %vm436_vm4, %v431_v45, %v435_v53  ;;  %v444_v57 = vsel %vm436_vm4, %v435_v53, %v423_v30  ;;  %v437_v61 = vsel %vm436_vm4, %v429_v47, %v433_v58  ;;  %v443_v62 = vsel %vm436_vm4, %v433_v58, %v421_v31 }
 0x169   :  { %v472_v59 = vmul.f32 %v451_v51, %v444_v57  ;;  %v475_v60 = vmul.f32 %v463_v52, %v438_v56  ;;  %v468_v63 = vmul.f32 %v451_v51, %v443_v62  ;;  %v471_v0 = vmul.f32 %v463_v52, %v437_v61 }
 0x16a   :  { %v587_v51 = vrot.slane %v582_v49, %v3370_v38 }
 0x16b   :  { %v495_v1 = vpop.permute.xlu1 %494  ;;  %v493_v5 = vpop.permute.xlu0 %492  ;;  %v476_v6 = vpack.c.bf16 %v472_v59, %v468_v63  ;;  %v479_v8 = vpack.c.bf16 %v475_v60, %v471_v0  ;;  %v595_v63 = vrot.slane %v582_v49, %v3364_v36  ;;  %v599_v0 = vrot.slane %v582_v49, %v3372_v39 }
 0x16d   :  { %820 = vmatpush1.bf16.msra.mxu0 %v476_v6  ;;  %872 = vmatprep.subr.bf16.mxu1 %v479_v8 }
 0x16e   :  { %873 = vmatpush1.bf16.msra.mxu1 %v478_v12  ;;  %821 = vmatprep.subr.bf16.mxu0 %v485_v4 }
 0x16f   :  { %v499_v15 = vpop.permute.xlu1 %498  ;;  %v497_v16 = vpop.permute.xlu0 %496  ;;  %874 = vmatprep.subr.bf16.mxu1 %v487_v9 }
 0x170   :  { %v514_v22 = vsel %vm508_vm5, %v495_v1, %v499_v15  ;;  %v513_v23 = vsel %vm508_vm5, %v493_v5, %v497_v16 }
 0x171   :  { %822 = vmatpush1.bf16.msra.mxu0 %v484_v14  ;;  %v544_v11 = vmul.f32 %v523_v10, %v514_v22  ;;  %v540_v20 = vmul.f32 %v523_v10, %v513_v23 }
 0x172   :  { %875 = vmatpush1.bf16.msra.mxu1 %v486_v3 }
 0x173   :  { %v503_v7 = vpop.permute.xlu1 %502  ;;  %v501_v19 = vpop.permute.xlu0 %500  ;;  %v548_v35 = vpack.c.bf16 %v544_v11, %v540_v20  ;;  %v646_v11 = vld [vmem:[#allocation10 + $0x7] ss:$8 sm:$0xf] }
 0x174   :  { %v512_v18 = vsel %vm508_vm5, %v499_v15, %v503_v7  ;;  %v511_v24 = vsel %vm508_vm5, %v497_v16, %v501_v19 }
 0x175   :  { %v545_v21 = vmul.f32 %v527_v17, %v512_v18  ;;  %v541_v29 = vmul.f32 %v527_v17, %v511_v24  ;;  %v651_v18 = vrot.slane %v646_v11, %v3370_v38 }
 0x177   :  { %v507_v30 = vpop.permute.xlu1 %506  ;;  %v505_v33 = vpop.permute.xlu0 %504  ;;  %v549_v34 = vpack.c.bf16 %v545_v21, %v541_v29 }
 0x178   :  { %v510_v31 = vsel %vm508_vm5, %v503_v7, %v507_v30  ;;  %v516_v32 = vsel %vm508_vm5, %v507_v30, %v495_v1  ;;  %v509_v41 = vsel %vm508_vm5, %v501_v19, %v505_v33  ;;  %v515_v42 = vsel %vm508_vm5, %v505_v33, %v493_v5 }
 0x179   :  { %v546_v37 = vmul.f32 %v531_v25, %v510_v31  ;;  %v547_v40 = vmul.f32 %v535_v28, %v516_v32  ;;  %v542_v43 = vmul.f32 %v531_v25, %v509_v41  ;;  %v543_v44 = vmul.f32 %v535_v28, %v515_v42  ;;  %823 = vmatprep.subr.bf16.mxu0 %v549_v34 }
 0x17a   :  { %824 = vmatpush1.bf16.msra.mxu0 %v548_v35  ;;  %v655_v25 = vrot.slane %v646_v11, %v3352_v27  ;;  %v659_v35 = vrot.slane %v646_v11, %v3364_v36 }
 0x17b   :  { %v559_v45 = vpop.permute.xlu1 %558  ;;  %v557_v46 = vpop.permute.xlu0 %556  ;;  %v551_v47 = vpack.c.bf16 %v547_v40, %v543_v44  ;;  %v550_v48 = vpack.c.bf16 %v546_v37, %v542_v43  ;;  %v663_v37 = vrot.slane %v646_v11, %v3372_v39 }
 0x17d   :  { %876 = vmatprep.subr.bf16.mxu1 %v551_v47 }
 0x17e   :  { %877 = vmatpush1.bf16.msra.mxu1 %v550_v48 }
 0x17f   :  { %v563_v50 = vpop.permute.xlu1 %562  ;;  %v561_v52 = vpop.permute.xlu0 %560 }
 0x180   :  { %v578_v53 = vsel %vm572_vm6, %v559_v45, %v563_v50  ;;  %v577_v54 = vsel %vm572_vm6, %v557_v46, %v561_v52 }
 0x181   :  { %v608_v57 = vmul.f32 %v587_v51, %v578_v53  ;;  %v604_v58 = vmul.f32 %v587_v51, %v577_v54 }
 0x183   :  { %v567_v56 = vpop.permute.xlu1 %566  ;;  %v565_v60 = vpop.permute.xlu0 %564  ;;  %v612_v12 = vpack.c.bf16 %v608_v57, %v604_v58  ;;  %v710_v57 = vld [vmem:[#allocation10 + $0x20] ss:$8 sm:$0xf] }
 0x184   :  { %v576_v59 = vsel %vm572_vm6, %v563_v50, %v567_v56  ;;  %v575_v62 = vsel %vm572_vm6, %v561_v52, %v565_v60 }
 0x185   :  { %v609_v61 = vmul.f32 %v591_v55, %v576_v59  ;;  %v605_v1 = vmul.f32 %v591_v55, %v575_v62  ;;  %v715_v59 = vrot.slane %v710_v57, %v3370_v38 }
 0x187   :  { %v571_v4 = vpop.permute.xlu1 %570  ;;  %v569_v8 = vpop.permute.xlu0 %568  ;;  %v613_v9 = vpack.c.bf16 %v609_v61, %v605_v1 }
 0x188   :  { %v574_v5 = vsel %vm572_vm6, %v567_v56, %v571_v4  ;;  %v580_v6 = vsel %vm572_vm6, %v571_v4, %v559_v45  ;;  %v573_v15 = vsel %vm572_vm6, %v565_v60, %v569_v8  ;;  %v579_v3 = vsel %vm572_vm6, %v569_v8, %v557_v46 }
 0x189   :  { %v610_v13 = vmul.f32 %v595_v63, %v574_v5  ;;  %v611_v14 = vmul.f32 %v599_v0, %v580_v6  ;;  %v606_v10 = vmul.f32 %v595_v63, %v573_v15  ;;  %v607_v16 = vmul.f32 %v599_v0, %v579_v3  ;;  %825 = vmatprep.subr.bf16.mxu0 %v613_v9 }
 0x18a   :  { %826 = vmatpush1.bf16.msra.mxu0 %v612_v12  ;;  %v719_v63 = vrot.slane %v710_v57, %v3352_v27  ;;  %v723_v12 = vrot.slane %v710_v57, %v3364_v36 }
 0x18b   :  { %v623_v22 = vpop.permute.xlu1 %622  ;;  %v621_v23 = vpop.permute.xlu0 %620  ;;  %v615_v17 = vpack.c.bf16 %v611_v14, %v607_v16  ;;  %v614_v7 = vpack.c.bf16 %v610_v13, %v606_v10  ;;  %v727_v13 = vrot.slane %v710_v57, %v3372_v39 }
 0x18d   :  { %878 = vmatprep.subr.bf16.mxu1 %v615_v17 }
 0x18e   :  { %879 = vmatpush1.bf16.msra.mxu1 %v614_v7 }
 0x18f   :  { %v627_v20 = vpop.permute.xlu1 %626  ;;  %v625_v19 = vpop.permute.xlu0 %624 }
 0x190   :  { %v642_v21 = vsel %vm636_vm7, %v623_v22, %v627_v20  ;;  %v641_v24 = vsel %vm636_vm7, %v621_v23, %v625_v19 }
 0x191   :  { %v672_v29 = vmul.f32 %v651_v18, %v642_v21  ;;  %v668_v30 = vmul.f32 %v651_v18, %v641_v24  ;;  %v2679_v21 = vld [vmem:[#allocation19] ss:$8 sps:$4 sm:$0xff]   ;;  %v2682_v24 = vld [vmem:[#allocation19 + $0x14] ss:$8 sps:$4 sm:$0xff]  }
 0x193   :  { %v631_v28 = vpop.permute.xlu1 %630  ;;  %v629_v32 = vpop.permute.xlu0 %628  ;;  %v676_v46 = vpack.c.bf16 %v672_v29, %v668_v30  ;;  %v2684_v29 = vld [vmem:[#allocation19 + $0x10] ss:$8 sps:$4 sm:$0xff]  }
 0x194   :  { %v640_v31 = vsel %vm636_vm7, %v627_v20, %v631_v28  ;;  %v639_v34 = vsel %vm636_vm7, %v625_v19, %v629_v32  ;;  %v225_v30 = vld [vmem:[#allocation5] sm:$0xf] }
 0x195   :  { %v673_v33 = vmul.f32 %v655_v25, %v640_v31  ;;  %v669_v40 = vmul.f32 %v655_v25, %v639_v34  ;;  %v935_v31 = vstv %s5081_s15  ;;  %s2971_s15 = smov [#allocation20]  }
 0x197   :  { %v635_v41 = vpop.permute.xlu1 %634  ;;  %v633_v44 = vpop.permute.xlu0 %632  ;;  %v677_v45 = vpack.c.bf16 %v673_v33, %v669_v40  ;;  %v205_v33 = vld [vmem:[#allocation13] sm:$0xff] }
 0x198   :  { %v638_v42 = vsel %vm636_vm7, %v631_v28, %v635_v41  ;;  %v644_v43 = vsel %vm636_vm7, %v635_v41, %v623_v22  ;;  %v637_v49 = vsel %vm636_vm7, %v629_v32, %v633_v44  ;;  %v643_v50 = vsel %vm636_vm7, %v633_v44, %v621_v23 }
 0x199   :  { %v674_v47 = vmul.f32 %v659_v35, %v638_v42  ;;  %v675_v48 = vmul.f32 %v663_v37, %v644_v43  ;;  %v670_v51 = vmul.f32 %v659_v35, %v637_v49  ;;  %v671_v52 = vmul.f32 %v663_v37, %v643_v50  ;;  %827 = vmatprep.subr.bf16.mxu0 %v677_v45  ;;  %v209_v37 = vld [vmem:[#allocation13 + $0x20] sm:$0xff]  ;;  %v207_v43 = vld [vmem:[#allocation13 + $0x10] sm:$0xff] }
 0x19a   :  { %828 = vmatpush1.bf16.msra.mxu0 %v676_v46  ;;  %v936_v32 = vmul.f32 %v935_v31, %v225_v30 }
 0x19b   :  { %v687_v53 = vpop.permute.xlu1 %686  ;;  %v685_v54 = vpop.permute.xlu0 %684  ;;  %v679_v55 = vpack.c.bf16 %v675_v48, %v671_v52  ;;  %v678_v56 = vpack.c.bf16 %v674_v47, %v670_v51  ;;  %v208_v48 = vld [vmem:[#allocation13 + $0x18] sm:$0xff] }
 0x19c   :  { %v3570_v34 = vrot.slane %v936_v32, %v3370_v38  ;;  %v3578_v47 = vrot.slane %v936_v32, %v3364_v36  ;;  %v3583_v51 = vrot.slane %v936_v32, %v3372_v39 }
 0x19d   :  { %880 = vmatprep.subr.bf16.mxu1 %v679_v55 }
 0x19e   :  { %881 = vmatpush1.bf16.msra.mxu1 %v678_v56 }
 0x19f   :  { %v691_v58 = vpop.permute.xlu1 %690  ;;  %v689_v60 = vpop.permute.xlu0 %688 }
 0x1a0   :  { %v706_v61 = vsel %vm700_vm8, %v687_v53, %v691_v58  ;;  %v705_v62 = vsel %vm700_vm8, %v685_v54, %v689_v60 }
 0x1a1   :  { %v736_v1 = vmul.f32 %v715_v59, %v706_v61  ;;  %v732_v4 = vmul.f32 %v715_v59, %v705_v62  ;;  %v1058_v59 = vld [vmem:[#allocation14] sm:$0xff] }
 0x1a3   :  { %v695_v0 = vpop.permute.xlu1 %694  ;;  %v693_v6 = vpop.permute.xlu0 %692  ;;  %v740_v23 = vpack.c.bf16 %v736_v1, %v732_v4 }
 0x1a4   :  { %v704_v5 = vsel %vm700_vm8, %v691_v58, %v695_v0  ;;  %v703_v9 = vsel %vm700_vm8, %v689_v60, %v693_v6 }
 0x1a5   :  { %v737_v8 = vmul.f32 %v719_v63, %v704_v5  ;;  %v733_v14 = vmul.f32 %v719_v63, %v703_v9  ;;  %v211_v9 = vld [vmem:[#allocation13 + $0x30] sm:$0xff] }
 0x1a7   :  { %v699_v15 = vpop.permute.xlu1 %698  ;;  %v697_v16 = vpop.permute.xlu0 %696  ;;  %v741_v22 = vpack.c.bf16 %v737_v8, %v733_v14  ;;  %v212_v14 = vld [vmem:[#allocation13 + $0x38] sm:$0xff] }
 0x1a8   :  { %v702_v3 = vsel %vm700_vm8, %v695_v0, %v699_v15  ;;  %v708_v10 = vsel %vm700_vm8, %v699_v15, %v687_v53  ;;  %v701_v11 = vsel %vm700_vm8, %v693_v6, %v697_v16  ;;  %v707_v20 = vsel %vm700_vm8, %v697_v16, %v685_v54  ;;  %v1062_v6 = vld [vmem:[#allocation14 + $0x20] sm:$0xff] }
 0x1a9   :  { %v738_v17 = vmul.f32 %v723_v12, %v702_v3  ;;  %v739_v7 = vmul.f32 %v727_v13, %v708_v10  ;;  %v734_v18 = vmul.f32 %v723_v12, %v701_v11  ;;  %v735_v19 = vmul.f32 %v727_v13, %v707_v20  ;;  %829 = vmatprep.subr.bf16.mxu0 %v741_v22  ;;  %v213_v15 = vld [vmem:[#allocation13 + $0x40] sm:$0xff]  ;;  %v1060_v22 = vld [vmem:[#allocation14 + $0x10] sm:$0xff]  ;;  %v214_v11 = vld [vmem:[#allocation13 + $0x48] sm:$0xff] }
 0x1aa   :  { %830 = vmatpush1.bf16.msra.mxu0 %v740_v23  ;;  %v217_v20 = vld [vmem:[#allocation13 + $0x60] sm:$0xff] }
 0x1ab   :  { %v743_v25 = vpack.c.bf16 %v739_v7, %v735_v19  ;;  %v742_v28 = vpack.c.bf16 %v738_v17, %v734_v18 }
 0x1ad   :  { %846 = vmatmul.mubr.bf16.vlgmr.msra.gmra.mrb[0].mxu0 %v2679_v21  ;;  %882 = vmatprep.subr.bf16.mxu1 %v743_v25  ;;  %v218_v25 = vld [vmem:[#allocation13 + $0x68] sm:$0xff] }
 0x1ae   :  { %883 = vmatpush1.bf16.msra.mxu1 %v742_v28  ;;  %2622 = vmatprep.mubr.msk.bf16.mxu0 %vm806_vm0, %v2682_v24 }
 0x1b1   :  { %899 = vmatmul.mubr.bf16.vlgmr.msra.gmra.mrb[0].mxu1 %v2679_v21 }
 0x1b2   :  { %2624 = vmatprep.mubr.msk.bf16.mxu1 %vm806_vm0, %v2682_v24 }
 0x1b5   :  { %856 = vmatmul.mubr.bf16.gmra.mrb[4].mxu0 %v2684_v29 }
 0x1b8   :  { %v3587_v56 = vpop.permute.xlu1 %981 }
 0x1b9   :  { %909 = vmatmul.mubr.bf16.gmra.mrb[4].mxu1 %v2684_v29  ;;  %v3580_v49 = vpop.permute.xlu0 %976  ;;  %v945_v29 = vrot.slane %v936_v32, %v3352_v27 }
 0x280   :  { %v847_v35 = vpop.f32.mrb[0].mxu0 }
 0x281   :  { %v919_v40 = vmul.f32 %v847_v35, %v205_v33  ;;  %v3572_v41 = vpop.f32.mrb[1].mxu0  ;;  %v215_v33 = vld [vmem:[#allocation13 + $0x50] sm:$0xff] }
 0x282   :  { %v851_v42 = vpop.f32.mrb[2].mxu0 }
 0x283   :  { %v958_v44 = vadd.f32 %v3570_v34, %v919_v40  ;;  %v923_v45 = vmul.f32 %v851_v42, %v209_v37  ;;  %v3575_v46 = vpop.f32.mrb[3].mxu0 }
 0x284   :  { %v900_v50 = vpop.f32.mrb[0].mxu1 }
 0x285   :  { %v994_v52 = vadd.f32 %v3580_v49, %v958_v44  ;;  %v962_v53 = vadd.f32 %v3570_v34, %v923_v45  ;;  %v921_v54 = vmul.f32 %v900_v50, %v207_v43  ;;  %v902_v55 = vpop.f32.mrb[1].mxu1 }
 0x286   :  { %v922_v57 = vmul.f32 %v902_v55, %v208_v48  ;;  %v904_v58 = vpop.f32.mrb[2].mxu1 }
 0x287   :  { %vm1010_vm9 = vcmp.gt.f32.partialorder %v994_v52, 0.0  ;;  %v1026_v60 = vmul.f32 0.2, %v994_v52  ;;  %v998_v61 = vadd.f32 %v3587_v56, %v962_v53  ;;  %v960_v62 = vadd.f32 %v3578_v47, %v921_v54  ;;  %v906_v63 = vpop.f32.mrb[3].mxu1  ;;  %v1064_v53 = vld [vmem:[#allocation14 + $0x30] sm:$0xff] }
 0x288   :  { %v3592_v0 = vadd.f32 %v3583_v51, %v922_v57  ;;  %v857_v1 = vpop.f32.mrb[4].mxu0  ;;  %v925_v7 = vmul.f32 %v904_v58, %v211_v9  ;;  %v926_v21 = vmul.f32 %v906_v63, %v212_v14 }
 0x289   :  { %v1042_v4 = vsel %vm1010_vm9, %v994_v52, %v1026_v60  ;;  %vm1014_vm10 = vcmp.gt.f32.partialorder %v998_v61, 0.0  ;;  %v1030_v5 = vmul.f32 0.2, %v998_v61  ;;  %v996_v8 = vadd.f32 %v3580_v49, %v960_v62  ;;  %v859_v12 = vpop.f32.mrb[5].mxu0  ;;  %v216_v60 = vld [vmem:[#allocation13 + $0x58] sm:$0xff] }
 0x28a   :  { %v3595_v13 = vmul.f32 %v1058_v59, %v1042_v4  ;;  %v861_v3 = vpop.f32.mrb[6].mxu0  ;;  %v927_v24 = vmul.f32 %v857_v1, %v213_v15  ;;  %v964_v31 = vadd.f32 %v3578_v47, %v925_v7  ;;  %v3608_v37 = vadd.f32 %v3583_v51, %v926_v21  ;;  %v220_v62 = vld [vmem:[#allocation13 + $0x78] sm:$0xff] }
 0x28b   :  { %v1046_v10 = vsel %vm1014_vm10, %v998_v61, %v1030_v5  ;;  %vm1012_vm11 = vcmp.gt.f32.partialorder %v996_v8, 0.0  ;;  %v1028_v16 = vmul.f32 0.2, %v996_v8  ;;  %v863_v23 = vpop.f32.mrb[7].mxu0  ;;  %v928_v42 = vmul.f32 %v859_v12, %v214_v11  ;;  %v219_v61 = vld [vmem:[#allocation13 + $0x70] sm:$0xff]  ;;  %v210_v12 = vld [vmem:[#allocation13 + $0x28] sm:$0xff] }
 0x28c   :  { %5206 = vst [vmem:[#allocation34_spill] sm:$0xff] %v3595_v13  ;;  %v3597_v17 = vmul.f32 %v1062_v6, %v1046_v10  ;;  %v910_v18 = vpop.f32.mrb[4].mxu1  ;;  %1112 = vrot.lane.b32.xlu1 %v3595_v13, %s2962_s19  ;;  %v3611_v40 = vadd.f32 %v3570_v34, %v927_v24  ;;  %v931_v43 = vmul.f32 %v861_v3, %v217_v20  ;;  %v1061_v20 = vld [vmem:[#allocation14 + $0x18] sm:$0xff] }
 0x28d   :  { %v1044_v19 = vsel %vm1012_vm11, %v996_v8, %v1028_v16  ;;  %v912_v28 = vpop.f32.mrb[5].mxu1  ;;  %v1000_v32 = vadd.f32 %v3587_v56, %v964_v31  ;;  %v932_v45 = vmul.f32 %v863_v23, %v218_v25  ;;  %v3616_v48 = vadd.f32 %v945_v29, %v928_v42  ;;  %v1059_v16 = vld [vmem:[#allocation14 + $0x8] sm:$0xff]  ;;  %v3753_v31 = vpop.permute.xlu1 %986 }
 0x28e   :  { %5207 = vst [vmem:[#allocation35_spill] sm:$0xff] %v3597_v17  ;;  %v3602_v30 = vmul.f32 %v1060_v22, %v1044_v19  ;;  %v914_v35 = vpop.f32.mrb[6].mxu1  ;;  %1114 = vrot.lane.b32.xlu0 %v3597_v17, %s2962_s19  ;;  %v929_v50 = vmul.f32 %v910_v18, %v215_v33  ;;  %v3619_v54 = vadd.f32 %v3570_v34, %v931_v43  ;;  %v1063_v19 = vld [vmem:[#allocation14 + $0x28] sm:$0xff]  ;;  %v3767_v42 = vpop.permute.xlu0 %991 }
 0x28f   :  { %v916_v44 = vpop.f32.mrb[7].mxu1  ;;  %vm1016_vm12 = vcmp.gt.f32.partialorder %v1000_v32, 0.0  ;;  %v1032_v52 = vmul.f32 0.2, %v1000_v32  ;;  %v3621_v55 = vadd.f32 %v945_v29, %v932_v45  ;;  %v930_v63 = vmul.f32 %v912_v28, %v216_v60  ;;  %v1065_v28 = vld [vmem:[#allocation14 + $0x38] sm:$0xff] }
 0x290   :  { %5208 = vst [vmem:[#allocation36_spill] sm:$0xff] %v3602_v30  ;;  %1128 = vrot.lane.b32.xlu1 %v3602_v30, %s2962_s19  ;;  %v3628_v59 = vadd.f32 %v3578_v47, %v929_v50  ;;  %v933_v34 = vmul.f32 %v914_v35, %v219_v61  ;;  %v934_v1 = vmul.f32 %v916_v44, %v220_v62  ;;  %v1070_v62 = vld [vmem:[#allocation14 + $0x60] sm:$0xff] }
 0x291   :  { %v1048_v57 = vsel %vm1016_vm12, %v1000_v32, %v1032_v52  ;;  %v3635_v4 = vadd.f32 %v3583_v51, %v930_v63  ;;  %v924_v14 = vmul.f32 %v3575_v46, %v210_v12  ;;  %v997_v10 = vadd.f32 %v3580_v49, %v3592_v0  ;;  %v1066_v32 = vld [vmem:[#allocation14 + $0x40] sm:$0xff] }
 0x292   :  { %v3625_v58 = vmul.f32 %v1064_v53, %v1048_v57  ;;  %v3638_v5 = vadd.f32 %v3578_v47, %v933_v34  ;;  %v3641_v6 = vadd.f32 %v3583_v51, %v934_v1  ;;  %v206_v47 = vld [vmem:[#allocation13 + $0x8] sm:$0xff]  ;;  %v1001_v7 = vadd.f32 %v3587_v56, %v3608_v37 }
 0x293   :  { %v920_v51 = vmul.f32 %v3572_v41, %v206_v47  ;;  %v963_v41 = vadd.f32 %v945_v29, %v924_v14  ;;  %v1029_v23 = vmul.f32 0.2, %v997_v10  ;;  %vm1013_vm14 = vcmp.gt.f32.partialorder %v997_v10, 0.0 }
 0x294   :  { %1214 = vrot.lane.b32.xlu1 %v3595_v13, %s2963_s8  ;;  %1130 = vrot.lane.b32.xlu0 %v3625_v58, %s2962_s19  ;;  %v1033_v24 = vmul.f32 0.2, %v1001_v7  ;;  %vm1017_vm0 = vcmp.gt.f32.partialorder %v1001_v7, 0.0  ;;  %v1002_v33 = vadd.f32 %v3753_v31, %v3611_v40  ;;  %v1004_v37 = vadd.f32 %v3753_v31, %v3628_v59  ;;  %v1068_v59 = vld [vmem:[#allocation14 + $0x50] sm:$0xff] }
 0x295   :  { %v959_v9 = vadd.f32 %v945_v29, %v920_v51  ;;  %v999_v46 = vadd.f32 %v3587_v56, %v963_v41  ;;  %v1045_v11 = vsel %vm1013_vm14, %v997_v10, %v1029_v23  ;;  %v1006_v40 = vadd.f32 %v3767_v42, %v3619_v54 }
 0x296   :  { %v3703_v21 = vmul.f32 %v1061_v20, %v1045_v11  ;;  %v1049_v25 = vsel %vm1017_vm0, %v1001_v7, %v1033_v24  ;;  %v1034_v35 = vmul.f32 0.2, %v1002_v33  ;;  %vm1018_vm9 = vcmp.gt.f32.partialorder %v1002_v33, 0.0 }
 0x297   :  { %v995_v15 = vadd.f32 %v3580_v49, %v959_v9  ;;  %v1031_v0 = vmul.f32 0.2, %v999_v46  ;;  %vm1015_vm15 = vcmp.gt.f32.partialorder %v999_v46, 0.0  ;;  %v3715_v29 = vmul.f32 %v1065_v28, %v1049_v25  ;;  %v1072_v9 = vld [vmem:[#allocation14 + $0x70] sm:$0xff] }
 0x298   :  { %1230 = vrot.lane.b32.xlu1 %v3602_v30, %s2963_s8  ;;  %1216 = vrot.lane.b32.xlu0 %v3597_v17, %s2963_s8  ;;  %v1050_v44 = vsel %vm1018_vm9, %v1002_v33, %v1034_v35  ;;  %v1036_v45 = vmul.f32 0.2, %v1004_v37  ;;  %vm1020_vm10 = vcmp.gt.f32.partialorder %v1004_v37, 0.0  ;;  %v1038_v52 = vmul.f32 0.2, %v1006_v40 }
 0x299   :  { %v1027_v3 = vmul.f32 0.2, %v995_v15  ;;  %vm1011_vm13 = vcmp.gt.f32.partialorder %v995_v15, 0.0  ;;  %v1047_v18 = vsel %vm1015_vm15, %v999_v46, %v1031_v0  ;;  %v3777_v50 = vmul.f32 %v1066_v32, %v1050_v44 }
 0x29a   :  { %v3709_v56 = vmul.f32 %v1063_v19, %v1047_v18  ;;  %v1008_v53 = vadd.f32 %v3767_v42, %v3638_v5  ;;  %vm1022_vm11 = vcmp.gt.f32.partialorder %v1006_v40, 0.0  ;;  %v1052_v54 = vsel %vm1020_vm10, %v1004_v37, %v1036_v45 }
 0x29b   :  { %v1043_v22 = vsel %vm1011_vm13, %v995_v15, %v1027_v3  ;;  %v1054_v61 = vsel %vm1022_vm11, %v1006_v40, %v1038_v52  ;;  %v3789_v63 = vmul.f32 %v1068_v59, %v1052_v54  ;;  %v1003_v35 = vadd.f32 %v3753_v31, %v3616_v48  ;;  %v1067_v54 = vld [vmem:[#allocation14 + $0x48] sm:$0xff] }
 0x29c   :  { %1316 = vrot.lane.b32.xlu1 %v3595_v13, %s2964_s24  ;;  %1232 = vrot.lane.b32.xlu0 %v3625_v58, %s2963_s8  ;;  %v3695_v49 = vmul.f32 %v1059_v16, %v1043_v22  ;;  %5210 = vst [vmem:[#allocation38_spill] sm:$0xff] %v3709_v56  ;;  %v1040_v34 = vmul.f32 0.2, %v1008_v53  ;;  %vm1024_vm12 = vcmp.gt.f32.partialorder %v1008_v53, 0.0  ;;  %v3797_v5 = vmul.f32 %v1070_v62, %v1054_v61 }
 0x29d   :  { %5211 = vst [vmem:[#allocation39_spill] sm:$0xff] %v3789_v63  ;;  %v1035_v44 = vmul.f32 0.2, %v1003_v35  ;;  %v1005_v32 = vadd.f32 %v3753_v31, %v3635_v4  ;;  %vm1019_vm13 = vcmp.gt.f32.partialorder %v1003_v35, 0.0  ;;  %v1007_v45 = vadd.f32 %v3767_v42, %v3621_v55 }
 0x29e   :  { %5209 = vst [vmem:[#allocation37_spill] sm:$0xff] %v3695_v49  ;;  %v1056_v51 = vsel %vm1024_vm12, %v1008_v53, %v1040_v34  ;;  %v1009_v55 = vadd.f32 %v3767_v42, %v3641_v6 }
 0x29f   :  { %v3807_v14 = vmul.f32 %v1072_v9, %v1056_v51  ;;  %v1051_v53 = vsel %vm1019_vm13, %v1003_v35, %v1035_v44  ;;  %v1037_v59 = vmul.f32 0.2, %v1005_v32  ;;  %vm1021_vm14 = vcmp.gt.f32.partialorder %v1005_v32, 0.0  ;;  %v1069_v51 = vld [vmem:[#allocation14 + $0x58] sm:$0xff] }
 0x2a0   :  { %1332 = vrot.lane.b32.xlu1 %v3602_v30, %s2964_s24  ;;  %1318 = vrot.lane.b32.xlu0 %v3597_v17, %s2964_s24  ;;  %v3905_v31 = vmul.f32 %v1067_v54, %v1051_v53  ;;  %v1039_v61 = vmul.f32 0.2, %v1007_v45  ;;  %vm1023_vm15 = vcmp.gt.f32.partialorder %v1007_v45, 0.0  ;;  %v1160_v9 = vld [vmem:[#allocation10] ss:$8 sm:$0xf] }
 0x2a1   :  { %5212 = vst [vmem:[#allocation40_spill] sm:$0xff] %v3807_v14  ;;  %v1053_v34 = vsel %vm1021_vm14, %v1005_v32, %v1037_v59  ;;  %v1071_v53 = vld [vmem:[#allocation14 + $0x68] sm:$0xff]  ;;  %v1041_v2 = vmul.f32 0.2, %v1009_v55  ;;  %vm1025_vm0 = vcmp.gt.f32.partialorder %v1009_v55, 0.0  ;;  %v3918_v6 = vrot.slane %v1160_v9, %v3352_v27 }
 0x2a2   :  { %v1055_v44 = vsel %vm1023_vm15, %v1007_v45, %v1039_v61  ;;  %v3915_v54 = vmul.f32 %v1069_v51, %v1053_v34  ;;  %v1073_v61 = vld [vmem:[#allocation14 + $0x78] sm:$0xff]  ;;  %v3933_v51 = vrot.slane %v1160_v9, %v3370_v38 }
 0x2a3   :  { %v3927_v32 = vmul.f32 %v1071_v53, %v1055_v44  ;;  %v1057_v59 = vsel %vm1025_vm0, %v1009_v55, %v1041_v2  ;;  %v3951_v53 = vrot.slane %v1160_v9, %v3364_v36 }
 0x2a4   :  { %1418 = vrot.lane.b32.xlu1 %v3595_v13, %s2965_s2  ;;  %1334 = vrot.lane.b32.xlu0 %v3625_v58, %s2964_s24 }
 0x2a8   :  { %1434 = vrot.lane.b32.xlu1 %v3602_v30, %s2965_s2  ;;  %1420 = vrot.lane.b32.xlu0 %v3597_v17, %s2965_s2 }
 0x2ac   :  { %1536 = vrot.lane.b32.xlu1 %v3595_v13, %s2966_s29  ;;  %1436 = vrot.lane.b32.xlu0 %v3625_v58, %s2965_s2 }
 0x2b0   :  { %1552 = vrot.lane.b32.xlu1 %v3602_v30, %s2966_s29  ;;  %1538 = vrot.lane.b32.xlu0 %v3597_v17, %s2966_s29 }
 0x2b4   :  { %1638 = vrot.lane.b32.xlu1 %v3595_v13, %s2967_s26  ;;  %1554 = vrot.lane.b32.xlu0 %v3625_v58, %s2966_s29 }
 0x2b8   :  { %1654 = vrot.lane.b32.xlu1 %v3602_v30, %s2967_s26  ;;  %1640 = vrot.lane.b32.xlu0 %v3597_v17, %s2967_s26 }
 0x2bc   :  { %1740 = vrot.lane.b32.xlu1 %v3595_v13, %s2968_s5  ;;  %1656 = vrot.lane.b32.xlu0 %v3625_v58, %s2967_s26 }
 0x2c0   :  { %1756 = vrot.lane.b32.xlu1 %v3602_v30, %s2968_s5  ;;  %1742 = vrot.lane.b32.xlu0 %v3597_v17, %s2968_s5 }
 0x2c4   :  { %1842 = vrot.lane.b32.xlu1 %v3595_v13, %s2969_s4  ;;  %1758 = vrot.lane.b32.xlu0 %v3625_v58, %s2968_s5 }
 0x2c8   :  { %1120 = vrot.lane.b32.xlu1 %v3695_v49, %s2962_s19  ;;  %1844 = vrot.lane.b32.xlu0 %v3597_v17, %s2969_s4 }
 0x2cc   :  { %1136 = vrot.lane.b32.xlu1 %v3703_v21, %s2962_s19  ;;  %1122 = vrot.lane.b32.xlu0 %v3709_v56, %s2962_s19 }
 0x2d0   :  { %1222 = vrot.lane.b32.xlu1 %v3695_v49, %s2963_s8  ;;  %1138 = vrot.lane.b32.xlu0 %v3715_v29, %s2962_s19 }
 0x2d4   :  { %1238 = vrot.lane.b32.xlu1 %v3703_v21, %s2963_s8  ;;  %1224 = vrot.lane.b32.xlu0 %v3709_v56, %s2963_s8 }
 0x2d8   :  { %1324 = vrot.lane.b32.xlu1 %v3695_v49, %s2964_s24  ;;  %1240 = vrot.lane.b32.xlu0 %v3715_v29, %s2963_s8 }
 0x2dc   :  { %1340 = vrot.lane.b32.xlu1 %v3703_v21, %s2964_s24  ;;  %1326 = vrot.lane.b32.xlu0 %v3709_v56, %s2964_s24 }
 0x2e0   :  { %1426 = vrot.lane.b32.xlu1 %v3695_v49, %s2965_s2  ;;  %1342 = vrot.lane.b32.xlu0 %v3715_v29, %s2964_s24 }
 0x2e4   :  { %1442 = vrot.lane.b32.xlu1 %v3703_v21, %s2965_s2  ;;  %1428 = vrot.lane.b32.xlu0 %v3709_v56, %s2965_s2 }
 0x2e8   :  { %1544 = vrot.lane.b32.xlu1 %v3695_v49, %s2966_s29  ;;  %1444 = vrot.lane.b32.xlu0 %v3715_v29, %s2965_s2 }
 0x2ec   :  { %1560 = vrot.lane.b32.xlu1 %v3703_v21, %s2966_s29  ;;  %1546 = vrot.lane.b32.xlu0 %v3709_v56, %s2966_s29 }
 0x2f0   :  { %1646 = vrot.lane.b32.xlu1 %v3695_v49, %s2967_s26  ;;  %1562 = vrot.lane.b32.xlu0 %v3715_v29, %s2966_s29 }
 0x2f4   :  { %1662 = vrot.lane.b32.xlu1 %v3703_v21, %s2967_s26  ;;  %1648 = vrot.lane.b32.xlu0 %v3709_v56, %s2967_s26 }
 0x2f8   :  { %1748 = vrot.lane.b32.xlu1 %v3695_v49, %s2968_s5  ;;  %1664 = vrot.lane.b32.xlu0 %v3715_v29, %s2967_s26 }
 0x2fc   :  { %1764 = vrot.lane.b32.xlu1 %v3703_v21, %s2968_s5  ;;  %1750 = vrot.lane.b32.xlu0 %v3709_v56, %s2968_s5 }
 0x2fe   :  { %v3771_v43 = vpop.permute.xlu1 %1112 }
 0x300   :  { %1850 = vrot.lane.b32.xlu1 %v3695_v49, %s2969_s4  ;;  %1766 = vrot.lane.b32.xlu0 %v3715_v29, %s2968_s5  ;;  %v3785_v60 = vpop.permute.xlu0 %1114 }
 0x302   :  { %v3781_v57 = vpop.permute.xlu1 %1128 }
 0x304   :  { %1116 = vrot.lane.b32.xlu1 %v3777_v50, %s2962_s19  ;;  %1852 = vrot.lane.b32.xlu0 %v3709_v56, %s2969_s4 }
 0x306   :  { %v3791_v1 = vpop.permute.xlu1 %1214  ;;  %v3799_v47 = vpop.permute.xlu0 %1130 }
 0x308   :  { %1132 = vrot.lane.b32.xlu1 %v3789_v63, %s2962_s19  ;;  %1118 = vrot.lane.b32.xlu0 %v3797_v5, %s2962_s19 }
 0x30a   :  { %v3801_v12 = vpop.permute.xlu1 %1230  ;;  %v3809_v15 = vpop.permute.xlu0 %1216 }
 0x30c   :  { %1218 = vrot.lane.b32.xlu1 %v3777_v50, %s2963_s8  ;;  %1134 = vrot.lane.b32.xlu0 %v3807_v14, %s2962_s19 }
 0x30e   :  { %v3811_v41 = vpop.permute.xlu1 %1316  ;;  %v3817_v3 = vpop.permute.xlu0 %1232 }
 0x310   :  { %1234 = vrot.lane.b32.xlu1 %v3789_v63, %s2963_s8  ;;  %1220 = vrot.lane.b32.xlu0 %v3797_v5, %s2963_s8 }
 0x312   :  { %v3819_v10 = vpop.permute.xlu1 %1332  ;;  %v3825_v46 = vpop.permute.xlu0 %1318 }
 0x314   :  { %1320 = vrot.lane.b32.xlu1 %v3777_v50, %s2964_s24  ;;  %1236 = vrot.lane.b32.xlu0 %v3807_v14, %s2963_s8 }
 0x316   :  { %v3827_v16 = vpop.permute.xlu1 %1418  ;;  %v3833_v22 = vpop.permute.xlu0 %1334 }
 0x318   :  { %1336 = vrot.lane.b32.xlu1 %v3789_v63, %s2964_s24  ;;  %1322 = vrot.lane.b32.xlu0 %v3797_v5, %s2964_s24 }
 0x31a   :  { %v3835_v23 = vpop.permute.xlu1 %1434  ;;  %v3841_v0 = vpop.permute.xlu0 %1420 }
 0x31c   :  { %1422 = vrot.lane.b32.xlu1 %v3777_v50, %s2965_s2  ;;  %1338 = vrot.lane.b32.xlu0 %v3807_v14, %s2964_s24 }
 0x31e   :  { %v3843_v7 = vpop.permute.xlu1 %1536  ;;  %v3849_v11 = vpop.permute.xlu0 %1436 }
 0x320   :  { %1438 = vrot.lane.b32.xlu1 %v3789_v63, %s2965_s2  ;;  %1424 = vrot.lane.b32.xlu0 %v3797_v5, %s2965_s2 }
 0x322   :  { %v3851_v20 = vpop.permute.xlu1 %1552  ;;  %v3857_v18 = vpop.permute.xlu0 %1538 }
 0x324   :  { %1540 = vrot.lane.b32.xlu1 %v3777_v50, %s2966_s29  ;;  %1440 = vrot.lane.b32.xlu0 %v3807_v14, %s2965_s2 }
 0x326   :  { %v3859_v19 = vpop.permute.xlu1 %1638  ;;  %v3865_v24 = vpop.permute.xlu0 %1554 }
 0x328   :  { %1556 = vrot.lane.b32.xlu1 %v3789_v63, %s2966_s29  ;;  %1542 = vrot.lane.b32.xlu0 %v3797_v5, %s2966_s29 }
 0x32a   :  { %v3867_v25 = vpop.permute.xlu1 %1654  ;;  %v3873_v28 = vpop.permute.xlu0 %1640 }
 0x32c   :  { %1642 = vrot.lane.b32.xlu1 %v3777_v50, %s2967_s26  ;;  %1558 = vrot.lane.b32.xlu0 %v3807_v14, %s2966_s29 }
 0x32e   :  { %v3875_v33 = vpop.permute.xlu1 %1740  ;;  %v3883_v37 = vpop.permute.xlu0 %1656 }
 0x330   :  { %1658 = vrot.lane.b32.xlu1 %v3789_v63, %s2967_s26  ;;  %1644 = vrot.lane.b32.xlu0 %v3797_v5, %s2967_s26 }
 0x332   :  { %v3885_v40 = vpop.permute.xlu1 %1756  ;;  %v3893_v48 = vpop.permute.xlu0 %1742 }
 0x334   :  { %1744 = vrot.lane.b32.xlu1 %v3777_v50, %s2968_s5  ;;  %1660 = vrot.lane.b32.xlu0 %v3807_v14, %s2967_s26 }
 0x336   :  { %v3897_v52 = vpop.permute.xlu1 %1842  ;;  %v3903_v4 = vpop.permute.xlu0 %1758 }
 0x337   :  { %5213 = vst [vmem:[#allocation41_spill] sm:$0xff] %v3897_v52 }
 0x338   :  { %1760 = vrot.lane.b32.xlu1 %v3789_v63, %s2968_s5  ;;  %1746 = vrot.lane.b32.xlu0 %v3797_v5, %s2968_s5 }
 0x33a   :  { %v1121_v62 = vpop.permute.xlu1 %1120  ;;  %v3913_v35 = vpop.permute.xlu0 %1844 }
 0x33b   :  { %5214 = vst [vmem:[#allocation42_spill] sm:$0xff] %v3913_v35  ;;  %v1152_v42 = vsel %vm245_vm1, %v3771_v43, %v1121_v62  ;;  %v3936_v35 = vrot.slane %v1160_v9, %v3372_v39 }
 0x33c   :  { %1124 = vrot.lane.b32.xlu1 %v3905_v31, %s2962_s19  ;;  %1762 = vrot.lane.b32.xlu0 %v3807_v14, %s2968_s5  ;;  %v1183_v13 = vmul.f32 %v3918_v6, %v1152_v42 }
 0x33e   :  { %v1137_v8 = vpop.permute.xlu1 %1136  ;;  %v1123_v45 = vpop.permute.xlu0 %1122 }
 0x33f   :  { %v1153_v34 = vsel %vm245_vm1, %v3785_v60, %v1123_v45  ;;  %v1149_v44 = vsel %vm245_vm1, %v1123_v45, %v3799_v47  ;;  %v1156_v55 = vsel %vm245_vm1, %v1137_v8, %v3771_v43  ;;  %v1144_v42 = vsel %vm245_vm1, %v3781_v57, %v1137_v8 }
 0x340   :  { %1140 = vrot.lane.b32.xlu1 %v3915_v54, %s2962_s19  ;;  %v1187_v2 = vmul.f32 %v3918_v6, %v1153_v34  ;;  %1126 = vrot.lane.b32.xlu0 %v3927_v32, %s2962_s19  ;;  %v3958_v45 = vmul.f32 %v1073_v61, %v1057_v59  ;;  %v1148_v34 = vsel %vm245_vm1, %v1121_v62, %v3781_v57 }
 0x341   :  { %v1188_v56 = vmul.f32 %v3951_v53, %v1149_v44  ;;  %v1182_v9 = vmul.f32 %v3933_v51, %v1156_v55  ;;  %v1185_v61 = vmul.f32 %v3936_v35, %v1144_v42  ;;  %v1364_v42 = vld [vmem:[#allocation10 + $0x2] ss:$8 sm:$0xf] }
 0x342   :  { %v3938_v52 = vpop.permute.xlu1 %1222  ;;  %v1139_v43 = vpop.permute.xlu0 %1138  ;;  %v1199_v17 = vpack.c.bf16 %v1187_v2, %v1183_v13  ;;  %v1184_v13 = vmul.f32 %v3951_v53, %v1148_v34  ;;  %v3981_v2 = vld [vmem:[#allocation10 + $0x1] ss:$8 sm:$0xf] }
 0x343   :  { %5215 = vst [vmem:[#allocation43_spill] sm:$0xff] %v3938_v52  ;;  %v1145_v49 = vsel %vm245_vm1, %v3799_v47, %v1139_v43  ;;  %v1157_v8 = vsel %vm245_vm1, %v1139_v43, %v3785_v60 }
 0x344   :  { %1226 = vrot.lane.b32.xlu1 %v3905_v31, %s2963_s8  ;;  %v1186_v52 = vmul.f32 %v3933_v51, %v1157_v8  ;;  %v1189_v57 = vmul.f32 %v3936_v35, %v1145_v49  ;;  %2061 = vmatprep.subr.bf16.mxu0 %v1199_v17  ;;  %v1200_v44 = vpack.c.bf16 %v1188_v56, %v1184_v13 }
 0x345   :  { %1142 = vrot.lane.b32.xlu0 %v3958_v45, %s2962_s19  ;;  %v3985_v49 = vrot.slane %v3981_v2, %v3370_v38  ;;  %v3989_v17 = vrot.slane %v3981_v2, %v3372_v39  ;;  %v4008_v8 = vrot.slane %v1364_v42, %v3352_v27  ;;  %s2587_s19 = sshll.u32 %s2971_s15, 4  ;;  %s2588_s19 = int_to_ptr.vmem [resolvable:$true] %s2587_s19 }
 0x346   :  { %v1239_v59 = vpop.permute.xlu1 %1238  ;;  %v1198_v47 = vpack.c.bf16 %v1186_v52, %v1182_v9  ;;  %v3979_v62 = vpop.permute.xlu0 %1224  ;;  %v1201_v60 = vpack.c.bf16 %v1189_v57, %v1185_v61  ;;  %s2891_s22 = scalar_lea.vmem %s2588_s19, 2048  ;;  %p2896_p3 = scmp.lt.s32.totalorder %s2588_s19, %s2588_s19 }
 0x347   :  { %5216 = vst [vmem:[#allocation44_spill] sm:$0xff] %v3985_v49  ;;  %5217 = vst [vmem:[#allocation45_spill] sm:$0xff] %v3989_v17  ;;  %v1246_v52 = vsel %vm308_vm2, %v3801_v12, %v1239_v59  ;;  %v1258_v56 = vsel %vm308_vm2, %v1239_v59, %v3791_v1  ;;  %v4011_v59 = vrot.slane %v1364_v42, %v3364_v36  ;;  %p2892_p2 = scmp.ne.s32.totalorder %s2588_s19, %s2891_s22  ;;  %p2897_p4 = scmp.lt.s32.totalorder %s2891_s22, %s2891_s22 }
 0x348   :  { %1242 = vrot.lane.b32.xlu1 %v3915_v54, %s2963_s8  ;;  %2062 = vmatpush1.bf16.msra.mxu0 %v1198_v47  ;;  %v4014_v57 = vmul.f32 %v3985_v49, %v1258_v56  ;;  %v4017_v13 = vmul.f32 %v3989_v17, %v1246_v52  ;;  %v4049_v52 = vrot.slane %v1364_v42, %v3372_v39 }
 0x349   :  { %2167 = vmatprep.subr.bf16.mxu1 %v1201_v60  ;;  %1228 = vrot.lane.b32.xlu0 %v3927_v32, %s2963_s8  ;;  %5218 = vst [vmem:[#allocation46_spill] sm:$0xff] %v4011_v59  ;;  %p2898_p5 = por %p2897_p4, %p2896_p3 }
 0x34a   :  { %v1325_v55 = vpop.permute.xlu1 %1324  ;;  %2168 = vmatpush1.bf16.msra.mxu1 %v1200_v44  ;;  %v1241_v34 = vpop.permute.xlu0 %1240  ;;  %5219 = vst [vmem:[#allocation47_spill] sm:$0xff] %v4014_v57  ;;  %5220 = vst [vmem:[#allocation48_spill] sm:$0xff] %v4017_v13 }
 0x34b   :  { %v1247_v43 = vsel %vm308_vm2, %v3817_v3, %v1241_v34  ;;  %v1259_v9 = vsel %vm308_vm2, %v1241_v34, %v3809_v15  ;;  %v1352_v44 = vsel %vm372_vm3, %v1325_v55, %v3819_v10  ;;  %v1356_v34 = vsel %vm372_vm3, %v3811_v41, %v1325_v55  ;;  %5224 = vst [vmem:[#allocation52_spill] sm:$0xff] %v4049_v52  ;;  %p2899_p6 = pnand %p2898_p5, %p2892_p2 }
 0x34c   :  { %1328 = vrot.lane.b32.xlu1 %v3905_v31, %s2964_s24  ;;  %v4020_v47 = vmul.f32 %v3985_v49, %v1259_v9  ;;  %v4023_v60 = vmul.f32 %v3989_v17, %v1247_v43  ;;  %v4046_v17 = vrot.slane %v1364_v42, %v3370_v38  ;;  %v4055_v43 = vmul.f32 %v4011_v59, %v1352_v44 }
 0x34d   :  { %1244 = vrot.lane.b32.xlu0 %v3958_v45, %s2963_s8 }
 0x34e   :  { %v1341_v61 = vpop.permute.xlu1 %1340  ;;  %5221 = vst [vmem:[#allocation49_spill] sm:$0xff] %v4020_v47  ;;  %5222 = vst [vmem:[#allocation50_spill] sm:$0xff] %v4023_v60  ;;  %v1327_v56 = vpop.permute.xlu0 %1326  ;;  %v4052_v47 = vmul.f32 %v4008_v8, %v1356_v34 }
 0x34f   :  { %v1353_v9 = vsel %vm372_vm3, %v1327_v56, %v3833_v22  ;;  %v1357_v55 = vsel %vm372_vm3, %v3825_v46, %v1327_v56  ;;  %5223 = vst [vmem:[#allocation51_spill] sm:$0xff] %v4046_v17  ;;  %5225 = vst [vmem:[#allocation53_spill] sm:$0xff] %v4055_v43  ;;  %v1466_v56 = vld [vmem:[#allocation10 + $0x3] ss:$8 sm:$0xf]  ;;  %v1348_v60 = vsel %vm372_vm3, %v3819_v10, %v1341_v61 }
 0x350   :  { %1344 = vrot.lane.b32.xlu1 %v3915_v54, %s2964_s24  ;;  %v4058_v49 = vmul.f32 %v4008_v8, %v1357_v55  ;;  %v4061_v13 = vmul.f32 %v4011_v59, %v1353_v9  ;;  %v1360_v42 = vsel %vm372_vm3, %v1341_v61, %v3811_v41  ;;  %v4084_v61 = vrot.slane %v1466_v56, %v3352_v27 }
 0x351   :  { %1330 = vrot.lane.b32.xlu0 %v3927_v32, %s2964_s24  ;;  %v4087_v55 = vrot.slane %v1466_v56, %v3364_v36  ;;  %v4090_v43 = vmul.f32 %v4046_v17, %v1360_v42  ;;  %v4093_v9 = vmul.f32 %v4049_v52, %v1348_v60  ;;  %v4125_v60 = vrot.slane %v1466_v56, %v3372_v39 }
 0x352   :  { %v1427_v57 = vpop.permute.xlu1 %1426  ;;  %5226 = vst [vmem:[#allocation54_spill] sm:$0xff] %v4061_v13  ;;  %v1343_v34 = vpop.permute.xlu0 %1342 }
 0x353   :  { %v1349_v10 = vsel %vm372_vm3, %v3833_v22, %v1343_v34  ;;  %v1361_v41 = vsel %vm372_vm3, %v1343_v34, %v3825_v46  ;;  %5227 = vst [vmem:[#allocation55_spill] sm:$0xff] %v4087_v55  ;;  %5228 = vst [vmem:[#allocation56_spill] sm:$0xff] %v4090_v43  ;;  %v1454_v46 = vsel %vm436_vm4, %v1427_v57, %v3835_v23 }
 0x354   :  { %1430 = vrot.lane.b32.xlu1 %v3905_v31, %s2965_s2  ;;  %5229 = vst [vmem:[#allocation57_spill] sm:$0xff] %v4093_v9  ;;  %v4096_v13 = vmul.f32 %v4046_v17, %v1361_v41  ;;  %v4099_v22 = vmul.f32 %v4049_v52, %v1349_v10  ;;  %v1458_v34 = vsel %vm436_vm4, %v3827_v16, %v1427_v57  ;;  %5232 = vst [vmem:[#allocation60_spill] sm:$0xff] %v4125_v60 }
 0x355   :  { %1346 = vrot.lane.b32.xlu0 %v3958_v45, %s2964_s24  ;;  %v4122_v52 = vrot.slane %v1466_v56, %v3370_v38  ;;  %v4131_v10 = vmul.f32 %v4087_v55, %v1454_v46 }
 0x356   :  { %v1443_v44 = vpop.permute.xlu1 %1442  ;;  %5230 = vst [vmem:[#allocation58_spill] sm:$0xff] %v4096_v13  ;;  %v1429_v42 = vpop.permute.xlu0 %1428  ;;  %v4128_v13 = vmul.f32 %v4084_v61, %v1458_v34 }
 0x357   :  { %v1455_v41 = vsel %vm436_vm4, %v1429_v42, %v3849_v11  ;;  %v1459_v57 = vsel %vm436_vm4, %v3841_v0, %v1429_v42  ;;  %5231 = vst [vmem:[#allocation59_spill] sm:$0xff] %v4122_v52  ;;  %5233 = vst [vmem:[#allocation61_spill] sm:$0xff] %v4131_v10  ;;  %v1584_v42 = vld [vmem:[#allocation10 + $0x5] ss:$8 sm:$0xf]  ;;  %v1450_v9 = vsel %vm436_vm4, %v3835_v23, %v1443_v44 }
 0x358   :  { %1446 = vrot.lane.b32.xlu1 %v3915_v54, %s2965_s2  ;;  %v4134_v17 = vmul.f32 %v4084_v61, %v1459_v57  ;;  %v4137_v59 = vmul.f32 %v4087_v55, %v1455_v41  ;;  %v1462_v56 = vsel %vm436_vm4, %v1443_v44, %v3827_v16  ;;  %v4160_v44 = vrot.slane %v1584_v42, %v3370_v38 }
 0x359   :  { %1432 = vrot.lane.b32.xlu0 %v3927_v32, %s2965_s2  ;;  %v4163_v57 = vrot.slane %v1584_v42, %v3352_v27  ;;  %v4169_v41 = vmul.f32 %v4125_v60, %v1450_v9  ;;  %v4201_v9 = vrot.slane %v1584_v42, %v3372_v39 }
 0x35a   :  { %v1545_v43 = vpop.permute.xlu1 %1544  ;;  %5234 = vst [vmem:[#allocation62_spill] sm:$0xff] %v4137_v59  ;;  %v1445_v34 = vpop.permute.xlu0 %1444  ;;  %5235 = vst [vmem:[#allocation63_spill] sm:$0xff] %v4160_v44  ;;  %v4198_v59 = vrot.slane %v1584_v42, %v3364_v36 }
 0x35b   :  { %v1451_v23 = vsel %vm436_vm4, %v3849_v11, %v1445_v34  ;;  %v1463_v16 = vsel %vm436_vm4, %v1445_v34, %v3841_v0  ;;  %5236 = vst [vmem:[#allocation64_spill] sm:$0xff] %v4163_v57  ;;  %v1572_v0 = vsel %vm508_vm5, %v1545_v43, %v3851_v20  ;;  %v1576_v34 = vsel %vm508_vm5, %v3843_v7, %v1545_v43 }
 0x35c   :  { %1858 = vrot.lane.b32.xlu1 %v3602_v30, %s2969_s4  ;;  %v4166_v30 = vmul.f32 %v4122_v52, %v1462_v56  ;;  %v4172_v10 = vmul.f32 %v4122_v52, %v1463_v16  ;;  %v4175_v11 = vmul.f32 %v4125_v60, %v1451_v23  ;;  %5239 = vst [vmem:[#allocation67_spill] sm:$0xff] %v4198_v59  ;;  %5240 = vst [vmem:[#allocation68_spill] sm:$0xff] %v4201_v9 }
 0x35d   :  { %1448 = vrot.lane.b32.xlu0 %v3958_v45, %s2965_s2  ;;  %v4207_v23 = vmul.f32 %v4163_v57, %v1572_v0 }
 0x35e   :  { %v1561_v46 = vpop.permute.xlu1 %1560  ;;  %5237 = vst [vmem:[#allocation65_spill] sm:$0xff] %v4166_v30  ;;  %5238 = vst [vmem:[#allocation66_spill] sm:$0xff] %v4172_v10  ;;  %v1547_v56 = vpop.permute.xlu0 %1546  ;;  %v4204_v10 = vmul.f32 %v4160_v44, %v1576_v34 }
 0x35f   :  { %v1573_v16 = vsel %vm508_vm5, %v1547_v56, %v3865_v24  ;;  %v1577_v43 = vsel %vm508_vm5, %v3857_v18, %v1547_v56  ;;  %5242 = vst [vmem:[#allocation70_spill] sm:$0xff] %v4207_v23  ;;  %v1686_v56 = vld [vmem:[#allocation10 + $0x6] ss:$8 sm:$0xf]  ;;  %v1568_v55 = vsel %vm508_vm5, %v3851_v20, %v1561_v46  ;;  %v1580_v42 = vsel %vm508_vm5, %v1561_v46, %v3843_v7 }
 0x360   :  { %1548 = vrot.lane.b32.xlu1 %v3905_v31, %s2966_s29  ;;  %5241 = vst [vmem:[#allocation69_spill] sm:$0xff] %v4204_v10  ;;  %v4210_v60 = vmul.f32 %v4160_v44, %v1577_v43  ;;  %v4213_v52 = vmul.f32 %v4163_v57, %v1573_v16  ;;  %v4236_v46 = vrot.slane %v1686_v56, %v3370_v38 }
 0x361   :  { %1860 = vrot.lane.b32.xlu0 %v3625_v58, %s2969_s4  ;;  %v4239_v43 = vrot.slane %v1686_v56, %v3352_v27  ;;  %v4242_v10 = vmul.f32 %v4198_v59, %v1568_v55  ;;  %v4245_v16 = vmul.f32 %v4201_v9, %v1580_v42  ;;  %v4277_v55 = vrot.slane %v1686_v56, %v3372_v39 }
 0x362   :  { %v1647_v30 = vpop.permute.xlu1 %1646  ;;  %5243 = vst [vmem:[#allocation71_spill] sm:$0xff] %v4210_v60  ;;  %5244 = vst [vmem:[#allocation72_spill] sm:$0xff] %v4213_v52  ;;  %v1563_v34 = vpop.permute.xlu0 %1562 }
 0x363   :  { %v1569_v20 = vsel %vm508_vm5, %v3865_v24, %v1563_v34  ;;  %v1581_v7 = vsel %vm508_vm5, %v1563_v34, %v3857_v18  ;;  %5245 = vst [vmem:[#allocation73_spill] sm:$0xff] %v4236_v46  ;;  %5246 = vst [vmem:[#allocation74_spill] sm:$0xff] %v4239_v43  ;;  %v1674_v18 = vsel %vm572_vm6, %v1647_v30, %v3867_v25 }
 0x364   :  { %1564 = vrot.lane.b32.xlu1 %v3915_v54, %s2966_s29  ;;  %5247 = vst [vmem:[#allocation75_spill] sm:$0xff] %v4242_v10  ;;  %5248 = vst [vmem:[#allocation76_spill] sm:$0xff] %v4245_v16  ;;  %v4248_v60 = vmul.f32 %v4198_v59, %v1569_v20  ;;  %v4251_v24 = vmul.f32 %v4201_v9, %v1581_v7  ;;  %v1678_v34 = vsel %vm572_vm6, %v3859_v19, %v1647_v30 }
 0x365   :  { %1868 = vrot.lane.b32.xlu0 %v3715_v29, %s2969_s4  ;;  %v4274_v9 = vrot.slane %v1686_v56, %v3364_v36  ;;  %5252 = vst [vmem:[#allocation80_spill] sm:$0xff] %v4277_v55  ;;  %v4283_v20 = vmul.f32 %v4239_v43, %v1674_v18 }
 0x366   :  { %v1663_v0 = vpop.permute.xlu1 %1662  ;;  %5249 = vst [vmem:[#allocation77_spill] sm:$0xff] %v4248_v60  ;;  %5250 = vst [vmem:[#allocation78_spill] sm:$0xff] %v4251_v24  ;;  %v1649_v42 = vpop.permute.xlu0 %1648  ;;  %v4280_v60 = vmul.f32 %v4236_v46, %v1678_v34 }
 0x367   :  { %v1675_v7 = vsel %vm572_vm6, %v1649_v42, %v3883_v37  ;;  %v1679_v30 = vsel %vm572_vm6, %v3873_v28, %v1649_v42  ;;  %5251 = vst [vmem:[#allocation79_spill] sm:$0xff] %v4274_v9  ;;  %5254 = vst [vmem:[#allocation82_spill] sm:$0xff] %v4283_v20  ;;  %v1788_v42 = vld [vmem:[#allocation10 + $0x7] ss:$8 sm:$0xf]  ;;  %v1670_v24 = vsel %vm572_vm6, %v3867_v25, %v1663_v0 }
 0x368   :  { %1650 = vrot.lane.b32.xlu1 %v3905_v31, %s2967_s26  ;;  %5253 = vst [vmem:[#allocation81_spill] sm:$0xff] %v4280_v60  ;;  %v4286_v59 = vmul.f32 %v4236_v46, %v1679_v30  ;;  %v4289_v16 = vmul.f32 %v4239_v43, %v1675_v7  ;;  %v1682_v56 = vsel %vm572_vm6, %v1663_v0, %v3859_v19 }
 0x369   :  { %1550 = vrot.lane.b32.xlu0 %v3927_v32, %s2966_s29  ;;  %v4312_v0 = vrot.slane %v1788_v42, %v3370_v38  ;;  %v4315_v30 = vrot.slane %v1788_v42, %v3352_v27  ;;  %v4318_v60 = vmul.f32 %v4274_v9, %v1670_v24  ;;  %v4321_v7 = vmul.f32 %v4277_v55, %v1682_v56 }
 0x36a   :  { %v1749_v10 = vpop.permute.xlu1 %1748  ;;  %5255 = vst [vmem:[#allocation83_spill] sm:$0xff] %v4286_v59  ;;  %5256 = vst [vmem:[#allocation84_spill] sm:$0xff] %v4289_v16  ;;  %v1665_v34 = vpop.permute.xlu0 %1664  ;;  %v4353_v24 = vrot.slane %v1788_v42, %v3372_v39  ;;  %v1109_v39 = vld [vmem:[%s5078_s12 + $0x18] sm:$0xff] }
 0x36b   :  { %v1671_v25 = vsel %vm572_vm6, %v3883_v37, %v1665_v34  ;;  %v1683_v19 = vsel %vm572_vm6, %v1665_v34, %v3873_v28  ;;  %5257 = vst [vmem:[#allocation85_spill] sm:$0xff] %v4312_v0  ;;  %5258 = vst [vmem:[#allocation86_spill] sm:$0xff] %v4315_v30  ;;  %v1776_v28 = vsel %vm636_vm7, %v1749_v10, %v3885_v40 }
 0x36c   :  { %1666 = vrot.lane.b32.xlu1 %v3915_v54, %s2967_s26  ;;  %5259 = vst [vmem:[#allocation87_spill] sm:$0xff] %v4318_v60  ;;  %5260 = vst [vmem:[#allocation88_spill] sm:$0xff] %v4321_v7  ;;  %v4324_v59 = vmul.f32 %v4274_v9, %v1671_v25  ;;  %v4327_v37 = vmul.f32 %v4277_v55, %v1683_v19  ;;  %v1780_v34 = vsel %vm636_vm7, %v3875_v33, %v1749_v10 }
 0x36d   :  { %1566 = vrot.lane.b32.xlu0 %v3958_v45, %s2966_s29  ;;  %v4350_v55 = vrot.slane %v1788_v42, %v3364_v36  ;;  %5264 = vst [vmem:[#allocation92_spill] sm:$0xff] %v4353_v24  ;;  %v4361_v25 = vmul.f32 %v4315_v30, %v1776_v28 }
 0x36e   :  { %v1765_v18 = vpop.permute.xlu1 %1764  ;;  %5261 = vst [vmem:[#allocation89_spill] sm:$0xff] %v4324_v59  ;;  %5262 = vst [vmem:[#allocation90_spill] sm:$0xff] %v4327_v37  ;;  %v1751_v56 = vpop.permute.xlu0 %1750  ;;  %v4358_v59 = vmul.f32 %v4312_v0, %v1780_v34 }
 0x36f   :  { %v1777_v19 = vsel %vm636_vm7, %v1751_v56, %v3903_v4  ;;  %v1781_v10 = vsel %vm636_vm7, %v3893_v48, %v1751_v56  ;;  %5263 = vst [vmem:[#allocation91_spill] sm:$0xff] %v4350_v55  ;;  %5267 = vst [vmem:[#allocation95_spill] sm:$0xff] %v4361_v25  ;;  %v1772_v56 = vsel %vm636_vm7, %v3885_v40, %v1765_v18  ;;  %v1107_v25 = vld [vmem:[%s5078_s12 + $0x8] sm:$0xff] }
 0x370   :  { %1752 = vrot.lane.b32.xlu1 %v3905_v31, %s2968_s5  ;;  %5266 = vst [vmem:[#allocation94_spill] sm:$0xff] %v4358_v59  ;;  %v4364_v9 = vmul.f32 %v4312_v0, %v1781_v10  ;;  %v4367_v7 = vmul.f32 %v4315_v30, %v1777_v19  ;;  %v1784_v42 = vsel %vm636_vm7, %v1765_v18, %v3875_v33 }
 0x371   :  { %1652 = vrot.lane.b32.xlu0 %v3927_v32, %s2967_s26  ;;  %v4392_v10 = vmul.f32 %v4350_v55, %v1772_v56  ;;  %v4395_v28 = vmul.f32 %v4353_v24, %v1784_v42  ;;  %v2687_v42 = vld [vmem:[%s5077_s11 + $0x4] ss:$12 sps:$4 sm:$0xff]  }
 0x372   :  { %v4355_v60 = vpop.permute.xlu1 %1850  ;;  %5268 = vst [vmem:[#allocation96_spill] sm:$0xff] %v4364_v9  ;;  %5269 = vst [vmem:[#allocation97_spill] sm:$0xff] %v4367_v7  ;;  %v1767_v34 = vpop.permute.xlu0 %1766  ;;  %2093 = vmatprep.mubr.bf16.mxu0 %v2687_v42  ;;  %2199 = vmatprep.mubr.bf16.mxu1 %v2687_v42 }
 0x373   :  { %5265 = vst [vmem:[#allocation93_spill] sm:$0xff] %v4355_v60  ;;  %v1773_v40 = vsel %vm636_vm7, %v3903_v4, %v1767_v34  ;;  %v1785_v33 = vsel %vm636_vm7, %v1767_v34, %v3893_v48  ;;  %5270 = vst [vmem:[#allocation98_spill] sm:$0xff] %v4392_v10 }
 0x374   :  { %1768 = vrot.lane.b32.xlu1 %v3915_v54, %s2968_s5  ;;  %5271 = vst [vmem:[#allocation99_spill] sm:$0xff] %v4395_v28  ;;  %v4398_v59 = vmul.f32 %v4350_v55, %v1773_v40  ;;  %v4401_v19 = vmul.f32 %v4353_v24, %v1785_v33  ;;  %v1106_v24 = vld [vmem:[%s5078_s12] sm:$0xff] }
 0x375   :  { %1668 = vrot.lane.b32.xlu0 %v3958_v45, %s2967_s26 }
 0x376   :  { %v4389_v18 = vpop.permute.xlu1 %1116  ;;  %5272 = vst [vmem:[#allocation100_spill] sm:$0xff] %v4398_v59  ;;  %5273 = vst [vmem:[#allocation101_spill] sm:$0xff] %v4401_v19  ;;  %v4407_v4 = vpop.permute.xlu0 %1852  ;;  %v1108_v19 = vld [vmem:[%s5078_s12 + $0x10] sm:$0xff] }
 0x377   :  { %5274 = vst [vmem:[#allocation102_spill] sm:$0xff] %v4407_v4 }
 0x378   :  { %1866 = vrot.lane.b32.xlu1 %v3703_v21, %s2969_s4 }
 0x379   :  { %1754 = vrot.lane.b32.xlu0 %v3927_v32, %s2968_s5 }
 0x37a   :  { %v4416_v34 = vpop.permute.xlu1 %1132  ;;  %v4420_v40 = vpop.permute.xlu0 %1118 }
 0x37c   :  { %1846 = vrot.lane.b32.xlu1 %v3777_v50, %s2969_s4 }
 0x37d   :  { %1770 = vrot.lane.b32.xlu0 %v3958_v45, %s2968_s5 }
 0x37e   :  { %v4424_v33 = vpop.permute.xlu1 %1218  ;;  %v4428_v48 = vpop.permute.xlu0 %1134 }
 0x380   :  { %1854 = vrot.lane.b32.xlu1 %v3905_v31, %s2969_s4 }
 0x381   :  { %1848 = vrot.lane.b32.xlu0 %v3797_v5, %s2969_s4 }
 0x382   :  { %v4432_v56 = vpop.permute.xlu1 %1234  ;;  %v4436_v42 = vpop.permute.xlu0 %1220 }
 0x384   :  { %1862 = vrot.lane.b32.xlu1 %v3789_v63, %s2969_s4 }
 0x385   :  { %1864 = vrot.lane.b32.xlu0 %v3807_v14, %s2969_s4 }
 0x386   :  { %v4440_v10 = vpop.permute.xlu1 %1320  ;;  %v4444_v59 = vpop.permute.xlu0 %1236 }
 0x388   :  { %1870 = vrot.lane.b32.xlu1 %v3915_v54, %s2969_s4 }
 0x389   :  { %1856 = vrot.lane.b32.xlu0 %v3927_v32, %s2969_s4 }
 0x38a   :  { %v4448_v9 = vpop.permute.xlu1 %1336  ;;  %v4455_v55 = vpop.permute.xlu0 %1322 }
 0x38c   :  { %2330 = vperm.xlu1 %2678, %v1106_v24   ;;  %v2469_v24 = vld [vmem:[%s5080_s14] sm:$0x7] }
 0x38d   :  { %1872 = vrot.lane.b32.xlu0 %v3958_v45, %s2969_s4 }
 0x38e   :  { %v4457_v28 = vpop.permute.xlu1 %1422  ;;  %v4464_v0 = vpop.permute.xlu0 %1338 }
 0x390   :  { %2340 = vperm.xlu1 %2678, %v1108_v19  }
 0x391   :  { %2335 = vperm.xlu0 %2677, %v1107_v25  }
 0x392   :  { %v4469_v7 = vpop.permute.xlu1 %1438  ;;  %v4474_v30 = vpop.permute.xlu0 %1424 }
 0x394   :  { %2472 = vperm.xlu1 %2678, %v2469_v24  }
 0x395   :  { %2345 = vperm.xlu0 %2677, %v1109_v39  }
 0x396   :  { %v4479_v4 = vpop.permute.xlu1 %1540  ;;  %v4481_v60 = vpop.permute.xlu0 %1440 }
 0x397   :  { %5275 = vst [vmem:[#allocation103_spill] sm:$0xff] %v4479_v4  ;;  %v1275_v4 = vrot.slane %v3981_v2, %v3364_v36 }
 0x39a   :  { %v4483_v19 = vpop.permute.xlu1 %1556  ;;  %v4485_v37 = vpop.permute.xlu0 %1542 }
 0x39e   :  { %v4487_v46 = vpop.permute.xlu1 %1642  ;;  %v4489_v20 = vpop.permute.xlu0 %1558 }
 0x39f   :  { %5276 = vst [vmem:[#allocation104_spill] sm:$0xff] %v4487_v46 }
 0x3a2   :  { %v4491_v25 = vpop.permute.xlu1 %1658  ;;  %v4493_v16 = vpop.permute.xlu0 %1644 }
 0x3a3   :  { %5277 = vst [vmem:[#allocation105_spill] sm:$0xff] %v4491_v25  ;;  %5278 = vst [vmem:[#allocation106_spill] sm:$0xff] %v4493_v16  ;;  %v1271_v25 = vrot.slane %v3981_v2, %v3352_v27 }
 0x3a6   :  { %v4495_v38 = vpop.permute.xlu1 %1744  ;;  %v4497_v24 = vpop.permute.xlu0 %1660 }
 0x3a7   :  { %5279 = vst [vmem:[#allocation107_spill] sm:$0xff] %v4495_v38  ;;  %5280 = vst [vmem:[#allocation108_spill] sm:$0xff] %v4497_v24 }
 0x3aa   :  { %v4499_v43 = vpop.permute.xlu1 %1760  ;;  %v4501_v39 = vpop.permute.xlu0 %1746 }
 0x3ab   :  { %5281 = vst [vmem:[#allocation109_spill] sm:$0xff] %v4499_v43  ;;  %5282 = vst [vmem:[#allocation110_spill] sm:$0xff] %v4501_v39  ;;  %v1255_v43 = vsel %vm308_vm2, %v3809_v15, %v3979_v62 }
 0x3ac   :  { %v1289_v27 = vmul.f32 %v1271_v25, %v1255_v43 }
 0x3ae   :  { %v1125_v44 = vpop.permute.xlu1 %1124  ;;  %v4503_v23 = vpop.permute.xlu0 %1762 }
 0x3af   :  { %5283 = vst [vmem:[#allocation111_spill] sm:$0xff] %v4503_v23  ;;  %v1154_v46 = vsel %vm245_vm1, %v4389_v18, %v1125_v44  ;;  %v1150_v2 = vsel %vm245_vm1, %v1125_v44, %v4416_v34 }
 0x3b0   :  { %v1191_v39 = vmul.f32 %v3918_v6, %v1154_v46  ;;  %v5284_v46 = vld [vmem:[#allocation43_spill] sm:$0xff] }
 0x3b2   :  { %v1141_v52 = vpop.permute.xlu1 %1140  ;;  %v1127_v57 = vpop.permute.xlu0 %1126 }
 0x3b3   :  { %v1155_v16 = vsel %vm245_vm1, %v4420_v40, %v1127_v57  ;;  %v1151_v23 = vsel %vm245_vm1, %v1127_v57, %v4428_v48  ;;  %v1146_v14 = vsel %vm245_vm1, %v4416_v34, %v1141_v52  ;;  %v1158_v15 = vsel %vm245_vm1, %v1141_v52, %v4389_v18 }
 0x3b4   :  { %v1195_v24 = vmul.f32 %v3918_v6, %v1155_v16  ;;  %v1254_v57 = vsel %vm308_vm2, %v3791_v1, %v5284_v46  ;;  %v1251_v6 = vsel %vm308_vm2, %v3979_v62, %v3817_v3  ;;  %v1196_v63 = vmul.f32 %v3951_v53, %v1151_v23 }
 0x3b5   :  { %v1190_v3 = vmul.f32 %v3933_v51, %v1158_v15  ;;  %v1193_v62 = vmul.f32 %v3936_v35, %v1146_v14  ;;  %v1250_v23 = vsel %vm308_vm2, %v5284_v46, %v3801_v12  ;;  %v1285_v43 = vmul.f32 %v1271_v25, %v1254_v57  ;;  %v5285_v57 = vld [vmem:[#allocation50_spill] sm:$0xff] }
 0x3b6   :  { %v1227_v38 = vpop.permute.xlu1 %1226  ;;  %v1203_v36 = vpack.c.bf16 %v1195_v24, %v1191_v39  ;;  %v1290_v14 = vmul.f32 %v1275_v4, %v1251_v6  ;;  %v5286_v6 = vld [vmem:[#allocation48_spill] sm:$0xff] }
 0x3b7   :  { %v1143_v16 = vpop.permute.xlu0 %1142 }
 0x3b8   :  { %v1147_v52 = vsel %vm245_vm1, %v4428_v48, %v1143_v16  ;;  %v1159_v1 = vsel %vm245_vm1, %v1143_v16, %v4420_v40  ;;  %2063 = vmatprep.subr.bf16.mxu0 %v1203_v36  ;;  %v1192_v48 = vmul.f32 %v3951_v53, %v1150_v2  ;;  %v1256_v40 = vsel %vm308_vm2, %v4424_v33, %v1227_v38 }
 0x3b9   :  { %v1194_v44 = vmul.f32 %v3933_v51, %v1159_v1  ;;  %v1197_v34 = vmul.f32 %v3936_v35, %v1147_v52  ;;  %v1301_v16 = vpack.c.bf16 %v1289_v27, %v1285_v43  ;;  %v1286_v35 = vmul.f32 %v1275_v4, %v1250_v23  ;;  %v5289_v43 = vld [vmem:[#allocation49_spill] sm:$0xff] }
 0x3ba   :  { %v1243_v18 = vpop.permute.xlu1 %1242  ;;  %v1204_v15 = vpack.c.bf16 %v1196_v63, %v1192_v48  ;;  %v1293_v36 = vmul.f32 %v1271_v25, %v1256_v40  ;;  %v5287_v2 = vpack.c.bf16 %v5285_v57, %v5286_v6  ;;  %v5290_v48 = vld [vmem:[#allocation47_spill] sm:$0xff]  ;;  %v5293_v57 = vpack.c.bf16 %v4058_v49, %v4052_v47 }
 0x3bb   :  { %v1202_v24 = vpack.c.bf16 %v1194_v44, %v1190_v3  ;;  %v1205_v39 = vpack.c.bf16 %v1197_v34, %v1193_v62  ;;  %v1229_v51 = vpop.permute.xlu0 %1228  ;;  %v1260_v63 = vsel %vm308_vm2, %v1243_v18, %v4424_v33  ;;  %v1248_v27 = vsel %vm308_vm2, %v4432_v56, %v1243_v18  ;;  %v5288_v34 = vld [vmem:[#allocation44_spill] sm:$0xff] }
 0x3bc   :  { %v1257_v52 = vsel %vm308_vm2, %v4436_v42, %v1229_v51  ;;  %v1253_v53 = vsel %vm308_vm2, %v1229_v51, %v4444_v59  ;;  %v1302_v1 = vpack.c.bf16 %v1290_v14, %v1286_v35  ;;  %v1252_v3 = vsel %vm308_vm2, %v1227_v38, %v4432_v56 }
 0x3bd   :  { %2064 = vmatpush1.bf16.msra.mxu0 %v1202_v24  ;;  %2169 = vmatprep.subr.bf16.mxu1 %v1205_v39  ;;  %v1297_v46 = vmul.f32 %v1271_v25, %v1257_v52  ;;  %v1298_v44 = vmul.f32 %v1275_v4, %v1253_v53  ;;  %v1292_v33 = vmul.f32 %v5288_v34, %v1260_v63  ;;  %v5292_v39 = vld [vmem:[#allocation45_spill] sm:$0xff]  ;;  %vm2054_vm1 = vcmask 261120  }
 0x3be   :  { %v1329_v12 = vpop.permute.xlu1 %1328  ;;  %2065 = vmatprep.subr.bf16.mxu0 %v1301_v16  ;;  %2170 = vmatpush1.bf16.msra.mxu1 %v1204_v15  ;;  %v5291_v40 = vpack.c.bf16 %v5289_v43, %v5290_v48  ;;  %v1295_v38 = vmul.f32 %v5292_v39, %v1248_v27  ;;  %v1294_v15 = vmul.f32 %v1275_v4, %v1252_v3 }
 0x3bf   :  { %2171 = vmatprep.subr.bf16.mxu1 %v5287_v2  ;;  %v1245_v25 = vpop.permute.xlu0 %1244  ;;  %v1305_v62 = vpack.c.bf16 %v1297_v46, %v1293_v36  ;;  %v1354_v6 = vsel %vm372_vm3, %v1329_v12, %v4448_v9 }
 0x3c0   :  { %v1249_v23 = vsel %vm308_vm2, %v4444_v59, %v1245_v25  ;;  %v1261_v18 = vsel %vm308_vm2, %v1245_v25, %v4436_v42  ;;  %v1358_v59 = vsel %vm372_vm3, %v4440_v10, %v1329_v12  ;;  %v1306_v35 = vpack.c.bf16 %v1298_v44, %v1294_v15  ;;  %v5296_v25 = vld [vmem:[#allocation46_spill] sm:$0xff]  ;;  %v5297_v44 = vld [vmem:[#allocation51_spill] sm:$0xff] }
 0x3c1   :  { %2066 = vmatpush1.bf16.msra.mxu0 %v5291_v40  ;;  %v1296_v56 = vmul.f32 %v5288_v34, %v1261_v18  ;;  %v1299_v14 = vmul.f32 %v5292_v39, %v1249_v23  ;;  %v1395_v53 = vmul.f32 %v4008_v8, %v1358_v59  ;;  %v5299_v23 = vld [vmem:[#allocation58_spill] sm:$0xff]  ;;  %v5300_v18 = vld [vmem:[#allocation56_spill] sm:$0xff]  ;;  %v1396_v48 = vmul.f32 %v5296_v25, %v1354_v6  ;;  %v5303_v40 = vld [vmem:[#allocation53_spill] sm:$0xff] }
 0x3c2   :  { %v1345_v24 = vpop.permute.xlu1 %1344  ;;  %2067 = vmatprep.subr.bf16.mxu0 %v1305_v62  ;;  %2172 = vmatpush1.bf16.msra.mxu1 %v1302_v1  ;;  %v5301_v43 = vpack.c.bf16 %v5299_v23, %v5300_v18  ;;  %v5308_v6 = vld [vmem:[#allocation59_spill] sm:$0xff]  ;;  %v1525_v18 = vpack.c.bf16 %v3927_v32, %v3905_v31  ;;  %v1524_v31 = vpack.c.bf16 %v3797_v5, %v3777_v50 }
 0x3c3   :  { %v1304_v51 = vpack.c.bf16 %v1296_v56, %v1292_v33  ;;  %v1331_v42 = vpop.permute.xlu0 %1330  ;;  %v1307_v16 = vpack.c.bf16 %v1299_v14, %v1295_v38  ;;  %v1350_v63 = vsel %vm372_vm3, %v4448_v9, %v1345_v24  ;;  %v1362_v27 = vsel %vm372_vm3, %v1345_v24, %v4440_v10  ;;  %v5298_v9 = vld [vmem:[#allocation52_spill] sm:$0xff] }
 0x3c4   :  { %v1359_v36 = vsel %vm372_vm3, %v4455_v55, %v1331_v42  ;;  %v1355_v46 = vsel %vm372_vm3, %v1331_v42, %v4464_v0  ;;  %v1394_v34 = vmul.f32 %v5297_v44, %v1362_v27  ;;  %v1397_v12 = vmul.f32 %v5298_v9, %v1350_v63  ;;  %v5307_v27 = vld [vmem:[#allocation55_spill] sm:$0xff] }
 0x3c5   :  { %v1399_v4 = vmul.f32 %v4008_v8, %v1359_v36  ;;  %2068 = vmatpush1.bf16.msra.mxu0 %v1304_v51  ;;  %2173 = vmatprep.subr.bf16.mxu1 %v1307_v16  ;;  %v5294_v8 = vld [vmem:[#allocation57_spill] sm:$0xff]  ;;  %v1400_v62 = vmul.f32 %v5296_v25, %v1355_v46 }
 0x3c6   :  { %v1431_v52 = vpop.permute.xlu1 %1430  ;;  %2069 = vmatprep.subr.bf16.mxu0 %v5293_v57  ;;  %2174 = vmatpush1.bf16.msra.mxu1 %v1306_v35  ;;  %v5295_v2 = vpack.c.bf16 %v4099_v22, %v5294_v8 }
 0x3c7   :  { %v1347_v1 = vpop.permute.xlu0 %1346  ;;  %v1407_v3 = vpack.c.bf16 %v1399_v4, %v1395_v53  ;;  %v1408_v14 = vpack.c.bf16 %v1400_v62, %v1396_v48  ;;  %v5305_v53 = vpack.c.bf16 %v4134_v17, %v4128_v13  ;;  %v1456_v46 = vsel %vm436_vm4, %v1431_v52, %v4469_v7  ;;  %v5314_v62 = vld [vmem:[#allocation61_spill] sm:$0xff] }
 0x3c8   :  { %2175 = vmatprep.subr.bf16.mxu1 %v5295_v2  ;;  %v1351_v10 = vsel %vm372_vm3, %v4464_v0, %v1347_v1  ;;  %v1363_v49 = vsel %vm372_vm3, %v1347_v1, %v4455_v55  ;;  %v1460_v0 = vsel %vm436_vm4, %v4457_v28, %v1431_v52  ;;  %v5302_v55 = vld [vmem:[#allocation54_spill] sm:$0xff]  ;;  %v5311_v1 = vld [vmem:[#allocation65_spill] sm:$0xff]  ;;  %v1498_v25 = vmul.f32 %v5307_v27, %v1456_v46  ;;  %v5329_v46 = vld [vmem:[#allocation63_spill] sm:$0xff] }
 0x3c9   :  { %v1398_v22 = vmul.f32 %v5297_v44, %v1363_v49  ;;  %v1401_v33 = vmul.f32 %v5298_v9, %v1351_v10  ;;  %2070 = vmatpush1.bf16.msra.mxu0 %v5301_v43  ;;  %v5304_v24 = vpack.c.bf16 %v5302_v55, %v5303_v40  ;;  %v1497_v51 = vmul.f32 %v4084_v61, %v1460_v0  ;;  %v5310_v2 = vld [vmem:[#allocation66_spill] sm:$0xff]  ;;  %v5318_v43 = vld [vmem:[#allocation36_spill] sm:$0xff]  ;;  %v5319_v55 = vld [vmem:[#allocation35_spill] sm:$0xff] }
 0x3ca   :  { %v1447_v47 = vpop.permute.xlu1 %1446  ;;  %2071 = vmatprep.subr.bf16.mxu0 %v1407_v3  ;;  %v5312_v3 = vpack.c.bf16 %v5310_v2, %v5311_v1  ;;  %v5317_v9 = vld [vmem:[#allocation38_spill] sm:$0xff]  ;;  %v1522_v48 = vpack.c.bf16 %v3625_v58, %v5318_v43  ;;  %v5335_v1 = vld [vmem:[#allocation71_spill] sm:$0xff] }
 0x3cb   :  { %2176 = vmatpush1.bf16.msra.mxu1 %v5304_v24  ;;  %v1406_v39 = vpack.c.bf16 %v1398_v22, %v1394_v34  ;;  %v1433_v38 = vpop.permute.xlu0 %1432  ;;  %v1409_v56 = vpack.c.bf16 %v1401_v33, %v1397_v12  ;;  %v1452_v35 = vsel %vm436_vm4, %v4469_v7, %v1447_v47  ;;  %v1464_v36 = vsel %vm436_vm4, %v1447_v47, %v4457_v28  ;;  %v5309_v7 = vld [vmem:[#allocation60_spill] sm:$0xff]  ;;  %v5316_v34 = vld [vmem:[#allocation37_spill] sm:$0xff]  ;;  %v5320_v40 = vld [vmem:[#allocation34_spill] sm:$0xff] }
 0x3cc   :  { %v1461_v15 = vsel %vm436_vm4, %v4474_v30, %v1433_v38  ;;  %v1457_v42 = vsel %vm436_vm4, %v1433_v38, %v4481_v60  ;;  %v1496_v8 = vmul.f32 %v5308_v6, %v1464_v36  ;;  %v1499_v52 = vmul.f32 %v5309_v7, %v1452_v35  ;;  %v5326_v35 = vld [vmem:[#allocation72_spill] sm:$0xff]  ;;  %v5327_v36 = vld [vmem:[#allocation70_spill] sm:$0xff] }
 0x3cd   :  { %v1501_v16 = vmul.f32 %v4084_v61, %v1461_v15  ;;  %2072 = vmatpush1.bf16.msra.mxu0 %v1406_v39  ;;  %2177 = vmatprep.subr.bf16.mxu1 %v1409_v56  ;;  %v5306_v61 = vpack.c.bf16 %v4175_v11, %v4169_v41  ;;  %v1502_v57 = vmul.f32 %v5307_v27, %v1457_v42  ;;  %v5344_v43 = vld [vmem:[#allocation106_spill] sm:$0xff] }
 0x3ce   :  { %v4641_v59 = vpop.permute.xlu1 %1858  ;;  %2073 = vmatprep.subr.bf16.mxu0 %v5305_v53  ;;  %v1521_v12 = vpack.c.bf16 %v5317_v9, %v5316_v34  ;;  %v1523_v33 = vpack.c.bf16 %v3715_v29, %v3703_v21  ;;  %v5321_v24 = vpack.c.bf16 %v5319_v55, %v5320_v40  ;;  %v1527_v39 = vpack.c.bf16 %v3958_v45, %v3915_v54  ;;  %v5322_v54 = vld [vmem:[#allocation39_spill] sm:$0xff]  ;;  %v5323_v45 = vld [vmem:[#allocation40_spill] sm:$0xff]  ;;  %v5345_v40 = vld [vmem:[#allocation74_spill] sm:$0xff] }
 0x3cf   :  { %2178 = vmatpush1.bf16.msra.mxu1 %v1408_v14  ;;  %v1449_v4 = vpop.permute.xlu0 %1448  ;;  %v1509_v63 = vpack.c.bf16 %v1501_v16, %v1497_v51  ;;  %v1510_v44 = vpack.c.bf16 %v1502_v57, %v1498_v25  ;;  %v1526_v38 = vpack.c.bf16 %v5323_v45, %v5322_v54  ;;  %v5324_v14 = vld [vmem:[#allocation103_spill] sm:$0xff]  ;;  %v5325_v51 = vld [vmem:[#allocation64_spill] sm:$0xff]  ;;  %v5328_v53 = vpack.c.bf16 %v5326_v35, %v5327_v36  ;;  %v5350_v45 = vld [vmem:[#allocation30_spill] sm:$0xff] }
 0x3d0   :  { %2179 = vmatprep.subr.bf16.mxu1 %v5306_v61  ;;  %v1453_v28 = vsel %vm436_vm4, %v4481_v60, %v1449_v4  ;;  %v1465_v17 = vsel %vm436_vm4, %v1449_v4, %v4474_v30  ;;  %v5313_v60 = vld [vmem:[#allocation62_spill] sm:$0xff] }
 0x3d1   :  { %v1500_v41 = vmul.f32 %v5308_v6, %v1465_v17  ;;  %v1503_v11 = vmul.f32 %v5309_v7, %v1453_v28  ;;  %2074 = vmatpush1.bf16.msra.mxu0 %v5312_v3  ;;  %v5315_v10 = vpack.c.bf16 %v5313_v60, %v5314_v62  ;;  %v5330_v4 = vld [vmem:[#allocation78_spill] sm:$0xff]  ;;  %v5336_v3 = vld [vmem:[#allocation69_spill] sm:$0xff] }
 0x3d2   :  { %v1549_v13 = vpop.permute.xlu1 %1548  ;;  %2075 = vmatprep.subr.bf16.mxu0 %v1509_v63  ;;  %v5331_v63 = vld [vmem:[#allocation76_spill] sm:$0xff]  ;;  %v5337_v25 = vpack.c.bf16 %v5335_v1, %v5336_v3  ;;  %v5338_v60 = vld [vmem:[#allocation105_spill] sm:$0xff]  ;;  %v5364_v1 = vld [vmem:[#allocation102_spill] sm:$0xff] }
 0x3d3   :  { %2180 = vmatpush1.bf16.msra.mxu1 %v5315_v10  ;;  %v1508_v30 = vpack.c.bf16 %v1500_v41, %v1496_v8  ;;  %v4681_v49 = vpop.permute.xlu0 %1860  ;;  %v1511_v47 = vpack.c.bf16 %v1503_v11, %v1499_v52  ;;  %v1574_v21 = vsel %vm508_vm5, %v1549_v13, %v4483_v19  ;;  %v1578_v15 = vsel %vm508_vm5, %v5324_v14, %v1549_v13  ;;  %v5333_v8 = vld [vmem:[#allocation67_spill] sm:$0xff]  ;;  %v5334_v52 = vld [vmem:[#allocation68_spill] sm:$0xff]  ;;  %v5339_v62 = vld [vmem:[#allocation77_spill] sm:$0xff] }
 0x3d4   :  { %v1615_v42 = vmul.f32 %v5325_v51, %v1574_v21  ;;  %v5332_v27 = vpack.c.bf16 %v5330_v4, %v5331_v63  ;;  %v1614_v17 = vmul.f32 %v5329_v46, %v1578_v15  ;;  %v5365_v3 = vld [vmem:[#allocation42_spill] sm:$0xff] }
 0x3d5   :  { %2076 = vmatpush1.bf16.msra.mxu0 %v1508_v30  ;;  %2181 = vmatprep.subr.bf16.mxu1 %v1511_v47  ;;  %v1890_v30 = vld [vmem:[#allocation10 + $0x20] ss:$8 sm:$0xf] }
 0x3d6   :  { %v1565_v22 = vpop.permute.xlu1 %1564  ;;  %2077 = vmatprep.subr.bf16.mxu0 %v1521_v12  ;;  %v5342_v12 = vld [vmem:[#allocation104_spill] sm:$0xff] }
 0x3d7   :  { %2182 = vmatpush1.bf16.msra.mxu1 %v1510_v44  ;;  %v4687_v23 = vpop.permute.xlu0 %1868  ;;  %v1570_v5 = vsel %vm508_vm5, %v4483_v19, %v1565_v22  ;;  %v1582_v16 = vsel %vm508_vm5, %v1565_v22, %v5324_v14  ;;  %v5351_v14 = vld [vmem:[#allocation31_spill] sm:$0xff] }
 0x3d8   :  { %2183 = vmatprep.subr.bf16.mxu1 %v1523_v33  ;;  %v1616_v7 = vmul.f32 %v5333_v8, %v1570_v5  ;;  %v1617_v41 = vmul.f32 %v5334_v52, %v1582_v16  ;;  %v5343_v33 = vld [vmem:[#allocation108_spill] sm:$0xff]  ;;  %v4776_v15 = vrot.slane %v1890_v30, %v5351_v14 }
 0x3d9   :  { %2078 = vmatpush1.bf16.msra.mxu0 %v5321_v24  ;;  %v5354_v5 = vld [vmem:[#allocation88_spill] sm:$0xff] }
 0x3da   :  { %v1651_v0 = vpop.permute.xlu1 %1650  ;;  %2079 = vmatprep.subr.bf16.mxu0 %v1525_v18 }
 0x3db   :  { %2184 = vmatpush1.bf16.msra.mxu1 %v1522_v48  ;;  %v1551_v29 = vpop.permute.xlu0 %1550  ;;  %v1680_v22 = vsel %vm572_vm6, %v5342_v12, %v1651_v0 }
 0x3dc   :  { %2185 = vmatprep.subr.bf16.mxu1 %v1527_v39  ;;  %v1575_v58 = vsel %vm508_vm5, %v1551_v29, %v4489_v20  ;;  %v1579_v32 = vsel %vm508_vm5, %v4485_v37, %v1551_v29 }
 0x3dd   :  { %v1619_v50 = vmul.f32 %v5325_v51, %v1575_v58  ;;  %2080 = vmatpush1.bf16.msra.mxu0 %v1524_v31  ;;  %v1618_v61 = vmul.f32 %v5329_v46, %v1579_v32  ;;  %v5347_v58 = vld [vmem:[#allocation84_spill] sm:$0xff]  ;;  %v5348_v32 = vld [vmem:[#allocation82_spill] sm:$0xff]  ;;  %v5352_v51 = vld [vmem:[#allocation73_spill] sm:$0xff] }
 0x3de   :  { %v1667_v56 = vpop.permute.xlu1 %1666  ;;  %2081 = vmatprep.subr.bf16.mxu0 %v5328_v53  ;;  %v5349_v54 = vpack.c.bf16 %v5347_v58, %v5348_v32  ;;  %v5356_v53 = vld [vmem:[#allocation79_spill] sm:$0xff] }
 0x3df   :  { %2186 = vmatpush1.bf16.msra.mxu1 %v1526_v38  ;;  %v1567_v57 = vpop.permute.xlu0 %1566  ;;  %v1627_v28 = vpack.c.bf16 %v1619_v50, %v1615_v42  ;;  %v1626_v47 = vpack.c.bf16 %v1618_v61, %v1614_v17  ;;  %v1672_v39 = vsel %vm572_vm6, %v5338_v60, %v1667_v56  ;;  %v1684_v31 = vsel %vm572_vm6, %v1667_v56, %v5342_v12  ;;  %v5353_v50 = vld [vmem:[#allocation90_spill] sm:$0xff] }
 0x3e0   :  { %2187 = vmatprep.subr.bf16.mxu1 %v5332_v27  ;;  %v1571_v19 = vsel %vm508_vm5, %v4489_v20, %v1567_v57  ;;  %v1583_v13 = vsel %vm508_vm5, %v1567_v57, %v4485_v37  ;;  %v1676_v20 = vsel %vm572_vm6, %v1651_v0, %v5338_v60  ;;  %v5340_v37 = vld [vmem:[#allocation75_spill] sm:$0xff]  ;;  %v5346_v0 = vld [vmem:[#allocation32_spill] sm:$0xff]  ;;  %v4773_v38 = vrot.slane %v1890_v30, %v5350_v45  ;;  %v5366_v60 = vld [vmem:[#allocation33_spill] sm:$0xff] }
 0x3e1   :  { %v1620_v11 = vmul.f32 %v5333_v8, %v1571_v19  ;;  %v1621_v2 = vmul.f32 %v5334_v52, %v1583_v13  ;;  %2082 = vmatpush1.bf16.msra.mxu0 %v5337_v25  ;;  %v5341_v10 = vpack.c.bf16 %v5339_v62, %v5340_v37  ;;  %v1717_v24 = vmul.f32 %v5345_v40, %v1676_v20  ;;  %v5357_v27 = vld [vmem:[#allocation80_spill] sm:$0xff]  ;;  %v5359_v8 = vld [vmem:[#allocation83_spill] sm:$0xff]  ;;  %v5367_v62 = vld [vmem:[#allocation89_spill] sm:$0xff] }
 0x3e2   :  { %v1753_v6 = vpop.permute.xlu1 %1752  ;;  %2083 = vmatprep.subr.bf16.mxu0 %v1627_v28  ;;  %v4764_v29 = vrot.slane %v1890_v30, %v5346_v0  ;;  %v5355_v16 = vpack.c.bf16 %v5353_v50, %v5354_v5  ;;  %v1716_v56 = vmul.f32 %v5352_v51, %v1680_v22  ;;  %v1718_v46 = vmul.f32 %v5356_v53, %v1672_v39  ;;  %v5358_v28 = vld [vmem:[#allocation109_spill] sm:$0xff]  ;;  %v5368_v37 = vld [vmem:[#allocation87_spill] sm:$0xff] }
 0x3e3   :  { %2188 = vmatpush1.bf16.msra.mxu1 %v5341_v10  ;;  %v1628_v44 = vpack.c.bf16 %v1620_v11, %v1616_v7  ;;  %v1653_v34 = vpop.permute.xlu0 %1652  ;;  %v1629_v9 = vpack.c.bf16 %v1621_v2, %v1617_v41  ;;  %v1719_v57 = vmul.f32 %v5357_v27, %v1684_v31  ;;  %v1778_v17 = vsel %vm636_vm7, %v1753_v6, %v5358_v28  ;;  %v5360_v7 = vld [vmem:[#allocation81_spill] sm:$0xff]  ;;  %v5370_v22 = vld [vmem:[#allocation107_spill] sm:$0xff] }
 0x3e4   :  { %v1677_v18 = vsel %vm572_vm6, %v1653_v34, %v5343_v33  ;;  %v1681_v48 = vsel %vm572_vm6, %v5344_v43, %v1653_v34  ;;  %v5361_v52 = vpack.c.bf16 %v5359_v8, %v5360_v7  ;;  %v5362_v41 = vld [vmem:[#allocation93_spill] sm:$0xff]  ;;  %v1883_v25 = vsel %vm700_vm8, %v5365_v3, %v5364_v1 }
 0x3e5   :  { %v1721_v21 = vmul.f32 %v5345_v40, %v1677_v18  ;;  %2084 = vmatpush1.bf16.msra.mxu0 %v1626_v47  ;;  %2189 = vmatprep.subr.bf16.mxu1 %v1629_v9  ;;  %v1720_v42 = vmul.f32 %v5352_v51, %v1681_v48  ;;  %v5363_v11 = vld [vmem:[#allocation41_spill] sm:$0xff]  ;;  %v4808_v20 = vrot.slane %v1890_v30, %v5366_v60  ;;  %v5371_v30 = vld [vmem:[#allocation86_spill] sm:$0xff] }
 0x3e6   :  { %v1769_v55 = vpop.permute.xlu1 %1768  ;;  %2085 = vmatprep.subr.bf16.mxu0 %v5349_v54  ;;  %v1882_v2 = vsel %vm700_vm8, %v5363_v11, %v5362_v41  ;;  %v5369_v10 = vpack.c.bf16 %v5367_v62, %v5368_v37  ;;  %v1879_v47 = vsel %vm700_vm8, %v5364_v1, %v4681_v49  ;;  %v1819_v18 = vmul.f32 %v5371_v30, %v1778_v17  ;;  %v5373_v40 = vld [vmem:[#allocation110_spill] sm:$0xff]  ;;  %v5374_v51 = vld [vmem:[#allocation97_spill] sm:$0xff] }
 0x3e7   :  { %2190 = vmatpush1.bf16.msra.mxu1 %v1628_v44  ;;  %v1669_v35 = vpop.permute.xlu0 %1668  ;;  %v1729_v36 = vpack.c.bf16 %v1721_v21, %v1717_v24  ;;  %v1728_v44 = vpack.c.bf16 %v1720_v42, %v1716_v56  ;;  %v1774_v21 = vsel %vm636_vm7, %v5358_v28, %v1769_v55  ;;  %v1878_v58 = vsel %vm700_vm8, %v5362_v41, %v4641_v59  ;;  %v5375_v42 = vld [vmem:[#allocation95_spill] sm:$0xff]  ;;  %v5377_v5 = vld [vmem:[#allocation85_spill] sm:$0xff]  ;;  %v5384_v1 = vld [vmem:[#allocation94_spill] sm:$0xff] }
 0x3e8   :  { %2191 = vmatprep.subr.bf16.mxu1 %v5355_v16  ;;  %v1673_v61 = vsel %vm572_vm6, %v5343_v33, %v1669_v35  ;;  %v1685_v4 = vsel %vm572_vm6, %v1669_v35, %v5344_v43  ;;  %v1782_v33 = vsel %vm636_vm7, %v5370_v22, %v1753_v6  ;;  %v5372_v43 = vld [vmem:[#allocation111_spill] sm:$0xff]  ;;  %v1786_v6 = vsel %vm636_vm7, %v1769_v55, %v5370_v22 }
 0x3e9   :  { %v1722_v19 = vmul.f32 %v5356_v53, %v1673_v61  ;;  %v1723_v13 = vmul.f32 %v5357_v27, %v1685_v4  ;;  %2086 = vmatpush1.bf16.msra.mxu0 %v5361_v52  ;;  %v1917_v32 = vmul.f32 %v4773_v38, %v1879_v47  ;;  %v5376_v50 = vpack.c.bf16 %v5374_v51, %v5375_v42  ;;  %v5379_v56 = vld [vmem:[#allocation99_spill] sm:$0xff] }
 0x3ea   :  { %v1867_v63 = vpop.permute.xlu1 %1866  ;;  %2087 = vmatprep.subr.bf16.mxu0 %v1729_v36  ;;  %v1887_v55 = vsel %vm700_vm8, %v4687_v23, %v5365_v3  ;;  %v1818_v16 = vmul.f32 %v5377_v5, %v1782_v33  ;;  %v5378_v36 = vld [vmem:[#allocation101_spill] sm:$0xff]  ;;  %v5381_v4 = vld [vmem:[#allocation91_spill] sm:$0xff]  ;;  %v1916_v62 = vmul.f32 %v4764_v29, %v1883_v25  ;;  %v1913_v37 = vmul.f32 %v4773_v38, %v1878_v58 }
 0x3eb   :  { %2192 = vmatpush1.bf16.msra.mxu1 %v5369_v10  ;;  %v1730_v34 = vpack.c.bf16 %v1722_v19, %v1718_v46  ;;  %v1755_v9 = vpop.permute.xlu0 %1754  ;;  %v1731_v12 = vpack.c.bf16 %v1723_v13, %v1719_v57  ;;  %v1886_v54 = vsel %vm700_vm8, %v1867_v63, %v5363_v11  ;;  %v5380_v53 = vpack.c.bf16 %v5378_v36, %v5379_v56  ;;  %v5382_v57 = vld [vmem:[#allocation92_spill] sm:$0xff]  ;;  %v2690_v42 = vld [vmem:[%s5077_s11 + $0x18] ss:$12 sps:$4 sm:$0xff]  }
 0x3ec   :  { %v1779_v48 = vsel %vm636_vm7, %v1755_v9, %v5372_v43  ;;  %v1783_v24 = vsel %vm636_vm7, %v5373_v40, %v1755_v9  ;;  %v1820_v27 = vmul.f32 %v5381_v4, %v1774_v21  ;;  %v1821_v28 = vmul.f32 %v5382_v57, %v1786_v6  ;;  %v5383_v11 = vld [vmem:[#allocation96_spill] sm:$0xff] }
 0x3ed   :  { %v1823_v31 = vmul.f32 %v5371_v30, %v1779_v48  ;;  %2088 = vmatpush1.bf16.msra.mxu0 %v1728_v44  ;;  %2193 = vmatprep.subr.bf16.mxu1 %v1731_v12  ;;  %v1822_v35 = vmul.f32 %v5377_v5, %v1783_v24  ;;  %v1874_v8 = vsel %vm700_vm8, %v4641_v59, %v1867_v63  ;;  %v5386_v59 = vld [vmem:[#allocation100_spill] sm:$0xff]  ;;  %v5387_v63 = vld [vmem:[#allocation98_spill] sm:$0xff] }
 0x3ee   :  { %v4827_v39 = vpop.permute.xlu1 %1846  ;;  %2089 = vmatprep.subr.bf16.mxu0 %v5376_v50  ;;  %v1915_v7 = vmul.f32 %v4808_v20, %v1886_v54  ;;  %v5385_v3 = vpack.c.bf16 %v5383_v11, %v5384_v1  ;;  %v1875_v10 = vsel %vm700_vm8, %v4681_v49, %v4687_v23  ;;  %v5388_v47 = vpack.c.bf16 %v5386_v59, %v5387_v63  ;;  %v2685_v30 = vld [vmem:[%s5077_s11] ss:$12 sps:$4 sm:$0xff]   ;;  %v2688_v48 = vld [vmem:[%s5077_s11 + $0x1c] ss:$12 sps:$4 sm:$0xff]  }
 0x3ef   :  { %2194 = vmatpush1.bf16.msra.mxu1 %v1730_v34  ;;  %v1771_v46 = vpop.permute.xlu0 %1770  ;;  %v1831_v61 = vpack.c.bf16 %v1823_v31, %v1819_v18  ;;  %v1919_v44 = vmul.f32 %v4808_v20, %v1887_v55  ;;  %v1830_v34 = vpack.c.bf16 %v1822_v35, %v1818_v16  ;;  %v1914_v25 = vmul.f32 %v4776_v15, %v1874_v8 }
 0x3f0   :  { %2195 = vmatprep.subr.bf16.mxu1 %v5380_v53  ;;  %v1775_v17 = vsel %vm636_vm7, %v5372_v43, %v1771_v46  ;;  %v1787_v19 = vsel %vm636_vm7, %v1771_v46, %v5373_v40  ;;  %v1929_v33 = vpack.c.bf16 %v1917_v32, %v1913_v37  ;;  %v1912_v49 = vmul.f32 %v4764_v29, %v1882_v2 }
 0x3f1   :  { %v1824_v52 = vmul.f32 %v5381_v4, %v1775_v17  ;;  %v1825_v41 = vmul.f32 %v5382_v57, %v1787_v19  ;;  %2090 = vmatpush1.bf16.msra.mxu0 %v5385_v3  ;;  %v1931_v23 = vpack.c.bf16 %v1919_v44, %v1915_v7  ;;  %v1918_v43 = vmul.f32 %v4776_v15, %v1875_v10  ;;  %v1091_v7 = vld [vmem:[#allocation16 + $0x8] sm:$0xff]  ;;  %v1094_v3 = vld [vmem:[#allocation16 + $0x20] sm:$0xff] }
 0x3f2   :  { %v1855_v13 = vpop.permute.xlu1 %1854  ;;  %2091 = vmatprep.subr.bf16.mxu0 %v1831_v61  ;;  %v1928_v40 = vpack.c.bf16 %v1916_v62, %v1912_v49  ;;  %v2289_v17 = vstv %s5082_s16  ;;  %v1093_v62 = vld [vmem:[#allocation16 + $0x18] sm:$0xff] }
 0x3f3   :  { %2196 = vmatpush1.bf16.msra.mxu1 %v5388_v47  ;;  %v1832_v9 = vpack.c.bf16 %v1824_v52, %v1820_v27  ;;  %v1849_v12 = vpop.permute.xlu0 %1848  ;;  %v1833_v22 = vpack.c.bf16 %v1825_v41, %v1821_v28  ;;  %v1930_v21 = vpack.c.bf16 %v1918_v43, %v1914_v25  ;;  %v1884_v2 = vsel %vm700_vm8, %v4827_v39, %v1855_v13  ;;  %v1092_v52 = vld [vmem:[#allocation16 + $0x10] sm:$0xff]  ;;  %v1095_v47 = vld [vmem:[#allocation16 + $0x28] sm:$0xff] }
 0x3f4   :  { %v1920_v32 = vmul.f32 %v4764_v29, %v1884_v2 }
 0x3f5   :  { %2092 = vmatpush1.bf16.msra.mxu0 %v1830_v34  ;;  %2197 = vmatprep.subr.bf16.mxu1 %v1833_v22  ;;  %v1097_v22 = vld [vmem:[#allocation16 + $0x38] sm:$0xff] }
 0x3f6   :  { %v1863_v18 = vpop.permute.xlu1 %1862  ;;  %2114 = vmatprep.subr.bf16.mxu0 %v1929_v33 }
 0x3f7   :  { %2198 = vmatpush1.bf16.msra.mxu1 %v1832_v9  ;;  %v1865_v24 = vpop.permute.xlu0 %1864  ;;  %v1880_v6 = vsel %vm700_vm8, %v1855_v13, %v1863_v18  ;;  %v1090_v13 = vld [vmem:[#allocation16] sm:$0xff] }
 0x3f8   :  { %2220 = vmatprep.subr.bf16.mxu1 %v1931_v23  ;;  %2094 = vmatmul.mubr.bf16.vlgmr.msra.gmra.mrb[8].mxu0 %v2685_v30  ;;  %v1921_v50 = vmul.f32 %v4773_v38, %v1880_v6 }
 0x3f9   :  { %2115 = vmatpush1.bf16.msra.mxu0 %v1928_v40  ;;  %2103 = vmatprep.mubr.bf16.mxu0 %v2688_v48 }
 0x3fa   :  { %2200 = vmatmul.mubr.bf16.vlgmr.msra.gmra.mrb[8].mxu1 %v2685_v30  ;;  %v1871_v31 = vpop.permute.xlu1 %1870 }
 0x3fb   :  { %2221 = vmatpush1.bf16.msra.mxu1 %v1930_v21  ;;  %v1857_v58 = vpop.permute.xlu0 %1856  ;;  %2209 = vmatprep.mubr.bf16.mxu1 %v2688_v48  ;;  %v1876_v16 = vsel %vm700_vm8, %v1863_v18, %v1871_v31  ;;  %v1888_v35 = vsel %vm700_vm8, %v1871_v31, %v4827_v39  ;;  %v5389_v39 = vmov 0  }
 0x3fc   :  { %v1881_v54 = vsel %vm700_vm8, %v1857_v58, %v1865_v24  ;;  %v1885_v51 = vsel %vm700_vm8, %v1849_v12, %v1857_v58  ;;  %v1922_v46 = vmul.f32 %v4776_v15, %v1876_v16 }
 0x3fd   :  { %v1924_v55 = vmul.f32 %v4764_v29, %v1885_v51  ;;  %v1925_v5 = vmul.f32 %v4773_v38, %v1881_v54  ;;  %v1923_v38 = vmul.f32 %v4808_v20, %v1888_v35  ;;  %v1099_v35 = vld [vmem:[#allocation16 + $0x48] sm:$0xff] }
 0x3ff   :  { %v1932_v36 = vpack.c.bf16 %v1924_v55, %v1920_v32  ;;  %v1873_v56 = vpop.permute.xlu0 %1872  ;;  %v1933_v53 = vpack.c.bf16 %v1925_v5, %v1921_v50  ;;  %v1098_v55 = vld [vmem:[#allocation16 + $0x40] sm:$0xff] }
 0x400   :  { %v1877_v61 = vsel %vm700_vm8, %v1865_v24, %v1873_v56  ;;  %v1889_v29 = vsel %vm700_vm8, %v1873_v56, %v1849_v12  ;;  %2104 = vmatmul.mubr.bf16.gmra.mrb[12].mxu0 %v2690_v42 }
 0x401   :  { %v1926_v4 = vmul.f32 %v4776_v15, %v1877_v61  ;;  %v1927_v27 = vmul.f32 %v4808_v20, %v1889_v29  ;;  %2116 = vmatprep.subr.bf16.mxu0 %v1933_v53  ;;  %2146 = vmatprep.mubr.bf16.mxu0 %v5389_v39  ;;  %v2692_v15 = vld [vmem:[%s5077_s11 + $0x20] ss:$12 sps:$4 sm:$0xff]   ;;  %v1110_v20 = vld [vmem:[#allocation8] sm:$0xf] }
 0x402   :  { %2210 = vmatmul.mubr.bf16.gmra.mrb[12].mxu1 %v2690_v42  ;;  %2117 = vmatpush1.bf16.msra.mxu0 %v1932_v36  ;;  %v2290_v19 = vmul.f32 %v2289_v17, %v1110_v20  ;;  %v1102_v17 = vld [vmem:[#allocation16 + $0x60] sm:$0xff] }
 0x403   :  { %v1934_v57 = vpack.c.bf16 %v1926_v4, %v1922_v46  ;;  %v1935_v28 = vpack.c.bf16 %v1927_v27, %v1923_v38  ;;  %2252 = vmatprep.mubr.bf16.mxu1 %v5389_v39 }
 0x404   :  { %v4941_v8 = vrot.slane %v2290_v19, %v5346_v0  ;;  %v4944_v11 = vrot.slane %v2290_v19, %v5350_v45  ;;  %v4947_v1 = vrot.slane %v2290_v19, %v5351_v14  ;;  %v4950_v63 = vrot.slane %v2290_v19, %v5366_v60  ;;  %v1096_v0 = vld [vmem:[#allocation16 + $0x30] sm:$0xff] }
 0x405   :  { %2222 = vmatprep.subr.bf16.mxu1 %v1935_v28 }
 0x406   :  { %2223 = vmatpush1.bf16.msra.mxu1 %v1934_v57 }
 0x408   :  { %2631 = vmatmul.mubr.msk.bf16.vlgmr.msra.gmra.mrb[8].mxu0 %vm2054_vm1, %v2691_v26 }
 0x409   :  { %2156 = vmatprep.mubr.bf16.mxu0 %v5389_v39 }
 0x40a   :  { %2633 = vmatmul.mubr.msk.bf16.vlgmr.msra.gmra.mrb[8].mxu1 %vm2054_vm1, %v2691_v26 }
 0x40b   :  { %2262 = vmatprep.mubr.bf16.mxu1 %v5389_v39  ;;  %v2331_v18 = vpop.permute.xlu1 %2330 }
 0x410   :  { %2632 = vmatmul.mubr.msk.bf16.gmra.mrb[12].mxu0 %vm2054_vm1, %v2692_v15  ;;  %v2336_v6 = vpop.permute.xlu0 %2335 }
 0x411   :  { %2510 = vmatprep.mubr.bf16.mxu0 %v5389_v39 }
 0x412   :  { %2634 = vmatmul.mubr.msk.bf16.gmra.mrb[12].mxu1 %vm2054_vm1, %v2692_v15 }
 0x413   :  { %2551 = vmatprep.mubr.bf16.mxu1 %v5389_v39  ;;  %v1100_v39 = vld [vmem:[#allocation16 + $0x50] sm:$0xff] }
 0x4db   :  { %v2148_v41 = vpop.f32.mrb[8].mxu0 }
 0x4dc   :  { %v2273_v37 = vmul.f32 %v2148_v41, %v1090_v13  ;;  %v2150_v10 = vpop.f32.mrb[9].mxu0  ;;  %v1101_v13 = vld [vmem:[#allocation16 + $0x58] sm:$0xff] }
 0x4dd   :  { %v2254_v59 = vpop.f32.mrb[8].mxu1  ;;  %v2274_v44 = vmul.f32 %v2150_v10, %v1091_v7  ;;  %v2152_v9 = vpop.f32.mrb[10].mxu0  ;;  %v1103_v7 = vld [vmem:[#allocation16 + $0x68] sm:$0xff] }
 0x4de   :  { %v2275_v34 = vmul.f32 %v2254_v59, %v1092_v52  ;;  %v2256_v12 = vpop.f32.mrb[9].mxu1  ;;  %v2312_v45 = vadd.f32 %v4941_v8, %v2273_v37  ;;  %v2277_v25 = vmul.f32 %v2152_v9, %v1094_v3  ;;  %v2154_v33 = vpop.f32.mrb[11].mxu0 }
 0x4df   :  { %v2276_v14 = vmul.f32 %v2256_v12, %v1093_v62  ;;  %v2258_v30 = vpop.f32.mrb[10].mxu1  ;;  %v2313_v49 = vadd.f32 %v4944_v11, %v2274_v44  ;;  %v2278_v60 = vmul.f32 %v2154_v33, %v1095_v47  ;;  %v2341_v44 = vpop.permute.xlu1 %2340 }
 0x4e0   :  { %v2314_v23 = vadd.f32 %v4947_v1, %v2275_v34  ;;  %v2279_v43 = vmul.f32 %v2258_v30, %v1096_v0  ;;  %v2260_v48 = vpop.f32.mrb[11].mxu1  ;;  %v2348_v40 = vadd.f32 %v2331_v18, %v2312_v45  ;;  %v2316_v24 = vadd.f32 %v4941_v8, %v2277_v25 }
 0x4e1   :  { %v2315_v21 = vadd.f32 %v4950_v63, %v2276_v14  ;;  %v2280_v2 = vmul.f32 %v2260_v48, %v1097_v22  ;;  %v4957_v31 = vadd.f32 %v2331_v18, %v2313_v49  ;;  %v2317_v32 = vadd.f32 %v4944_v11, %v2278_v60  ;;  %v1105_v60 = vld [vmem:[#allocation16 + $0x78] sm:$0xff] }
 0x4e2   :  { %v2350_v58 = vadd.f32 %v2331_v18, %v2314_v23  ;;  %v2318_v54 = vadd.f32 %v4947_v1, %v2279_v43  ;;  %vm2364_vm2 = vcmp.gt.f32.partialorder %v2348_v40, 0.0  ;;  %v2380_v51 = vmul.f32 0.2, %v2348_v40  ;;  %v1104_v23 = vld [vmem:[#allocation16 + $0x70] sm:$0xff]  ;;  %v2346_v43 = vpop.permute.xlu0 %2345 }
 0x4e3   :  { %v2352_v42 = vadd.f32 %v2336_v6, %v2316_v24  ;;  %v4961_v50 = vadd.f32 %v2331_v18, %v2315_v21  ;;  %v4964_v5 = vmul.f32 0.2, %v4957_v31  ;;  %vm2365_vm4 = vcmp.gt.f32.partialorder %v4957_v31, 0.0  ;;  %v2158_v53 = vpop.f32.mrb[12].mxu0 }
 0x4e4   :  { %vm2366_vm3 = vcmp.gt.f32.partialorder %v2350_v58, 0.0  ;;  %v2382_v16 = vmul.f32 0.2, %v2350_v58  ;;  %v4966_v36 = vsel %vm2364_vm2, %v2348_v40, %v2380_v51  ;;  %v4975_v38 = vadd.f32 %v2336_v6, %v2317_v32  ;;  %v2160_v27 = vpop.f32.mrb[13].mxu0  ;;  %v2434_v51 = vld [vmem:[#allocation17 + $0x28] sm:$0xff] }
 0x4e5   :  { %vm2368_vm5 = vcmp.gt.f32.partialorder %v2352_v42, 0.0  ;;  %v2384_v56 = vmul.f32 0.2, %v2352_v42  ;;  %v2264_v46 = vpop.f32.mrb[12].mxu1  ;;  %2412 = vst [vmem:[#allocation20] sm:$0xff] %v4966_v36  ;;  %v2354_v4 = vadd.f32 %v2336_v6, %v2318_v54  ;;  %v2319_v26 = vadd.f32 %v4950_v63, %v2280_v2  ;;  %v2162_v19 = vpop.f32.mrb[14].mxu0 }
 0x4e6   :  { %v4970_v61 = vsel %vm2366_vm3, %v2350_v58, %v2382_v16  ;;  %v4973_v29 = vmul.f32 0.2, %v4961_v50  ;;  %v2266_v57 = vpop.f32.mrb[13].mxu1  ;;  %v2281_v15 = vmul.f32 %v2158_v53, %v1098_v55  ;;  %v2282_v20 = vmul.f32 %v2160_v27, %v1099_v35  ;;  %v2164_v47 = vpop.f32.mrb[15].mxu0  ;;  %v2430_v58 = vld [vmem:[#allocation17 + $0x8] sm:$0xff]  ;;  %v2433_v55 = vld [vmem:[#allocation17 + $0x20] sm:$0xff] }
 0x4e7   :  { %2414 = vst [vmem:[#allocation20 + $0x10] sm:$0xff] %v4970_v61  ;;  %v4978_v28 = vsel %vm2368_vm5, %v2352_v42, %v2384_v56  ;;  %v2268_v52 = vpop.f32.mrb[14].mxu1  ;;  %vm2369_vm6 = vcmp.gt.f32.partialorder %v4975_v38, 0.0  ;;  %v2385_v41 = vmul.f32 0.2, %v4975_v38  ;;  %vm2370_vm7 = vcmp.gt.f32.partialorder %v2354_v4, 0.0 }
 0x4e8   :  { %2416 = vst [vmem:[#allocation20 + $0x20] sm:$0xff] %v4978_v28  ;;  %v2386_v3 = vmul.f32 0.2, %v2354_v4  ;;  %vm2367_vm8 = vcmp.gt.f32.partialorder %v4961_v50, 0.0  ;;  %v4985_v62 = vadd.f32 %v2336_v6, %v2319_v26  ;;  %v2320_v37 = vadd.f32 %v4941_v8, %v2281_v15  ;;  %v2270_v0 = vpop.f32.mrb[15].mxu1  ;;  %v2429_v42 = vld [vmem:[#allocation17] sm:$0xff] }
 0x4e9   :  { %v2321_v10 = vadd.f32 %v4944_v11, %v2282_v20  ;;  %v2283_v59 = vmul.f32 %v2264_v46, %v1100_v39  ;;  %v2285_v9 = vmul.f32 %v2162_v19, %v1102_v17  ;;  %v2284_v12 = vmul.f32 %v2266_v57, %v1101_v13  ;;  %v2431_v39 = vld [vmem:[#allocation17 + $0x10] sm:$0xff] }
 0x4ea   :  { %v4989_v34 = vsel %vm2370_vm7, %v2354_v4, %v2386_v3  ;;  %v2286_v22 = vmul.f32 %v2164_v47, %v1103_v7  ;;  %vm2371_vm9 = vcmp.gt.f32.partialorder %v4985_v62, 0.0  ;;  %v2387_v45 = vmul.f32 0.2, %v4985_v62  ;;  %v2435_v7 = vld [vmem:[#allocation17 + $0x30] sm:$0xff] }
 0x4eb   :  { %2418 = vst [vmem:[#allocation20 + $0x30] sm:$0xff] %v4989_v34  ;;  %v2356_v25 = vadd.f32 %v2341_v44, %v2320_v37  ;;  %v4994_v14 = vadd.f32 %v2341_v44, %v2321_v10  ;;  %v2322_v33 = vadd.f32 %v4947_v1, %v2283_v59  ;;  %v2324_v30 = vadd.f32 %v4941_v8, %v2285_v9  ;;  %v2442_v37 = vld [vmem:[#allocation17 + $0x68] sm:$0xff]  ;;  %v2441_v10 = vld [vmem:[#allocation17 + $0x60] sm:$0xff]  ;;  %v2443_v9 = vld [vmem:[#allocation17 + $0x70] sm:$0xff] }
 0x4ec   :  { %v2323_v18 = vadd.f32 %v4950_v63, %v2284_v12  ;;  %v2325_v49 = vadd.f32 %v4944_v11, %v2286_v22  ;;  %v2287_v32 = vmul.f32 %v2268_v52, %v1104_v23  ;;  %v2288_v54 = vmul.f32 %v2270_v0, %v1105_v60  ;;  %v2437_v52 = vld [vmem:[#allocation17 + $0x40] sm:$0xff] }
 0x4ed   :  { %vm2372_vm10 = vcmp.gt.f32.partialorder %v2356_v25, 0.0  ;;  %v2388_v48 = vmul.f32 0.2, %v2356_v25  ;;  %vm2373_vm11 = vcmp.gt.f32.partialorder %v4994_v14, 0.0  ;;  %v2389_v40 = vmul.f32 0.2, %v4994_v14 }
 0x4ee   :  { %v2358_v24 = vadd.f32 %v2341_v44, %v2322_v33  ;;  %v2360_v21 = vadd.f32 %v2346_v43, %v2324_v30  ;;  %v5002_v2 = vadd.f32 %v2341_v44, %v2323_v18  ;;  %v2361_v6 = vadd.f32 %v2346_v43, %v2325_v49  ;;  %v2439_v44 = vld [vmem:[#allocation17 + $0x50] sm:$0xff]  ;;  %v2444_v33 = vld [vmem:[#allocation17 + $0x78] sm:$0xff] }
 0x4ef   :  { %v2404_v8 = vsel %vm2372_vm10, %v2356_v25, %v2388_v48  ;;  %v2397_v11 = vsel %vm2365_vm4, %v4957_v31, %v4964_v5  ;;  %v2326_v27 = vadd.f32 %v4947_v1, %v2287_v32  ;;  %v2327_v31 = vadd.f32 %v4950_v63, %v2288_v54  ;;  %v2432_v5 = vld [vmem:[#allocation17 + $0x18] sm:$0xff] }
 0x4f0   :  { %2420 = vst [vmem:[#allocation20 + $0x40] sm:$0xff] %v2404_v8  ;;  %vm2374_vm12 = vcmp.gt.f32.partialorder %v2358_v24, 0.0  ;;  %v2390_v16 = vmul.f32 0.2, %v2358_v24  ;;  %vm2376_vm13 = vcmp.gt.f32.partialorder %v2360_v21, 0.0  ;;  %2413 = vst [vmem:[#allocation20 + $0x8] sm:$0xff] %v2397_v11  ;;  %v2401_v57 = vsel %vm2369_vm6, %v4975_v38, %v2385_v41 }
 0x4f1   :  { %v2392_v35 = vmul.f32 0.2, %v2360_v21  ;;  %vm2375_vm14 = vcmp.gt.f32.partialorder %v5002_v2, 0.0  ;;  %v2391_v56 = vmul.f32 0.2, %v5002_v2  ;;  %vm2377_vm15 = vcmp.gt.f32.partialorder %v2361_v6, 0.0 }
 0x4f2   :  { %v2393_v53 = vmul.f32 0.2, %v2361_v6  ;;  %v2406_v46 = vsel %vm2374_vm12, %v2358_v24, %v2390_v16  ;;  %v2446_v26 = vmul.f32 %v2430_v58, %v2397_v11  ;;  %v2445_v15 = vmul.f32 %v2429_v42, %v4966_v36  ;;  %2417 = vst [vmem:[#allocation20 + $0x28] sm:$0xff] %v2401_v57  ;;  %v2436_v63 = vld [vmem:[#allocation17 + $0x38] sm:$0xff]  ;;  %v2438_v41 = vld [vmem:[#allocation17 + $0x48] sm:$0xff] }
 0x4f3   :  { %v2408_v4 = vsel %vm2376_vm13, %v2360_v21, %v2392_v35  ;;  %2422 = vst [vmem:[#allocation20 + $0x50] sm:$0xff] %v2406_v46  ;;  %v2449_v20 = vmul.f32 %v2433_v55, %v4978_v28  ;;  %v2362_v17 = vadd.f32 %v2346_v43, %v2326_v27  ;;  %v2363_v19 = vadd.f32 %v2346_v43, %v2327_v31  ;;  %v2440_v25 = vld [vmem:[#allocation17 + $0x58] sm:$0xff] }
 0x4f4   :  { %2424 = vst [vmem:[#allocation20 + $0x60] sm:$0xff] %v2408_v4  ;;  %v2450_v13 = vmul.f32 %v2434_v51, %v2401_v57  ;;  %v2399_v1 = vsel %vm2367_vm8, %v4961_v50, %v4973_v29  ;;  %v2403_v38 = vsel %vm2371_vm9, %v4985_v62, %v2387_v45  ;;  %v2447_v28 = vmul.f32 %v2431_v39, %v4970_v61 }
 0x4f5   :  { %v2461_v3 = vpack.c.bf16 %v2449_v20, %v2445_v15  ;;  %2415 = vst [vmem:[#allocation20 + $0x18] sm:$0xff] %v2399_v1  ;;  %v2448_v36 = vmul.f32 %v2432_v5, %v2399_v1  ;;  %vm2378_vm0 = vcmp.gt.f32.partialorder %v2362_v17, 0.0  ;;  %v2394_v59 = vmul.f32 0.2, %v2362_v17  ;;  %2419 = vst [vmem:[#allocation20 + $0x38] sm:$0xff] %v2403_v38 }
 0x4f6   :  { %vm2379_vm2 = vcmp.gt.f32.partialorder %v2363_v19, 0.0  ;;  %v2395_v47 = vmul.f32 0.2, %v2363_v19  ;;  %v2462_v50 = vpack.c.bf16 %v2450_v13, %v2446_v26  ;;  %v2452_v29 = vmul.f32 %v2436_v63, %v2403_v38 }
 0x4f7   :  { %v2451_v0 = vmul.f32 %v2435_v7, %v4989_v34  ;;  %v2405_v62 = vsel %vm2373_vm11, %v4994_v14, %v2389_v40  ;;  %v2410_v12 = vsel %vm2378_vm0, %v2362_v17, %v2394_v59  ;;  %v2409_v61 = vsel %vm2377_vm15, %v2361_v6, %v2393_v53 }
 0x4f8   :  { %2421 = vst [vmem:[#allocation20 + $0x48] sm:$0xff] %v2405_v62  ;;  %v2454_v22 = vmul.f32 %v2438_v41, %v2405_v62  ;;  %v2453_v45 = vmul.f32 %v2437_v52, %v2404_v8  ;;  %2426 = vst [vmem:[#allocation20 + $0x70] sm:$0xff] %v2410_v12  ;;  %2478 = vmatprep.subr.bf16.mxu0 %v2462_v50  ;;  %v2464_v30 = vpack.c.bf16 %v2452_v29, %v2448_v36 }
 0x4f9   :  { %v2463_v18 = vpack.c.bf16 %v2451_v0, %v2447_v28  ;;  %2425 = vst [vmem:[#allocation20 + $0x68] sm:$0xff] %v2409_v61  ;;  %v2458_v34 = vmul.f32 %v2442_v37, %v2409_v61  ;;  %v2457_v49 = vmul.f32 %v2441_v10, %v2408_v4  ;;  %2479 = vmatpush1.bf16.msra.mxu0 %v2461_v3 }
 0x4fa   :  { %v2407_v14 = vsel %vm2375_vm14, %v5002_v2, %v2391_v56  ;;  %v2411_v23 = vsel %vm2379_vm2, %v2363_v19, %v2395_v47  ;;  %v2455_v60 = vmul.f32 %v2439_v44, %v2406_v46  ;;  %v2459_v43 = vmul.f32 %v2443_v9, %v2410_v12  ;;  %2519 = vmatprep.subr.bf16.mxu1 %v2464_v30  ;;  %v2428_v2 = vld [vmem:[%s5079_s13] sm:$0x3] }
 0x4fb   :  { %v2466_v48 = vpack.c.bf16 %v2458_v34, %v2454_v22  ;;  %v2465_v40 = vpack.c.bf16 %v2457_v49, %v2453_v45  ;;  %2423 = vst [vmem:[#allocation20 + $0x58] sm:$0xff] %v2407_v14  ;;  %2427 = vst [vmem:[#allocation20 + $0x78] sm:$0xff] %v2411_v23  ;;  %v2456_v24 = vmul.f32 %v2440_v25, %v2407_v14  ;;  %2520 = vmatpush1.bf16.msra.mxu1 %v2463_v18 }
 0x4fc   :  { %v2460_v21 = vmul.f32 %v2444_v33, %v2411_v23  ;;  %v2467_v6 = vpack.c.bf16 %v2459_v43, %v2455_v60 }
 0x4fd   :  { %2480 = vmatprep.subr.bf16.mxu0 %v2466_v48 }
 0x4fe   :  { %v2468_v58 = vpack.c.bf16 %v2460_v21, %v2456_v24  ;;  %2481 = vmatpush1.bf16.msra.mxu0 %v2465_v40 }
 0x500   :  { %2521 = vmatprep.subr.bf16.mxu1 %v2468_v58 }
 0x501   :  { %2522 = vmatpush1.bf16.msra.mxu1 %v2467_v6  ;;  %2635 = vmatmul.mubr.msk.bf16.vlgmr.msra.gmra.mrb[16].mxu0 %vm2054_vm1, %v2428_v2 }
 0x504   :  { %2636 = vmatmul.mubr.msk.bf16.vlgmr.msra.gmra.mrb[16].mxu1 %vm2054_vm1, %v2428_v2 }
 0x505   :  { %2902 = shalt.err (!%p2899_p6)
}
 0x506   :  { %s2903_s13 = scalar_lea.hbm %s5083_s17, 2048 }
 0x507   :  { %p2904_p7 = scmp.ne.s32.totalorder %s5083_s17, %s2903_s13  ;;  %p2907_p8 = scmp.lt.u32.totalorder %s2903_s13, %s5083_s17 }
 0x509   :  { %p2909_p9 = pnand %p2907_p8, %p2904_p7 }
 0x50b   :  { %2912 = shalt.err (!%p2909_p9)
}
 0x50c   :  { %2593 = dma.vmem_to_hbm [thread:$0]  %s2588_s19, 2048, %s5083_s17, [#allocation7], %s2952_s0, %s2952_s0, %s2953_s23   ;;  %v2473_v8 = vpop.permute.xlu1 %2472 }
 0x50d   :  { %s2972_s17 = smov [#allocation21]  }
 0x50e   :  { %s2600_s0 = sshll.u32 %s2972_s17, 4  ;;  %s2601_s0 = int_to_ptr.vmem [resolvable:$true] %s2600_s0 }
 0x50f   :  { %s2913_s23 = scalar_lea.vmem %s2601_s0, 256  ;;  %p2918_p11 = scmp.lt.s32.totalorder %s2601_s0, %s2601_s0 }
 0x510   :  { %p2914_p10 = scmp.ne.s32.totalorder %s2601_s0, %s2913_s23  ;;  %p2919_p12 = scmp.lt.s32.totalorder %s2913_s23, %s2913_s23 }
 0x512   :  { %p2920_p13 = por %p2919_p12, %p2918_p11 }
 0x514   :  { %p2921_p0 = pnand %p2920_p13, %p2914_p10 }
 0x5d4   :  { %v2512_v32 = vpop.f32.mrb[16].mxu0 }
 0x5d5   :  { %v2513_v54 = vadd.f32 %v2512_v32, %v2473_v8  ;;  %v2514_v11 = vpop.f32.mrb[17].mxu0 }
 0x5d6   :  { %v2515_v51 = vadd.f32 %v2514_v11, %v2473_v8  ;;  %v2516_v55 = vpop.f32.mrb[18].mxu0 }
 0x5d7   :  { %v2553_v42 = vpop.f32.mrb[16].mxu1  ;;  %vm2560_vm1 = vcmp.gt.f32.partialorder %v2513_v54, 0.0  ;;  %v2564_v16 = vmul.f32 0.2, %v2513_v54  ;;  %v2517_v53 = vpop.f32.mrb[19].mxu0 }
 0x5d8   :  { %v2554_v35 = vadd.f32 %v2553_v42, %v2473_v8  ;;  %v2555_v56 = vpop.f32.mrb[17].mxu1  ;;  %vm2561_vm3 = vcmp.gt.f32.partialorder %v2515_v51, 0.0  ;;  %v2565_v46 = vmul.f32 0.2, %v2515_v51 }
 0x5d9   :  { %v2556_v4 = vadd.f32 %v2555_v56, %v2473_v8  ;;  %v2557_v27 = vpop.f32.mrb[18].mxu1  ;;  %v2568_v31 = vsel %vm2560_vm1, %v2513_v54, %v2564_v16 }
 0x5da   :  { %vm2562_vm4 = vcmp.gt.f32.partialorder %v2554_v35, 0.0  ;;  %v2566_v5 = vmul.f32 0.2, %v2554_v35  ;;  %v2558_v39 = vpop.f32.mrb[19].mxu1  ;;  %v2569_v57 = vsel %vm2561_vm3, %v2515_v51, %v2565_v46 }
 0x5db   :  { %vm2563_vm5 = vcmp.gt.f32.partialorder %v2556_v4, 0.0  ;;  %v2567_v26 = vmul.f32 0.2, %v2556_v4  ;;  %v2576_v20 = vcombine.low %v2568_v31, %v2569_v57 }
 0x5dc   :  { %v2570_v15 = vsel %vm2562_vm4, %v2554_v35, %v2566_v5 }
 0x5dd   :  { %v2571_v17 = vsel %vm2563_vm5, %v2556_v4, %v2567_v26  ;;  %2580 = vst [vmem:[#allocation21] sm:$0x77] %v2576_v20 }
 0x5de   :  { %v2577_v19 = vcombine.low %v2570_v15, %v2571_v17 }
 0x5e0   :  { %2581 = vst [vmem:[#allocation21 + $0x8] sm:$0x77] %v2577_v19 }
 0x5e1   :  { %2924 = shalt.err (!%p2921_p0)
}
 0x5e2   :  { %s2925_s14 = scalar_lea.hbm %s5084_s18, 256 }
 0x5e3   :  { %p2926_p1 = scmp.ne.s32.totalorder %s5084_s18, %s2925_s14  ;;  %p2929_p2 = scmp.lt.u32.totalorder %s2925_s14, %s5084_s18 }
 0x5e5   :  { %p2931_p3 = pnand %p2929_p2, %p2926_p1 }
 0x5e7   :  { %2934 = shalt.err (!%p2931_p3)
}
 0x5e8   :  { %2603 = dma.vmem_to_hbm [thread:$0]  %s2601_s0, 256, %s5084_s18, [#allocation22]  }
 0x5e9   :  { %2945 = dma.done.wait [#allocation7], 2048  }
 0x5ea   :  { %2946 = vsyncadd [#allocation7], 4294965248 }
 0x5eb   :  { %2947 = dma.done.wait [#allocation22], 256  }
 0x5ec   :  { %2948 = vsyncadd [#allocation22], 4294967040 }
 0x5ed   :  { %2610 = vsyncpa [#allocation6], 1 }
 0x5ee   :  { %2611 = vsyncpa [#allocation9], 1 }
 0x5ef   :  { %2612 = vsyncpa [#allocation12], 1 }
 0x5f0   :  { %2613 = vsyncpa [#allocation15], 1 }
 0x5f1   :  { %2614 = vsyncpa [#allocation18], 1 }
 0x5f2   :  { %2615 = vsyncpa [#allocation7], 1 }
 0x5f3   :  { %2616 = vsyncpa [#allocation22], 1 }

</bundles_post_ra>
